<compile_context>
chip_gen: v7x
topology: tpu7x:2x2x1
jax: 0.10.0
libtpu: 0.0.40
codegen_flags: <defaults>
</compile_context>

<pallas_src>
import jax
import jax.numpy as jnp
from jax.experimental import pallas as pl
from jax.experimental.pallas import tpu as pltpu

# ----- model hyper-parameters (from the PyTorch module) -----
VOCAB_SIZE = 6            # len(vocab)
EMBED_DIM = 300           # d_model
NUM_CLASSES = 2
NUM_HEADS = 4
HEAD_DIM = EMBED_DIM // NUM_HEADS   # 75
NUM_LAYERS = 2
FFN_DIM = 512
LN_EPS = 1e-5

# ----- example input sizes -----
BATCH = 2
SEQ = 8


def encoder_layer_kernel(
    x_ref,                 # (B*S, D)   f32  embedded tokens (resident across layers)
    bias_ref,              # (H*B, 1, S) f32 additive key-padding bias {0, -1e30} (resident)
    wqkv_ref, bqkv_ref,    # (D, 3D) bf16, (1, 3D) f32   -- this layer's block
    wo_ref, bo_ref,        # (D, D)  bf16, (1, D)  f32
    ln1g_ref, ln1b_ref,    # (1, D) f32
    w1_ref, b1_ref,        # (D, FF) bf16, (1, FF) f32
    w2_ref, b2_ref,        # (FF, D) bf16, (1, D)  f32
    ln2g_ref, ln2b_ref,    # (1, D) f32
    fcw_ref, fcb_ref,      # (D, C) bf16, (1, C) f32 (resident)
    out_ref,               # (B, C) f32
    x_scr,                 # (B*S, D) f32 scratch carried across grid steps (layers)
):
    layer = pl.program_id(0)
    nlayers = pl.num_programs(0)

    BS, D = x_scr.shape
    HB, _, S = bias_ref.shape
    H = NUM_HEADS
    B = HB // H
    HD = D // H

    @pl.when(layer == 0)
    def _():
        x_scr[...] = x_ref[...]

    x = x_scr[...]
    bias = bias_ref[...]                              # (H*B, 1, S)

    def layer_norm(y, gamma, beta):
        mean = jnp.mean(y, axis=-1, keepdims=True)
        mean_sq = jnp.mean(y * y, axis=-1, keepdims=True)
        var = mean_sq - mean * mean
        return (y - mean) * jax.lax.rsqrt(var + LN_EPS) * gamma + beta

    # ---- fused QKV projection (bf16 weights straight into the dot, f32 accumulation) ----
    qkv = jnp.dot(x, wqkv_ref[...], preferred_element_type=jnp.float32) + bqkv_ref[...]

    def split_heads(base):                            # -> (H*B, S, HD), batch order (head, batch)
        parts = [qkv[:, base + h * HD: base + (h + 1) * HD] for h in range(H)]
        return jnp.concatenate(parts, axis=0).reshape(H * B, S, HD)

    qh = split_heads(0)
    kh = split_heads(D)
    vh = split_heads(2 * D)

    # ---- all heads in one batched einsum / softmax / context einsum ----
    scale = jnp.float32(1.0 / (HD ** 0.5))
    s = jnp.einsum('zqd,zkd->zqk', qh, kh, preferred_element_type=jnp.float32) * scale
    s = s + bias                                      # additive key-padding mask
    s_max = jnp.max(s, axis=-1, keepdims=True)
    p = jnp.exp(s - s_max)
    p = p / jnp.sum(p, axis=-1, keepdims=True)
    ctx = jnp.einsum('zqk,zkd->zqd', p, vh, preferred_element_type=jnp.float32)  # (H*B, S, HD)

    # back to (B*S, D) with heads concatenated along the feature (lane) axis
    ctx = jnp.concatenate(
        [ctx[h * B:(h + 1) * B].reshape(BS, HD) for h in range(H)], axis=-1)

    # single full-D output projection
    attn = jnp.dot(ctx, wo_ref[...], preferred_element_type=jnp.float32) + bo_ref[...]

    # ---- post-norm residual 1 ----
    x = layer_norm(x + attn, ln1g_ref[...], ln1b_ref[...])

    # ---- feed forward ----
    h1 = jnp.maximum(
        jnp.dot(x, w1_ref[...], preferred_element_type=jnp.float32) + b1_ref[...], 0.0)
    ff = jnp.dot(h1, w2_ref[...], preferred_element_type=jnp.float32) + b2_ref[...]

    # ---- post-norm residual 2 ----
    x = layer_norm(x + ff, ln2g_ref[...], ln2b_ref[...])

    x_scr[...] = x

    @pl.when(layer == nlayers - 1)
    def _():
        # "cls" token = output at sequence position 0 (transformer_output[0] in PyTorch)
        cls = x.reshape(B, S, D)[:, 0, :]                                   # (B, D)
        logits = jnp.dot(cls, fcw_ref[...],
                         preferred_element_type=jnp.float32) + fcb_ref[...]
        out_ref[...] = logits.astype(out_ref.dtype)


def init_params(key):
    """Deterministic synthetic parameters.  Matmul weights are stored pre-transposed
    (in_features, out_features) and in bfloat16; QKV is fused like PyTorch's in_proj_weight.
    Biases and LayerNorm params stay f32."""
    keys = iter(jax.random.split(key, 32))

    def nrm(shape, scale, dtype=jnp.float32):
        return (scale * jax.random.normal(next(keys), shape)).astype(dtype)

    L, D, FF, C = NUM_LAYERS, EMBED_DIM, FFN_DIM, NUM_CLASSES
    bf16 = jnp.bfloat16
    params = dict(
        embedding=nrm((VOCAB_SIZE + 1, D), 1.0),
        wqkv=nrm((L, D, 3 * D), 0.05, bf16), bqkv=nrm((L, 1, 3 * D), 0.01),
        wo=nrm((L, D, D), 0.05, bf16), bo=nrm((L, 1, D), 0.01),
        ln1g=jnp.ones((L, 1, D), jnp.float32), ln1b=jnp.zeros((L, 1, D), jnp.float32),
        w1=nrm((L, D, FF), 0.05, bf16), b1=nrm((L, 1, FF), 0.01),
        w2=nrm((L, FF, D), 0.05, bf16), b2=nrm((L, 1, D), 0.01),
        ln2g=jnp.ones((L, 1, D), jnp.float32), ln2b=jnp.zeros((L, 1, D), jnp.float32),
        fcw=nrm((D, C), 0.05, bf16), fcb=nrm((1, C), 0.01),
    )
    return params


@jax.jit
def intent_classifier_forward(ids, params):
    B, S = ids.shape
    D, C, H, L = EMBED_DIM, NUM_CLASSES, NUM_HEADS, NUM_LAYERS

    # Embedding lookup (glue); kernel works on the flattened (B*S, D) activation slab.
    emb = params['embedding'][ids].reshape(B * S, D).astype(jnp.float32)

    # Additive key-padding bias {0, -1e30}, replicated per head (batch ordering = (head, batch)).
    # NOTE: like the original, an all-padded row yields a uniform distribution instead of
    # PyTorch's NaNs; the example never produces all-pad sequences.
    kp = jnp.where(ids == 0, jnp.float32(-1e30), jnp.float32(0.0))[:, None, :]  # (B, 1, S)
    bias = jnp.tile(kp, (H, 1, 1))                                              # (H*B, 1, S)

    grid_spec = pltpu.PrefetchScalarGridSpec(
        num_scalar_prefetch=0,
        grid=(L,),                                        # pipeline weights over layers
        in_specs=[
            pl.BlockSpec((B * S, D), lambda l: (0, 0)),            # emb (resident)
            pl.BlockSpec((H * B, 1, S), lambda l: (0, 0, 0)),      # mask bias (resident)
            pl.BlockSpec((None, D, 3 * D), lambda l: (l, 0, 0)),   # wqkv
            pl.BlockSpec((None, 1, 3 * D), lambda l: (l, 0, 0)),   # bqkv
            pl.BlockSpec((None, D, D), lambda l: (l, 0, 0)),       # wo
            pl.BlockSpec((None, 1, D), lambda l: (l, 0, 0)),       # bo
            pl.BlockSpec((None, 1, D), lambda l: (l, 0, 0)),       # ln1g
            pl.BlockSpec((None, 1, D), lambda l: (l, 0, 0)),       # ln1b
            pl.BlockSpec((None, D, FFN_DIM), lambda l: (l, 0, 0)), # w1
            pl.BlockSpec((None, 1, FFN_DIM), lambda l: (l, 0, 0)), # b1
            pl.BlockSpec((None, FFN_DIM, D), lambda l: (l, 0, 0)), # w2
            pl.BlockSpec((None, 1, D), lambda l: (l, 0, 0)),       # b2
            pl.BlockSpec((None, 1, D), lambda l: (l, 0, 0)),       # ln2g
            pl.BlockSpec((None, 1, D), lambda l: (l, 0, 0)),       # ln2b
            pl.BlockSpec((D, C), lambda l: (0, 0)),                # fcw (resident)
            pl.BlockSpec((1, C), lambda l: (0, 0)),                # fcb (resident)
        ],
        out_specs=pl.BlockSpec((B, C), lambda l: (0, 0)),
        scratch_shapes=[pltpu.VMEM((B * S, D), jnp.float32)],      # activations across layers
    )

    logits = pl.pallas_call(
        encoder_layer_kernel,
        out_shape=jax.ShapeDtypeStruct((B, C), jnp.float32),
        grid_spec=grid_spec,
        compiler_params=pltpu.CompilerParams(
            dimension_semantics=("arbitrary",),          # layer axis carries state in scratch
            vmem_limit_bytes=16 * 1024 * 1024,           # sized to footprint (fits v7x's 64 MiB)
        ),
    )(emb, bias, params['wqkv'], params['bqkv'], params['wo'], params['bo'],
      params['ln1g'], params['ln1b'], params['w1'], params['b1'],
      params['w2'], params['b2'], params['ln2g'], params['ln2b'],
      params['fcw'], params['fcb'])
    return logits


if __name__ == "__main__":
    root = jax.random.PRNGKey(0)
    k_param, k_ids = jax.random.split(root)

    params = init_params(k_param)

    # Token ids in [1, VOCAB_SIZE]; trailing positions zeroed to exercise the padding mask.
    ids = jax.random.randint(k_ids, (BATCH, SEQ), 1, VOCAB_SIZE + 1, dtype=jnp.int32)
    ids = ids.at[0, 6:].set(0)
    ids = ids.at[1, 5:].set(0)

    logits = intent_classifier_forward(ids, params)
    jax.block_until_ready(logits)

    assert logits.shape == (BATCH, NUM_CLASSES)
    assert logits.dtype == jnp.float32
    assert bool(jnp.all(jnp.isfinite(logits)))
    print("KERNEL_OK")
</pallas_src>

<mosaic_0001>
module attributes {stable_mosaic.version = 11 : i64} {
  func.func @encoder_layer_kernel(%arg0: i32, %arg1: memref<16x300xf32, #tpu.memory_space<vmem>>, %arg2: memref<8x1x8xf32, #tpu.memory_space<vmem>>, %arg3: memref<1x300x900xbf16, #tpu.memory_space<vmem>>, %arg4: memref<1x1x900xf32, #tpu.memory_space<vmem>>, %arg5: memref<1x300x300xbf16, #tpu.memory_space<vmem>>, %arg6: memref<1x1x300xf32, #tpu.memory_space<vmem>>, %arg7: memref<1x1x300xf32, #tpu.memory_space<vmem>>, %arg8: memref<1x1x300xf32, #tpu.memory_space<vmem>>, %arg9: memref<1x300x512xbf16, #tpu.memory_space<vmem>>, %arg10: memref<1x1x512xf32, #tpu.memory_space<vmem>>, %arg11: memref<1x512x300xbf16, #tpu.memory_space<vmem>>, %arg12: memref<1x1x300xf32, #tpu.memory_space<vmem>>, %arg13: memref<1x1x300xf32, #tpu.memory_space<vmem>>, %arg14: memref<1x1x300xf32, #tpu.memory_space<vmem>>, %arg15: memref<300x2xbf16, #tpu.memory_space<vmem>>, %arg16: memref<1x2xf32, #tpu.memory_space<vmem>>, %arg17: memref<2x2xf32, #tpu.memory_space<vmem>>, %arg18: memref<16x300xf32, #tpu.memory_space<vmem>>) attributes {dimension_semantics = [#tpu.dimension_semantics<arbitrary>], iteration_bounds = array<i64: 2>, scalar_prefetch = 0 : i64, scratch_operands = 1 : i64, tpu.core_type = #tpu.core_type<tc>, window_params = [{pipeline_mode = #tpu.pipeline_mode<synchronous>, transform_indices = @transform_0, window_bounds = array<i64: 16, 300>}, {pipeline_mode = #tpu.pipeline_mode<synchronous>, transform_indices = @transform_1, window_bounds = array<i64: 8, 1, 8>}, {transform_indices = @transform_2, window_bounds = array<i64: 1, 300, 900>}, {transform_indices = @transform_3, window_bounds = array<i64: 1, 1, 900>}, {transform_indices = @transform_4, window_bounds = array<i64: 1, 300, 300>}, {transform_indices = @transform_5, window_bounds = array<i64: 1, 1, 300>}, {transform_indices = @transform_6, window_bounds = array<i64: 1, 1, 300>}, {transform_indices = @transform_7, window_bounds = array<i64: 1, 1, 300>}, {transform_indices = @transform_8, window_bounds = array<i64: 1, 300, 512>}, {transform_indices = @transform_9, window_bounds = array<i64: 1, 1, 512>}, {transform_indices = @transform_10, window_bounds = array<i64: 1, 512, 300>}, {transform_indices = @transform_11, window_bounds = array<i64: 1, 1, 300>}, {transform_indices = @transform_12, window_bounds = array<i64: 1, 1, 300>}, {transform_indices = @transform_13, window_bounds = array<i64: 1, 1, 300>}, {pipeline_mode = #tpu.pipeline_mode<synchronous>, transform_indices = @transform_14, window_bounds = array<i64: 300, 2>}, {pipeline_mode = #tpu.pipeline_mode<synchronous>, transform_indices = @transform_15, window_bounds = array<i64: 1, 2>}, {pipeline_mode = #tpu.pipeline_mode<synchronous>, transform_indices = @transform_16, window_bounds = array<i64: 2, 2>}]} {
    %c0_i32 = arith.constant 0 : i32
    %0 = arith.cmpi eq, %arg0, %c0_i32 : i32
    %1 = arith.extui %0 : i1 to i32
    %c0_i32_0 = arith.constant 0 : i32
    %2 = arith.cmpi ne, %1, %c0_i32_0 : i32
    scf.if %2 {
      %c0_63 = arith.constant 0 : index
      %c0_64 = arith.constant 0 : index
      %135 = vector.load %arg1[%c0_63, %c0_64] : memref<16x300xf32, #tpu.memory_space<vmem>>, vector<16x300xf32>
      %c0_65 = arith.constant 0 : index
      %c0_66 = arith.constant 0 : index
      %136 = vector.load %arg18[%c0_65, %c0_66] : memref<16x300xf32, #tpu.memory_space<vmem>>, vector<16x300xf32>
      tpu.vector_store %arg18[%c0_65, %c0_66], %135 {strides = array<i32>} : memref<16x300xf32, #tpu.memory_space<vmem>>, vector<16x300xf32>,
    } else {
    }
    %c0 = arith.constant 0 : index
    %c0_1 = arith.constant 0 : index
    %3 = vector.load %arg18[%c0, %c0_1] : memref<16x300xf32, #tpu.memory_space<vmem>>, vector<16x300xf32>
    %c0_2 = arith.constant 0 : index
    %c0_3 = arith.constant 0 : index
    %c0_4 = arith.constant 0 : index
    %4 = vector.load %arg2[%c0_2, %c0_3, %c0_4] : memref<8x1x8xf32, #tpu.memory_space<vmem>>, vector<8x1x8xf32>
    %c0_5 = arith.constant 0 : index
    %c0_6 = arith.constant 0 : index
    %c0_7 = arith.constant 0 : index
    %5 = vector.load %arg3[%c0_5, %c0_6, %c0_7] : memref<1x300x900xbf16, #tpu.memory_space<vmem>>, vector<1x300x900xbf16>
    %6 = vector.shape_cast %5 : vector<1x300x900xbf16> to vector<300x900xbf16>
    %cst = arith.constant dense<0.000000e+00> : vector<16x900xf32>
    %7 = tpu.matmul %3, %6, %cst {dimension_numbers = #tpu.dot_dimension_numbers<[1], [0], [0], [1], [0, 0, 1, 1], [], []>} : vector<16x300xf32>, vector<300x900xbf16>, vector<16x900xf32> -> vector<16x900xf32>
    %c0_8 = arith.constant 0 : index
    %c0_9 = arith.constant 0 : index
    %c0_10 = arith.constant 0 : index
    %8 = vector.load %arg4[%c0_8, %c0_9, %c0_10] : memref<1x1x900xf32, #tpu.memory_space<vmem>>, vector<1x1x900xf32>
    %9 = vector.shape_cast %8 : vector<1x1x900xf32> to vector<1x900xf32>
    %10 = vector.broadcast %9 : vector<1x900xf32> to vector<16x900xf32>
    %11 = arith.addf %7, %10 : vector<16x900xf32>
    %12 = vector.extract_strided_slice %11 {offsets = [0, 0], sizes = [16, 75], strides = [1, 1]} : vector<16x900xf32> to vector<16x75xf32>
    %13 = vector.extract_strided_slice %11 {offsets = [0, 75], sizes = [16, 75], strides = [1, 1]} : vector<16x900xf32> to vector<16x75xf32>
    %14 = vector.extract_strided_slice %11 {offsets = [0, 150], sizes = [16, 75], strides = [1, 1]} : vector<16x900xf32> to vector<16x75xf32>
    %15 = vector.extract_strided_slice %11 {offsets = [0, 225], sizes = [16, 75], strides = [1, 1]} : vector<16x900xf32> to vector<16x75xf32>
    %16 = tpu.concatenate %12, %13, %14, %15 in 0 : vector<16x75xf32>, vector<16x75xf32>, vector<16x75xf32>, vector<16x75xf32> -> vector<64x75xf32>
    %17 = vector.shape_cast %16 : vector<64x75xf32> to vector<8x8x75xf32>
    %18 = vector.extract_strided_slice %11 {offsets = [0, 300], sizes = [16, 75], strides = [1, 1]} : vector<16x900xf32> to vector<16x75xf32>
    %19 = vector.extract_strided_slice %11 {offsets = [0, 375], sizes = [16, 75], strides = [1, 1]} : vector<16x900xf32> to vector<16x75xf32>
    %20 = vector.extract_strided_slice %11 {offsets = [0, 450], sizes = [16, 75], strides = [1, 1]} : vector<16x900xf32> to vector<16x75xf32>
    %21 = vector.extract_strided_slice %11 {offsets = [0, 525], sizes = [16, 75], strides = [1, 1]} : vector<16x900xf32> to vector<16x75xf32>
    %22 = tpu.concatenate %18, %19, %20, %21 in 0 : vector<16x75xf32>, vector<16x75xf32>, vector<16x75xf32>, vector<16x75xf32> -> vector<64x75xf32>
    %23 = vector.shape_cast %22 : vector<64x75xf32> to vector<8x8x75xf32>
    %24 = vector.extract_strided_slice %11 {offsets = [0, 600], sizes = [16, 75], strides = [1, 1]} : vector<16x900xf32> to vector<16x75xf32>
    %25 = vector.extract_strided_slice %11 {offsets = [0, 675], sizes = [16, 75], strides = [1, 1]} : vector<16x900xf32> to vector<16x75xf32>
    %26 = vector.extract_strided_slice %11 {offsets = [0, 750], sizes = [16, 75], strides = [1, 1]} : vector<16x900xf32> to vector<16x75xf32>
    %27 = vector.extract_strided_slice %11 {offsets = [0, 825], sizes = [16, 75], strides = [1, 1]} : vector<16x900xf32> to vector<16x75xf32>
    %28 = tpu.concatenate %24, %25, %26, %27 in 0 : vector<16x75xf32>, vector<16x75xf32>, vector<16x75xf32>, vector<16x75xf32> -> vector<64x75xf32>
    %29 = vector.shape_cast %28 : vector<64x75xf32> to vector<8x8x75xf32>
    "tpu.trace_start"() <{level = 10 : i32, message = "zqd,zkd->zqk"}> : () -> ()
    %cst_11 = arith.constant dense<0.000000e+00> : vector<8x8x8xf32>
    %30 = tpu.matmul %17, %23, %cst_11 {dimension_numbers = #tpu.dot_dimension_numbers<[2], [2], [1], [1], [0, 0, 0, 1, 1, 1], [0], [0]>} : vector<8x8x75xf32>, vector<8x8x75xf32>, vector<8x8x8xf32> -> vector<8x8x8xf32>
    "tpu.trace_stop"() : () -> ()
    %cst_12 = arith.constant 0.115470052 : f32
    %31 = vector.broadcast %cst_12 : f32 to vector<8x8x8xf32>
    %32 = arith.mulf %30, %31 : vector<8x8x8xf32>
    %33 = vector.broadcast %4 : vector<8x1x8xf32> to vector<8x8x8xf32>
    %34 = arith.addf %32, %33 : vector<8x8x8xf32>
    %cst_13 = arith.constant dense<0xFF800000> : vector<8x8xf32>
    %35 = vector.multi_reduction <maximumf>, %34, %cst_13 [2] : vector<8x8x8xf32> to vector<8x8xf32>
    %36 = vector.shape_cast %35 : vector<8x8xf32> to vector<8x8x1xf32>
    %37 = vector.broadcast %36 : vector<8x8x1xf32> to vector<8x8x8xf32>
    %38 = arith.subf %34, %37 : vector<8x8x8xf32>
    %39 = math.exp %38 : vector<8x8x8xf32>
    %cst_14 = arith.constant dense<0.000000e+00> : vector<8x8xf32>
    %40 = vector.multi_reduction <add>, %39, %cst_14 [2] : vector<8x8x8xf32> to vector<8x8xf32>
    %41 = vector.shape_cast %40 : vector<8x8xf32> to vector<8x8x1xf32>
    %42 = vector.broadcast %41 : vector<8x8x1xf32> to vector<8x8x8xf32>
    %43 = arith.divf %39, %42 : vector<8x8x8xf32>
    "tpu.trace_start"() <{level = 10 : i32, message = "zqk,zkd->zqd"}> : () -> ()
    %cst_15 = arith.constant dense<0.000000e+00> : vector<8x8x75xf32>
    %44 = tpu.matmul %43, %29, %cst_15 {dimension_numbers = #tpu.dot_dimension_numbers<[2], [1], [1], [2], [0, 0, 0, 1, 1, 2], [0], [0]>} : vector<8x8x8xf32>, vector<8x8x75xf32>, vector<8x8x75xf32> -> vector<8x8x75xf32>
    "tpu.trace_stop"() : () -> ()
    %45 = vector.extract_strided_slice %44 {offsets = [0, 0, 0], sizes = [2, 8, 75], strides = [1, 1, 1]} : vector<8x8x75xf32> to vector<2x8x75xf32>
    %46 = vector.shape_cast %45 : vector<2x8x75xf32> to vector<16x75xf32>
    %47 = vector.extract_strided_slice %44 {offsets = [2, 0, 0], sizes = [2, 8, 75], strides = [1, 1, 1]} : vector<8x8x75xf32> to vector<2x8x75xf32>
    %48 = vector.shape_cast %47 : vector<2x8x75xf32> to vector<16x75xf32>
    %49 = vector.extract_strided_slice %44 {offsets = [4, 0, 0], sizes = [2, 8, 75], strides = [1, 1, 1]} : vector<8x8x75xf32> to vector<2x8x75xf32>
    %50 = vector.shape_cast %49 : vector<2x8x75xf32> to vector<16x75xf32>
    %51 = vector.extract_strided_slice %44 {offsets = [6, 0, 0], sizes = [2, 8, 75], strides = [1, 1, 1]} : vector<8x8x75xf32> to vector<2x8x75xf32>
    %52 = vector.shape_cast %51 : vector<2x8x75xf32> to vector<16x75xf32>
    %53 = tpu.concatenate %46, %48, %50, %52 in 1 : vector<16x75xf32>, vector<16x75xf32>, vector<16x75xf32>, vector<16x75xf32> -> vector<16x300xf32>
    %c0_16 = arith.constant 0 : index
    %c0_17 = arith.constant 0 : index
    %c0_18 = arith.constant 0 : index
    %54 = vector.load %arg5[%c0_16, %c0_17, %c0_18] : memref<1x300x300xbf16, #tpu.memory_space<vmem>>, vector<1x300x300xbf16>
    %55 = vector.shape_cast %54 : vector<1x300x300xbf16> to vector<300x300xbf16>
    %cst_19 = arith.constant dense<0.000000e+00> : vector<16x300xf32>
    %56 = tpu.matmul %53, %55, %cst_19 {dimension_numbers = #tpu.dot_dimension_numbers<[1], [0], [0], [1], [0, 0, 1, 1], [], []>} : vector<16x300xf32>, vector<300x300xbf16>, vector<16x300xf32> -> vector<16x300xf32>
    %c0_20 = arith.constant 0 : index
    %c0_21 = arith.constant 0 : index
    %c0_22 = arith.constant 0 : index
    %57 = vector.load %arg6[%c0_20, %c0_21, %c0_22] : memref<1x1x300xf32, #tpu.memory_space<vmem>>, vector<1x1x300xf32>
    %58 = vector.shape_cast %57 : vector<1x1x300xf32> to vector<1x300xf32>
    %59 = vector.broadcast %58 : vector<1x300xf32> to vector<16x300xf32>
    %60 = arith.addf %56, %59 : vector<16x300xf32>
    %61 = arith.addf %3, %60 : vector<16x300xf32>
    %c0_23 = arith.constant 0 : index
    %c0_24 = arith.constant 0 : index
    %c0_25 = arith.constant 0 : index
    %62 = vector.load %arg7[%c0_23, %c0_24, %c0_25] : memref<1x1x300xf32, #tpu.memory_space<vmem>>, vector<1x1x300xf32>
    %63 = vector.shape_cast %62 : vector<1x1x300xf32> to vector<1x300xf32>
    %c0_26 = arith.constant 0 : index
    %c0_27 = arith.constant 0 : index
    %c0_28 = arith.constant 0 : index
    %64 = vector.load %arg8[%c0_26, %c0_27, %c0_28] : memref<1x1x300xf32, #tpu.memory_space<vmem>>, vector<1x1x300xf32>
    %65 = vector.shape_cast %64 : vector<1x1x300xf32> to vector<1x300xf32>
    %cst_29 = arith.constant dense<0.000000e+00> : vector<16xf32>
    %66 = vector.multi_reduction <add>, %61, %cst_29 [1] : vector<16x300xf32> to vector<16xf32>
    %67 = vector.shape_cast %66 : vector<16xf32> to vector<16x1xf32>
    %cst_30 = arith.constant 3.000000e+02 : f32
    %68 = vector.broadcast %cst_30 : f32 to vector<16x1xf32>
    %69 = arith.divf %67, %68 : vector<16x1xf32>
    %70 = arith.mulf %61, %61 : vector<16x300xf32>
    %cst_31 = arith.constant dense<0.000000e+00> : vector<16xf32>
    %71 = vector.multi_reduction <add>, %70, %cst_31 [1] : vector<16x300xf32> to vector<16xf32>
    %72 = vector.shape_cast %71 : vector<16xf32> to vector<16x1xf32>
    %cst_32 = arith.constant 3.000000e+02 : f32
    %73 = vector.broadcast %cst_32 : f32 to vector<16x1xf32>
    %74 = arith.divf %72, %73 : vector<16x1xf32>
    %75 = arith.mulf %69, %69 : vector<16x1xf32>
    %76 = arith.subf %74, %75 : vector<16x1xf32>
    %77 = vector.broadcast %69 : vector<16x1xf32> to vector<16x300xf32>
    %78 = arith.subf %61, %77 : vector<16x300xf32>
    %cst_33 = arith.constant 9.99999974E-6 : f32
    %79 = vector.broadcast %cst_33 : f32 to vector<16x1xf32>
    %80 = arith.addf %76, %79 : vector<16x1xf32>
    %81 = math.rsqrt %80 : vector<16x1xf32>
    %82 = vector.broadcast %81 : vector<16x1xf32> to vector<16x300xf32>
    %83 = arith.mulf %78, %82 : vector<16x300xf32>
    %84 = vector.broadcast %63 : vector<1x300xf32> to vector<16x300xf32>
    %85 = arith.mulf %83, %84 : vector<16x300xf32>
    %86 = vector.broadcast %65 : vector<1x300xf32> to vector<16x300xf32>
    %87 = arith.addf %85, %86 : vector<16x300xf32>
    %c0_34 = arith.constant 0 : index
    %c0_35 = arith.constant 0 : index
    %c0_36 = arith.constant 0 : index
    %88 = vector.load %arg9[%c0_34, %c0_35, %c0_36] : memref<1x300x512xbf16, #tpu.memory_space<vmem>>, vector<1x300x512xbf16>
    %89 = vector.shape_cast %88 : vector<1x300x512xbf16> to vector<300x512xbf16>
    %cst_37 = arith.constant dense<0.000000e+00> : vector<16x512xf32>
    %90 = tpu.matmul %87, %89, %cst_37 {dimension_numbers = #tpu.dot_dimension_numbers<[1], [0], [0], [1], [0, 0, 1, 1], [], []>} : vector<16x300xf32>, vector<300x512xbf16>, vector<16x512xf32> -> vector<16x512xf32>
    %c0_38 = arith.constant 0 : index
    %c0_39 = arith.constant 0 : index
    %c0_40 = arith.constant 0 : index
    %91 = vector.load %arg10[%c0_38, %c0_39, %c0_40] : memref<1x1x512xf32, #tpu.memory_space<vmem>>, vector<1x1x512xf32>
    %92 = vector.shape_cast %91 : vector<1x1x512xf32> to vector<1x512xf32>
    %93 = vector.broadcast %92 : vector<1x512xf32> to vector<16x512xf32>
    %94 = arith.addf %90, %93 : vector<16x512xf32>
    %cst_41 = arith.constant 0.000000e+00 : f32
    %95 = vector.broadcast %cst_41 : f32 to vector<16x512xf32>
    %96 = arith.maximumf %94, %95 : vector<16x512xf32>
    %c0_42 = arith.constant 0 : index
    %c0_43 = arith.constant 0 : index
    %c0_44 = arith.constant 0 : index
    %97 = vector.load %arg11[%c0_42, %c0_43, %c0_44] : memref<1x512x300xbf16, #tpu.memory_space<vmem>>, vector<1x512x300xbf16>
    %98 = vector.shape_cast %97 : vector<1x512x300xbf16> to vector<512x300xbf16>
    %cst_45 = arith.constant dense<0.000000e+00> : vector<16x300xf32>
    %99 = tpu.matmul %96, %98, %cst_45 {dimension_numbers = #tpu.dot_dimension_numbers<[1], [0], [0], [1], [0, 0, 1, 1], [], []>} : vector<16x512xf32>, vector<512x300xbf16>, vector<16x300xf32> -> vector<16x300xf32>
    %c0_46 = arith.constant 0 : index
    %c0_47 = arith.constant 0 : index
    %c0_48 = arith.constant 0 : index
    %100 = vector.load %arg12[%c0_46, %c0_47, %c0_48] : memref<1x1x300xf32, #tpu.memory_space<vmem>>, vector<1x1x300xf32>
    %101 = vector.shape_cast %100 : vector<1x1x300xf32> to vector<1x300xf32>
    %102 = vector.broadcast %101 : vector<1x300xf32> to vector<16x300xf32>
    %103 = arith.addf %99, %102 : vector<16x300xf32>
    %104 = arith.addf %87, %103 : vector<16x300xf32>
    %c0_49 = arith.constant 0 : index
    %c0_50 = arith.constant 0 : index
    %c0_51 = arith.constant 0 : index
    %105 = vector.load %arg13[%c0_49, %c0_50, %c0_51] : memref<1x1x300xf32, #tpu.memory_space<vmem>>, vector<1x1x300xf32>
    %106 = vector.shape_cast %105 : vector<1x1x300xf32> to vector<1x300xf32>
    %c0_52 = arith.constant 0 : index
    %c0_53 = arith.constant 0 : index
    %c0_54 = arith.constant 0 : index
    %107 = vector.load %arg14[%c0_52, %c0_53, %c0_54] : memref<1x1x300xf32, #tpu.memory_space<vmem>>, vector<1x1x300xf32>
    %108 = vector.shape_cast %107 : vector<1x1x300xf32> to vector<1x300xf32>
    %cst_55 = arith.constant dense<0.000000e+00> : vector<16xf32>
    %109 = vector.multi_reduction <add>, %104, %cst_55 [1] : vector<16x300xf32> to vector<16xf32>
    %110 = vector.shape_cast %109 : vector<16xf32> to vector<16x1xf32>
    %cst_56 = arith.constant 3.000000e+02 : f32
    %111 = vector.broadcast %cst_56 : f32 to vector<16x1xf32>
    %112 = arith.divf %110, %111 : vector<16x1xf32>
    %113 = arith.mulf %104, %104 : vector<16x300xf32>
    %cst_57 = arith.constant dense<0.000000e+00> : vector<16xf32>
    %114 = vector.multi_reduction <add>, %113, %cst_57 [1] : vector<16x300xf32> to vector<16xf32>
    %115 = vector.shape_cast %114 : vector<16xf32> to vector<16x1xf32>
    %cst_58 = arith.constant 3.000000e+02 : f32
    %116 = vector.broadcast %cst_58 : f32 to vector<16x1xf32>
    %117 = arith.divf %115, %116 : vector<16x1xf32>
    %118 = arith.mulf %112, %112 : vector<16x1xf32>
    %119 = arith.subf %117, %118 : vector<16x1xf32>
    %120 = vector.broadcast %112 : vector<16x1xf32> to vector<16x300xf32>
    %121 = arith.subf %104, %120 : vector<16x300xf32>
    %cst_59 = arith.constant 9.99999974E-6 : f32
    %122 = vector.broadcast %cst_59 : f32 to vector<16x1xf32>
    %123 = arith.addf %119, %122 : vector<16x1xf32>
    %124 = math.rsqrt %123 : vector<16x1xf32>
    %125 = vector.broadcast %124 : vector<16x1xf32> to vector<16x300xf32>
    %126 = arith.mulf %121, %125 : vector<16x300xf32>
    %127 = vector.broadcast %106 : vector<1x300xf32> to vector<16x300xf32>
    %128 = arith.mulf %126, %127 : vector<16x300xf32>
    %129 = vector.broadcast %108 : vector<1x300xf32> to vector<16x300xf32>
    %130 = arith.addf %128, %129 : vector<16x300xf32>
    %c0_60 = arith.constant 0 : index
    %c0_61 = arith.constant 0 : index
    %131 = vector.load %arg18[%c0_60, %c0_61] : memref<16x300xf32, #tpu.memory_space<vmem>>, vector<16x300xf32>
    tpu.vector_store %arg18[%c0_60, %c0_61], %130 {strides = array<i32>} : memref<16x300xf32, #tpu.memory_space<vmem>>, vector<16x300xf32>,
    %c1_i32 = arith.constant 1 : i32
    %132 = arith.cmpi eq, %arg0, %c1_i32 : i32
    %133 = arith.extui %132 : i1 to i32
    %c0_i32_62 = arith.constant 0 : i32
    %134 = arith.cmpi ne, %133, %c0_i32_62 : i32
    scf.if %134 {
      %135 = vector.shape_cast %130 : vector<16x300xf32> to vector<2x8x300xf32>
      %136 = vector.extract_strided_slice %135 {offsets = [0, 0, 0], sizes = [2, 1, 300], strides = [1, 1, 1]} : vector<2x8x300xf32> to vector<2x1x300xf32>
      %137 = vector.shape_cast %136 : vector<2x1x300xf32> to vector<2x300xf32>
      %c0_63 = arith.constant 0 : index
      %c0_64 = arith.constant 0 : index
      %138 = vector.load %arg15[%c0_63, %c0_64] : memref<300x2xbf16, #tpu.memory_space<vmem>>, vector<300x2xbf16>
      %cst_65 = arith.constant dense<0.000000e+00> : vector<2x2xf32>
      %139 = tpu.matmul %137, %138, %cst_65 {dimension_numbers = #tpu.dot_dimension_numbers<[1], [0], [0], [1], [0, 0, 1, 1], [], []>} : vector<2x300xf32>, vector<300x2xbf16>, vector<2x2xf32> -> vector<2x2xf32>
      %c0_66 = arith.constant 0 : index
      %c0_67 = arith.constant 0 : index
      %140 = vector.load %arg16[%c0_66, %c0_67] : memref<1x2xf32, #tpu.memory_space<vmem>>, vector<1x2xf32>
      %141 = vector.broadcast %140 : vector<1x2xf32> to vector<2x2xf32>
      %142 = arith.addf %139, %141 : vector<2x2xf32>
      %c0_68 = arith.constant 0 : index
      %c0_69 = arith.constant 0 : index
      %143 = vector.load %arg17[%c0_68, %c0_69] : memref<2x2xf32, #tpu.memory_space<vmem>>, vector<2x2xf32>
      tpu.vector_store %arg17[%c0_68, %c0_69], %142 {strides = array<i32>} : memref<2x2xf32, #tpu.memory_space<vmem>>, vector<2x2xf32>,
    } else {
    }
    return
  }
  func.func @transform_0(%arg0: i32) -> (i32, i32) {
    %c0_i32 = arith.constant 0 : i32
    %c0_i32_0 = arith.constant 0 : i32
    %c0_i32_1 = arith.constant 0 : i32
    return %c0_i32, %c0_i32_0 : i32, i32
  }
  func.func @transform_1(%arg0: i32) -> (i32, i32, i32) {
    %c0_i32 = arith.constant 0 : i32
    %c0_i32_0 = arith.constant 0 : i32
    %c0_i32_1 = arith.constant 0 : i32
    %c0_i32_2 = arith.constant 0 : i32
    return %c0_i32, %c0_i32_0, %c0_i32_1 : i32, i32, i32
  }
  func.func @transform_2(%arg0: i32) -> (i32, i32, i32) {
    %c0_i32 = arith.constant 0 : i32
    %c0_i32_0 = arith.constant 0 : i32
    %c0_i32_1 = arith.constant 0 : i32
    return %arg0, %c0_i32, %c0_i32_0 : i32, i32, i32
  }
  func.func @transform_3(%arg0: i32) -> (i32, i32, i32) {
    %c0_i32 = arith.constant 0 : i32
    %c0_i32_0 = arith.constant 0 : i32
    %c0_i32_1 = arith.constant 0 : i32
    return %arg0, %c0_i32, %c0_i32_0 : i32, i32, i32
  }
  func.func @transform_4(%arg0: i32) -> (i32, i32, i32) {
    %c0_i32 = arith.constant 0 : i32
    %c0_i32_0 = arith.constant 0 : i32
    %c0_i32_1 = arith.constant 0 : i32
    return %arg0, %c0_i32, %c0_i32_0 : i32, i32, i32
  }
  func.func @transform_5(%arg0: i32) -> (i32, i32, i32) {
    %c0_i32 = arith.constant 0 : i32
    %c0_i32_0 = arith.constant 0 : i32
    %c0_i32_1 = arith.constant 0 : i32
    return %arg0, %c0_i32, %c0_i32_0 : i32, i32, i32
  }
  func.func @transform_6(%arg0: i32) -> (i32, i32, i32) {
    %c0_i32 = arith.constant 0 : i32
    %c0_i32_0 = arith.constant 0 : i32
    %c0_i32_1 = arith.constant 0 : i32
    return %arg0, %c0_i32, %c0_i32_0 : i32, i32, i32
  }
  func.func @transform_7(%arg0: i32) -> (i32, i32, i32) {
    %c0_i32 = arith.constant 0 : i32
    %c0_i32_0 = arith.constant 0 : i32
    %c0_i32_1 = arith.constant 0 : i32
    return %arg0, %c0_i32, %c0_i32_0 : i32, i32, i32
  }
  func.func @transform_8(%arg0: i32) -> (i32, i32, i32) {
    %c0_i32 = arith.constant 0 : i32
    %c0_i32_0 = arith.constant 0 : i32
    %c0_i32_1 = arith.constant 0 : i32
    return %arg0, %c0_i32, %c0_i32_0 : i32, i32, i32
  }
  func.func @transform_9(%arg0: i32) -> (i32, i32, i32) {
    %c0_i32 = arith.constant 0 : i32
    %c0_i32_0 = arith.constant 0 : i32
    %c0_i32_1 = arith.constant 0 : i32
    return %arg0, %c0_i32, %c0_i32_0 : i32, i32, i32
  }
  func.func @transform_10(%arg0: i32) -> (i32, i32, i32) {
    %c0_i32 = arith.constant 0 : i32
    %c0_i32_0 = arith.constant 0 : i32
    %c0_i32_1 = arith.constant 0 : i32
    return %arg0, %c0_i32, %c0_i32_0 : i32, i32, i32
  }
  func.func @transform_11(%arg0: i32) -> (i32, i32, i32) {
    %c0_i32 = arith.constant 0 : i32
    %c0_i32_0 = arith.constant 0 : i32
    %c0_i32_1 = arith.constant 0 : i32
    return %arg0, %c0_i32, %c0_i32_0 : i32, i32, i32
  }
  func.func @transform_12(%arg0: i32) -> (i32, i32, i32) {
    %c0_i32 = arith.constant 0 : i32
    %c0_i32_0 = arith.constant 0 : i32
    %c0_i32_1 = arith.constant 0 : i32
    return %arg0, %c0_i32, %c0_i32_0 : i32, i32, i32
  }
  func.func @transform_13(%arg0: i32) -> (i32, i32, i32) {
    %c0_i32 = arith.constant 0 : i32
    %c0_i32_0 = arith.constant 0 : i32
    %c0_i32_1 = arith.constant 0 : i32
    return %arg0, %c0_i32, %c0_i32_0 : i32, i32, i32
  }
  func.func @transform_14(%arg0: i32) -> (i32, i32) {
    %c0_i32 = arith.constant 0 : i32
    %c0_i32_0 = arith.constant 0 : i32
    %c0_i32_1 = arith.constant 0 : i32
    return %c0_i32, %c0_i32_0 : i32, i32
  }
  func.func @transform_15(%arg0: i32) -> (i32, i32) {
    %c0_i32 = arith.constant 0 : i32
    %c0_i32_0 = arith.constant 0 : i32
    %c0_i32_1 = arith.constant 0 : i32
    return %c0_i32, %c0_i32_0 : i32, i32
  }
  func.func @transform_16(%arg0: i32) -> (i32, i32) {
    %c0_i32 = arith.constant 0 : i32
    %c0_i32_0 = arith.constant 0 : i32
    %c0_i32_1 = arith.constant 0 : i32
    return %c0_i32, %c0_i32_0 : i32, i32
  }
}

</mosaic_0001>

<bundles_post_ra>
// kernel: intent_classifier_forward.1
= control target key start
LH: loop header
LB: loop body
LE: loop exit
PB: predicated region body
PF: predicated region fallthrough
CT: control target
= control target key end

     0   :  { %s8794_s0 = inlined_call_operand.vmem [shape: f32[16,300], index: 0, kind: input, shape index: {}]   ;;  %s8795_s1 = inlined_call_operand.vmem [shape: f32[8,1,8], index: 1, kind: input, shape index: {}]   ;;  %s8796_s2 = inlined_call_operand.vmem [shape: bf16[2,300,900], index: 2, kind: input, shape index: {}]   ;;  %s8797_s3 = inlined_call_operand.vmem [shape: f32[2,1,900], index: 3, kind: input, shape index: {}]   ;;  %s8798_s4 = inlined_call_operand.vmem [shape: bf16[2,300,300], index: 4, kind: input, shape index: {}]   ;;  %s8799_s5 = inlined_call_operand.vmem [shape: f32[2,1,300], index: 5, kind: input, shape index: {}]   ;;  %s8800_s6 = inlined_call_operand.vmem [shape: f32[2,1,300], index: 6, kind: input, shape index: {}]   ;;  %s8801_s7 = inlined_call_operand.vmem [shape: f32[2,1,300], index: 7, kind: input, shape index: {}]   ;;  %s8802_s8 = inlined_call_operand.vmem [shape: bf16[2,300,512], index: 8, kind: input, shape index: {}]   ;;  %s8803_s9 = inlined_call_operand.vmem [shape: f32[2,1,512], index: 9, kind: input, shape index: {}]   ;;  %s8804_s10 = inlined_call_operand.vmem [shape: bf16[2,512,300], index: 10, kind: input, shape index: {}]   ;;  %s8805_s11 = inlined_call_operand.vmem [shape: f32[2,1,300], index: 11, kind: input, shape index: {}]   ;;  %s8806_s12 = inlined_call_operand.vmem [shape: f32[2,1,300], index: 12, kind: input, shape index: {}]   ;;  %s8807_s13 = inlined_call_operand.vmem [shape: f32[2,1,300], index: 13, kind: input, shape index: {}]   ;;  %s8808_s14 = inlined_call_operand.vmem [shape: bf16[300,2], index: 14, kind: input, shape index: {}]   ;;  %s8809_s15 = inlined_call_operand.vmem [shape: f32[1,2], index: 15, kind: input, shape index: {}]   ;;  %s8810_s16 = inlined_call_operand.hbm [shape: f32[2,2], index: 16, kind: output, shape index: {}]  }
   0x1   :  { %8817 = sst [smem:[#allocation8_spill]] %s8794_s0 }
   0x2   :  { %8818 = sst [smem:[#allocation9_spill]] %s8795_s1 }
   0x3   :  { %8819 = sst [smem:[#allocation10_spill]] %s8796_s2 }
   0x4   :  { %8820 = sst [smem:[#allocation11_spill]] %s8797_s3 }
   0x5   :  { %8821 = sst [smem:[#allocation12_spill]] %s8798_s4 }
   0x6   :  { %8822 = sst [smem:[#allocation13_spill]] %s8808_s14 }
   0x7   :  { %8823 = sst [smem:[#allocation14_spill]] %s8809_s15 }
   0x8   :  { %8824 = sst [smem:[#allocation15_spill]] %s8810_s16 }
   0x9   :  { %21 = vsyncpa [#allocation4], 0  ;;  %s7646_s21 = smov 0  }
   0xa LB: > { %8825 = sst [smem:[#allocation6_spill]] %s7546_s21  ;;  %s7652_s22 = sadd.s32 4294967295, %s7546_s21   ;;  %s7546_s21 = sphi %s7646_s21, %s27_s21  }
   0xb   : > { %p6334_p0 = scmp.ge.s32.totalorder %s7546_s21, 1  ;;  %p560_p1 = scmp.lt.s32.totalorder %s7546_s21, 3 }
   0xd   : > { %p561_p2 = pnand %p6334_p0, %p560_p1 }
   0xf   : > { %564 = sbr.rel (%p561_p2) target bundleno = 2877 (0xb3d), region = 84 }
  0x16   : > { %p652_p3 = scmp.lt.s32.totalorder %s7652_s22, 1  ;;  %s8826_s3 = sld [smem:[#allocation11_spill]] }
  0x17   : > { %s8827_s2 = sld [smem:[#allocation10_spill]]  ;;  %s8828_s4 = sld [smem:[#allocation12_spill]] }
  0x18   : > { %s653_s23 = scalar_select %p652_p3, %s7652_s22, 1 }
  0x19   : > { %p6341_p4 = scmp.ne.s32.totalorder %s7652_s22, 0 }
  0x1a   : > { %s7093_s24 = smul.u32 1216, %s653_s23  ;;  %s6336_s25 = sshll.u32 %s653_s23, 3  ;;  %vm717_vm0 = vcmask (!%p6341_p4), 359424  }
  0x1b   : > { %s7094_s29 = smul.u32 456, %s653_s23  ;;  %s8830_s30 = sld [smem:[#allocation8_spill]] (!%p6341_p4) }
  0x1c   : > { %s7661_s28 = scalar_lea.vmem %s8826_s3, %s6336_s25  ;;  %s7668_s18 = smul.u32 3, %s653_s23 }
  0x1d   : > { %s7666_s17 = scalar_lea.vmem %s8827_s2, %s7093_s24  ;;  %s7673_s26 = scalar_lea.vmem %s8828_s4, %s7094_s29 }
  0x1e   : > { %8829 = sst [smem:[#allocation7_spill]] %s7673_s26  ;;  %s7096_s25 = smul.u32 608, %s653_s23 }
  0x1f   : > { %s6339_s29 = sshll.u32 %s653_s23, 2  ;;  %s7097_s4 = smul.u32 768, %s653_s23 }
  0x20   : > { %s7690_s14 = scalar_lea.vmem %s8802_s8, %s7096_s25  ;;  %s7695_s3 = scalar_lea.vmem %s8803_s9, %s6339_s29 }
  0x21   : > { %s695_s24 = scalar_lea.vmem %s8805_s11, %s7668_s18  ;;  %s7704_s16 = scalar_lea.vmem %s8804_s10, %s7097_s4  ;;  %v709_v0 = vld [vmem:[%s8830_s30] sm:$0xff] (!%p6341_p4)  ;;  %v710_v1 = vld [vmem:[%s8830_s30 + $0x8] sm:$0xff] (!%p6341_p4)  ;;  %v711_v2 = vld [vmem:[%s8830_s30 + $0x10] sm:$0xff] (!%p6341_p4) }
  0x22   : > { %s699_s25 = scalar_lea.vmem %s8806_s12, %s7668_s18  ;;  %s703_s19 = scalar_lea.vmem %s8807_s13, %s7668_s18  ;;  %715 = vst [vmem:[#allocation2] sm:$0xff] (!%p6341_p4), %v709_v0  ;;  %716 = vst [vmem:[#allocation2 + $0x8] sm:$0xff] (!%p6341_p4), %v710_v1  ;;  %v712_v3 = vld [vmem:[%s8830_s30 + $0x18] sm:$0xff] (!%p6341_p4)  ;;  %v713_v4 = vld [vmem:[%s8830_s30 + $0x20] sm:$0xff] (!%p6341_p4) }
  0x23   : > { %708 = sbr.rel (%p6341_p4) target bundleno = 42 (0x2a), region = 88  ;;  %718 = vst.msk [vmem:[#allocation2 + $0x10] sm:$0xff] (!%p6341_p4), %vm717_vm0, %v711_v2  ;;  %v714_v5 = vld [vmem:[%s8830_s30 + $0x28] sm:$0xff] (!%p6341_p4)  ;;  %719 = vst [vmem:[#allocation2 + $0x18] sm:$0xff] (!%p6341_p4), %v712_v3 }
  0x24   : > { %720 = vst [vmem:[#allocation2 + $0x20] sm:$0xff] (!%p6341_p4), %v713_v4  ;;  %721 = vst.msk [vmem:[#allocation2 + $0x28] sm:$0xff] (!%p6341_p4), %vm717_vm0, %v714_v5 }
  0x2a PF: > { %v736_v6 = vld [vmem:[%s7666_s17] sm:$0xff]  ;;  %v737_v16 = vld [vmem:[%s7666_s17 + $0x8] sm:$0xff]  ;;  %vm1689_vm1 = vcmask 1045504   ;;  %vm1682_vm2 = vcmask 359424   ;;  %vm7551_vm3 = vmmov 0   ;;  %s7552_s26 = smov 31   ;;  %s8834_s0 = scalar_lea.vmem %s8800_s6, %s7668_s18 }
  0x2b   : > { %v740_v7 = vld [vmem:[%s7666_s17 + $0x20] sm:$0xff]  ;;  %v741_v17 = vld [vmem:[%s7666_s17 + $0x28] sm:$0xff]  ;;  %s7553_s29 = smov 84   ;;  %vm2086_vm4 = vcmask 433152   ;;  %vm2167_vm5 = vcmask 613376   ;;  %vm2128_vm6 = vcmask 867328  }
  0x2c   : > { %v744_v8 = vld [vmem:[%s7666_s17 + $0x40] sm:$0xff]  ;;  %v6343_v9 = vcombine.high %v736_v6, %v740_v7  ;;  %v6342_v10 = vcombine.low %v736_v6, %v740_v7  ;;  %v6345_v19 = vcombine.high %v737_v16, %v741_v17  ;;  %v6344_v20 = vcombine.low %v737_v16, %v741_v17  ;;  %v745_v21 = vld [vmem:[%s7666_s17 + $0x48] sm:$0xff]  ;;  %s8831_s4 = sld [smem:[#allocation9_spill]]  ;;  %s7554_s15 = smov 40  }
  0x2d   : > { %v748_v11 = vld [vmem:[%s7666_s17 + $0x60] sm:$0xff]  ;;  %v749_v22 = vld [vmem:[%s7666_s17 + $0x68] sm:$0xff]  ;;  %vm2103_vm7 = vcmask 252928   ;;  %vm2838_vm8 = vcmask 64512   ;;  %vm2931_vm9 = vcmask 326656   ;;  %s8832_s20 = sld [smem:[#allocation7_spill]] }
  0x2e   : > { %v6351_v12 = vcombine.high %v744_v8, %v748_v11  ;;  %v752_v13 = vld [vmem:[%s7666_s17 + $0x80] sm:$0xff]  ;;  %1714 = vmatprep.subr.bf16.mxu0 %v6343_v9  ;;  %v6350_v15 = vcombine.low %v744_v8, %v748_v11  ;;  %v6353_v25 = vcombine.high %v745_v21, %v749_v22  ;;  %v753_v26 = vld [vmem:[%s7666_s17 + $0x88] sm:$0xff]  ;;  %1804 = vmatprep.subr.bf16.mxu1 %v6345_v19  ;;  %s7555_s23 = smov 75   ;;  %s7556_s1 = smov 22   ;;  %vm3580_vm10 = vcmask 179200  }
  0x2f   : > { %v756_v14 = vld [vmem:[%s7666_s17 + $0xa0] sm:$0xff]  ;;  %1715 = vmatpush1.bf16.msra.mxu0 %v6342_v10  ;;  %v757_v27 = vld [vmem:[%s7666_s17 + $0xa8] sm:$0xff]  ;;  %1805 = vmatpush1.bf16.msra.mxu1 %v6344_v20  ;;  %v6352_v29 = vcombine.low %v745_v21, %v749_v22  ;;  %vm3583_vm11 = vcmask 793600   ;;  %p6778_p5 = scmp.ne.s32.totalorder %s7652_s22, 1 }
  0x30   : > { %1716 = vmatprep.subr.bf16.mxu0 %v6351_v12  ;;  %v6359_v18 = vcombine.high %v752_v13, %v756_v14  ;;  %v760_v23 = vld [vmem:[%s7666_s17 + $0xc0] sm:$0xff]  ;;  %v6358_v28 = vcombine.low %v752_v13, %v756_v14  ;;  %1806 = vmatprep.subr.bf16.mxu1 %v6353_v25  ;;  %v6361_v32 = vcombine.high %v753_v26, %v757_v27  ;;  %v761_v34 = vld [vmem:[%s7666_s17 + $0xc8] sm:$0xff]  ;;  %vm5949_vm12 = vcmask (!%p6778_p5), 1041409  }
  0x31   : > { %v764_v24 = vld [vmem:[%s7666_s17 + $0xe0] sm:$0xff]  ;;  %v765_v35 = vld [vmem:[%s7666_s17 + $0xe8] sm:$0xff]  ;;  %v6360_v37 = vcombine.low %v753_v26, %v757_v27  ;;  %vm7559_vm13 = vmmov (!%p6778_p5), 0   ;;  %vm6151_vm14 = vcmask (!%p6778_p5), 9216  }
  0x32   : > { %v6367_v30 = vcombine.high %v760_v23, %v764_v24  ;;  %v768_v31 = vld [vmem:[%s7666_s17 + $0x100] sm:$0xff]  ;;  %v6366_v36 = vcombine.low %v760_v23, %v764_v24  ;;  %v6369_v40 = vcombine.high %v761_v34, %v765_v35  ;;  %v769_v42 = vld [vmem:[%s7666_s17 + $0x108] sm:$0xff]  ;;  %v6368_v45 = vcombine.low %v761_v34, %v765_v35 }
  0x33   : > { %1717 = vmatpush1.bf16.msra.mxu0 %v6350_v15  ;;  %v772_v33 = vld [vmem:[%s7666_s17 + $0x120] sm:$0xff]  ;;  %1807 = vmatpush1.bf16.msra.mxu1 %v6352_v29  ;;  %v773_v43 = vld [vmem:[%s7666_s17 + $0x128] sm:$0xff] }
  0x34   : > { %1718 = vmatprep.subr.bf16.mxu0 %v6359_v18  ;;  %v6375_v38 = vcombine.high %v768_v31, %v772_v33  ;;  %v776_v39 = vld [vmem:[%s7666_s17 + $0x140] sm:$0xff]  ;;  %1808 = vmatprep.subr.bf16.mxu1 %v6361_v32  ;;  %v6374_v44 = vcombine.low %v768_v31, %v772_v33  ;;  %v6377_v49 = vcombine.high %v769_v42, %v773_v43  ;;  %v777_v50 = vld [vmem:[%s7666_s17 + $0x148] sm:$0xff] }
  0x35   : > { %v780_v41 = vld [vmem:[%s7666_s17 + $0x160] sm:$0xff]  ;;  %v781_v51 = vld [vmem:[%s7666_s17 + $0x168] sm:$0xff]  ;;  %v6376_v54 = vcombine.low %v769_v42, %v773_v43 }
  0x36   : > { %v6383_v46 = vcombine.high %v776_v39, %v780_v41  ;;  %v784_v47 = vld [vmem:[%s7666_s17 + $0x180] sm:$0xff]  ;;  %v7759_v52 = vld [vmem:[#allocation2 + $0x8] sm:$0xff]  ;;  %v6382_v53 = vcombine.low %v776_v39, %v780_v41  ;;  %v6385_v57 = vcombine.high %v777_v50, %v781_v51  ;;  %v6384_v62 = vcombine.low %v777_v50, %v781_v51 }
  0x37   : > { %1719 = vmatpush1.bf16.msra.mxu0 %v6358_v28  ;;  %1809 = vmatpush1.bf16.msra.mxu1 %v6360_v37  ;;  %v788_v48 = vld [vmem:[%s7666_s17 + $0x1a0] sm:$0xff]  ;;  %v785_v59 = vld [vmem:[%s7666_s17 + $0x188] sm:$0xff] }
  0x38   : > { %1720 = vmatprep.subr.bf16.mxu0 %v6367_v30  ;;  %1810 = vmatprep.subr.bf16.mxu1 %v6369_v40  ;;  %v6391_v55 = vcombine.high %v784_v47, %v788_v48  ;;  %v792_v56 = vld [vmem:[%s7666_s17 + $0x1c0] sm:$0xff]  ;;  %v789_v60 = vld [vmem:[%s7666_s17 + $0x1a8] sm:$0xff]  ;;  %v6390_v61 = vcombine.low %v784_v47, %v788_v48 }
  0x39   : > { %1746 = vmatprep.mubr.f32.mxu0 %v7759_v52  ;;  %1836 = vmatprep.mubr.f32.mxu1 %v7759_v52  ;;  %v796_v58 = vld [vmem:[%s7666_s17 + $0x1e0] sm:$0xff]  ;;  %v6393_v1 = vcombine.high %v785_v59, %v789_v60  ;;  %v793_v3 = vld [vmem:[%s7666_s17 + $0x1c8] sm:$0xff]  ;;  %v6392_v6 = vcombine.low %v785_v59, %v789_v60 }
  0x3a   : > { %v6399_v63 = vcombine.high %v792_v56, %v796_v58  ;;  %v800_v0 = vld [vmem:[%s7666_s17 + $0x200] sm:$0xff]  ;;  %v797_v4 = vld [vmem:[%s7666_s17 + $0x1e8] sm:$0xff]  ;;  %v6398_v5 = vcombine.low %v792_v56, %v796_v58 }
  0x3b   : > { %1721 = vmatpush1.bf16.msra.mxu0 %v6366_v36  ;;  %1811 = vmatpush1.bf16.msra.mxu1 %v6368_v45  ;;  %v804_v2 = vld [vmem:[%s7666_s17 + $0x220] sm:$0xff]  ;;  %v6401_v9 = vcombine.high %v793_v3, %v797_v4  ;;  %v801_v11 = vld [vmem:[%s7666_s17 + $0x208] sm:$0xff]  ;;  %v6400_v14 = vcombine.low %v793_v3, %v797_v4 }
  0x3c   : > { %1722 = vmatprep.subr.bf16.mxu0 %v6375_v38  ;;  %1812 = vmatprep.subr.bf16.mxu1 %v6377_v49  ;;  %v6407_v7 = vcombine.high %v800_v0, %v804_v2  ;;  %v808_v8 = vld [vmem:[%s7666_s17 + $0x240] sm:$0xff]  ;;  %v805_v12 = vld [vmem:[%s7666_s17 + $0x228] sm:$0xff]  ;;  %v6406_v13 = vcombine.low %v800_v0, %v804_v2 }
  0x3d   : > { %v812_v10 = vld [vmem:[%s7666_s17 + $0x260] sm:$0xff]  ;;  %v6409_v17 = vcombine.high %v801_v11, %v805_v12  ;;  %v809_v19 = vld [vmem:[%s7666_s17 + $0x248] sm:$0xff]  ;;  %v6408_v22 = vcombine.low %v801_v11, %v805_v12  ;;  %v739_v12 = vld [vmem:[%s7666_s17 + $0x18] sm:$0xff] }
  0x3e   : > { %v6415_v15 = vcombine.high %v808_v8, %v812_v10  ;;  %v816_v16 = vld [vmem:[%s7666_s17 + $0x280] sm:$0xff]  ;;  %v813_v20 = vld [vmem:[%s7666_s17 + $0x268] sm:$0xff]  ;;  %v6414_v21 = vcombine.low %v808_v8, %v812_v10 }
  0x3f   : > { %1723 = vmatpush1.bf16.msra.mxu0 %v6374_v44  ;;  %1813 = vmatpush1.bf16.msra.mxu1 %v6376_v54  ;;  %v820_v18 = vld [vmem:[%s7666_s17 + $0x2a0] sm:$0xff]  ;;  %v6417_v25 = vcombine.high %v809_v19, %v813_v20  ;;  %v817_v27 = vld [vmem:[%s7666_s17 + $0x288] sm:$0xff]  ;;  %v6416_v32 = vcombine.low %v809_v19, %v813_v20 }
  0x40   : > { %1724 = vmatprep.subr.bf16.mxu0 %v6383_v46  ;;  %1814 = vmatprep.subr.bf16.mxu1 %v6385_v57  ;;  %v6423_v23 = vcombine.high %v816_v16, %v820_v18  ;;  %v824_v24 = vld [vmem:[%s7666_s17 + $0x2c0] sm:$0xff]  ;;  %v821_v28 = vld [vmem:[%s7666_s17 + $0x2a8] sm:$0xff]  ;;  %v6422_v29 = vcombine.low %v816_v16, %v820_v18 }
  0x41   : > { %v828_v26 = vld [vmem:[%s7666_s17 + $0x2e0] sm:$0xff]  ;;  %v825_v33 = vld [vmem:[%s7666_s17 + $0x2c8] sm:$0xff]  ;;  %v6425_v36 = vcombine.high %v817_v27, %v821_v28  ;;  %v6424_v38 = vcombine.low %v817_v27, %v821_v28 }
  0x42   : > { %v832_v30 = vld [vmem:[%s7666_s17 + $0x300] sm:$0xff]  ;;  %v829_v34 = vld [vmem:[%s7666_s17 + $0x2e8] sm:$0xff]  ;;  %v6431_v35 = vcombine.high %v824_v24, %v828_v26  ;;  %v6430_v37 = vcombine.low %v824_v24, %v828_v26  ;;  %v751_v24 = vld [vmem:[%s7666_s17 + $0x78] sm:$0xff] }
  0x43   : > { %1725 = vmatpush1.bf16.msra.mxu0 %v6382_v53  ;;  %1815 = vmatpush1.bf16.msra.mxu1 %v6384_v62  ;;  %v836_v31 = vld [vmem:[%s7666_s17 + $0x320] sm:$0xff]  ;;  %v6433_v41 = vcombine.high %v825_v33, %v829_v34  ;;  %v833_v43 = vld [vmem:[%s7666_s17 + $0x308] sm:$0xff]  ;;  %v6432_v46 = vcombine.low %v825_v33, %v829_v34  ;;  %v7548_v34 = vmov 0.0  }
  0x44   : > { %1726 = vmatprep.subr.bf16.mxu0 %v6391_v55  ;;  %1816 = vmatprep.subr.bf16.mxu1 %v6393_v1  ;;  %v6439_v39 = vcombine.high %v832_v30, %v836_v31  ;;  %v840_v40 = vld [vmem:[%s7666_s17 + $0x340] sm:$0xff]  ;;  %v837_v44 = vld [vmem:[%s7666_s17 + $0x328] sm:$0xff]  ;;  %v6438_v45 = vcombine.low %v832_v30, %v836_v31  ;;  %v755_v31 = vld [vmem:[%s7666_s17 + $0x98] sm:$0xff] }
  0x45   : > { %v844_v42 = vld [vmem:[%s7666_s17 + $0x360] sm:$0xff]  ;;  %v6441_v49 = vcombine.high %v833_v43, %v837_v44  ;;  %v841_v51 = vld [vmem:[%s7666_s17 + $0x348] sm:$0xff]  ;;  %v6440_v55 = vcombine.low %v833_v43, %v837_v44 }
  0x46   : > { %v6447_v47 = vcombine.high %v840_v40, %v844_v42  ;;  %v848_v48 = vld [vmem:[%s7666_s17 + $0x380] sm:$0xff]  ;;  %v845_v53 = vld [vmem:[%s7666_s17 + $0x368] sm:$0xff]  ;;  %v6446_v54 = vcombine.low %v840_v40, %v844_v42  ;;  %v767_v42 = vld [vmem:[%s7666_s17 + $0xf8] sm:$0xff] }
  0x47   : > { %1727 = vmatpush1.bf16.msra.mxu0 %v6390_v61  ;;  %1817 = vmatpush1.bf16.msra.mxu1 %v6392_v6  ;;  %v852_v50 = vld [vmem:[%s7666_s17 + $0x3a0] sm:$0xff]  ;;  %v6449_v59 = vcombine.high %v841_v51, %v845_v53  ;;  %v849_v60 = vld [vmem:[%s7666_s17 + $0x388] sm:$0xff]  ;;  %v6448_v1 = vcombine.low %v841_v51, %v845_v53  ;;  %v775_v51 = vld [vmem:[%s7666_s17 + $0x138] sm:$0xff] }
  0x48   : > { %1728 = vmatprep.subr.bf16.mxu0 %v6399_v63  ;;  %1818 = vmatprep.subr.bf16.mxu1 %v6401_v9  ;;  %v6455_v56 = vcombine.high %v848_v48, %v852_v50  ;;  %v856_v57 = vld [vmem:[%s7666_s17 + $0x3c0] sm:$0xff]  ;;  %v853_v61 = vld [vmem:[%s7666_s17 + $0x3a8] sm:$0xff]  ;;  %v6454_v62 = vcombine.low %v848_v48, %v852_v50  ;;  %v771_v50 = vld [vmem:[%s7666_s17 + $0x118] sm:$0xff] }
  0x49   : > { %v860_v58 = vld [vmem:[%s7666_s17 + $0x3e0] sm:$0xff]  ;;  %v857_v2 = vld [vmem:[%s7666_s17 + $0x3c8] sm:$0xff]  ;;  %v6456_v9 = vcombine.low %v849_v60, %v853_v61 }
  0x4a   : > { %v864_v63 = vld [vmem:[%s7666_s17 + $0x400] sm:$0xff]  ;;  %v861_v3 = vld [vmem:[%s7666_s17 + $0x3e8] sm:$0xff]  ;;  %v6463_v4 = vcombine.high %v856_v57, %v860_v58  ;;  %v6462_v6 = vcombine.low %v856_v57, %v860_v58 }
  0x4b   : > { %1729 = vmatpush1.bf16.msra.mxu0 %v6398_v5  ;;  %1819 = vmatpush1.bf16.msra.mxu1 %v6400_v14  ;;  %v868_v0 = vld [vmem:[%s7666_s17 + $0x420] sm:$0xff]  ;;  %v6457_v5 = vcombine.high %v849_v60, %v853_v61  ;;  %v6465_v11 = vcombine.high %v857_v2, %v861_v3  ;;  %v6464_v20 = vcombine.low %v857_v2, %v861_v3  ;;  %v865_v26 = vld [vmem:[%s7666_s17 + $0x408] sm:$0xff]  ;;  %v779_v60 = vld [vmem:[%s7666_s17 + $0x158] sm:$0xff] }
  0x4c   : > { %1730 = vmatprep.subr.bf16.mxu0 %v6407_v7  ;;  %1820 = vmatprep.subr.bf16.mxu1 %v6409_v17  ;;  %v872_v7 = vld [vmem:[%s7666_s17 + $0x440] sm:$0xff]  ;;  %v6471_v10 = vcombine.high %v864_v63, %v868_v0  ;;  %v6470_v16 = vcombine.low %v864_v63, %v868_v0  ;;  %v869_v27 = vld [vmem:[%s7666_s17 + $0x428] sm:$0xff]  ;;  %v783_v61 = vld [vmem:[%s7666_s17 + $0x178] sm:$0xff]  ;;  %v6380_v3 = vcombine.low %v771_v50, %v775_v51 }
  0x4d   : > { %v876_v8 = vld [vmem:[%s7666_s17 + $0x460] sm:$0xff]  ;;  %v6472_v44 = vcombine.low %v865_v26, %v869_v27  ;;  %v7838_v48 = vld [vmem:[#allocation2 + $0x28] sm:$0xff]  ;;  %v746_v63 = vld [vmem:[%s7666_s17 + $0x50] sm:$0xff] }
  0x4e   : > { %v7807_v14 = vld [vmem:[#allocation2] sm:$0xff]  ;;  %v6479_v19 = vcombine.high %v872_v7, %v876_v8  ;;  %v750_v0 = vld [vmem:[%s7666_s17 + $0x70] sm:$0xff] }
  0x4f   : > { %1731 = vmatpush1.bf16.msra.mxu0 %v6406_v13  ;;  %1821 = vmatpush1.bf16.msra.mxu1 %v6408_v22  ;;  %v743_v13 = vld [vmem:[%s7666_s17 + $0x38] sm:$0xff]  ;;  %v880_v17 = vld [vmem:[%s7666_s17 + $0x480] sm:$0xff] }
  0x50   : > { %1732 = vmatprep.subr.bf16.mxu0 %v6415_v15  ;;  %1822 = vmatprep.subr.bf16.mxu1 %v6417_v25  ;;  %v7809_v15 = vld [vmem:[#allocation2 + $0x20] sm:$0xff]  ;;  %v6349_v22 = vcombine.high %v739_v12, %v743_v13  ;;  %v6478_v25 = vcombine.low %v872_v7, %v876_v8  ;;  %v6348_v30 = vcombine.low %v739_v12, %v743_v13  ;;  %v754_v8 = vld [vmem:[%s7666_s17 + $0x90] sm:$0xff]  ;;  %v795_v12 = vld [vmem:[%s7666_s17 + $0x1d8] sm:$0xff] }
  0x51   : > { %v884_v18 = vld [vmem:[%s7666_s17 + $0x4a0] sm:$0x33]  ;;  %v799_v13 = vld [vmem:[%s7666_s17 + $0x1f8] sm:$0xff] }
  0x52   : > { %v6487_v28 = vcombine.high %v880_v17, %v884_v18 }
  0x53   : > { %1733 = vmatpush1.bf16.msra.mxu0 %v6414_v21  ;;  %1823 = vmatpush1.bf16.msra.mxu1 %v6416_v32  ;;  %v7813_v21 = vld [vmem:[#allocation2 + $0x18] sm:$0xff] }
  0x54   : > { %1734 = vmatprep.subr.bf16.mxu0 %v6423_v23  ;;  %1824 = vmatprep.subr.bf16.mxu1 %v6425_v36  ;;  %v747_v23 = vld [vmem:[%s7666_s17 + $0x58] sm:$0xff]  ;;  %v877_v36 = vld [vmem:[%s7666_s17 + $0x468] sm:$0xff] }
  0x55   : > { %v759_v32 = vld [vmem:[%s7666_s17 + $0xb8] sm:$0xff]  ;;  %v6357_v33 = vcombine.high %v747_v23, %v751_v24  ;;  %v6356_v40 = vcombine.low %v747_v23, %v751_v24 }
  0x56   : > { %v6365_v43 = vcombine.high %v755_v31, %v759_v32  ;;  %v803_v23 = vld [vmem:[%s7666_s17 + $0x218] sm:$0xff] }
  0x57   : > { %1735 = vmatpush1.bf16.msra.mxu0 %v6422_v29  ;;  %1825 = vmatpush1.bf16.msra.mxu1 %v6424_v38  ;;  %v6486_v29 = vcombine.low %v880_v17, %v884_v18  ;;  %v6473_v38 = vcombine.high %v865_v26, %v869_v27  ;;  %v6354_v17 = vcombine.low %v746_v63, %v750_v0  ;;  %v762_v18 = vld [vmem:[%s7666_s17 + $0xd0] sm:$0xff]  ;;  %v807_v24 = vld [vmem:[%s7666_s17 + $0x238] sm:$0xff] }
  0x58   : > { %1736 = vmatprep.subr.bf16.mxu0 %v6431_v35  ;;  %1826 = vmatprep.subr.bf16.mxu1 %v6433_v41  ;;  %v873_v35 = vld [vmem:[%s7666_s17 + $0x448] sm:$0xff]  ;;  %v763_v41 = vld [vmem:[%s7666_s17 + $0xd8] sm:$0xff]  ;;  %v770_v27 = vld [vmem:[%s7666_s17 + $0x110] sm:$0xff] }
  0x59   : > { %v6373_v53 = vcombine.high %v763_v41, %v767_v42 }
  0x5b   : > { %1737 = vmatpush1.bf16.msra.mxu0 %v6430_v37  ;;  %1827 = vmatpush1.bf16.msra.mxu1 %v6432_v46  ;;  %v1691_v37 = vsel %vm1689_vm1, %v6486_v29, 0  ;;  %v885_v46 = vld [vmem:[%s7666_s17 + $0x4a8] sm:$0x33] }
  0x5c   : > { %1738 = vmatprep.subr.bf16.mxu0 %v6439_v39  ;;  %1828 = vmatprep.subr.bf16.mxu1 %v6441_v49  ;;  %v7830_v39 = vld [vmem:[#allocation2 + $0x10] sm:$0xff]  ;;  %v6364_v49 = vcombine.low %v755_v31, %v759_v32  ;;  %v811_v31 = vld [vmem:[%s7666_s17 + $0x258] sm:$0xff] }
  0x5d   : > { %v815_v32 = vld [vmem:[%s7666_s17 + $0x278] sm:$0xff] }
  0x5f   : > { %1739 = vmatpush1.bf16.msra.mxu0 %v6438_v45  ;;  %1829 = vmatpush1.bf16.msra.mxu1 %v6440_v55  ;;  %v881_v45 = vld [vmem:[%s7666_s17 + $0x488] sm:$0xff]  ;;  %v738_v55 = vld [vmem:[%s7666_s17 + $0x10] sm:$0xff] }
  0x60   : > { %1740 = vmatprep.subr.bf16.mxu0 %v6447_v47  ;;  %1830 = vmatprep.subr.bf16.mxu1 %v6449_v59  ;;  %v6481_v47 = vcombine.high %v873_v35, %v877_v36  ;;  %v6489_v57 = vcombine.high %v881_v45, %v885_v46  ;;  %v6488_v58 = vcombine.low %v881_v45, %v885_v46  ;;  %v790_v45 = vld [vmem:[%s7666_s17 + $0x1b0] sm:$0xff] }
  0x61   : > { %v6372_v59 = vcombine.low %v763_v41, %v767_v42  ;;  %v823_v41 = vld [vmem:[%s7666_s17 + $0x2b8] sm:$0xff]  ;;  %v6421_v42 = vcombine.high %v811_v31, %v815_v32 }
  0x63   : > { %1741 = vmatpush1.bf16.msra.mxu0 %v6446_v54  ;;  %1831 = vmatpush1.bf16.msra.mxu1 %v6448_v1  ;;  %v6480_v54 = vcombine.low %v873_v35, %v877_v36  ;;  %v1697_v1 = vsel %vm1689_vm1, %v6488_v58, 0  ;;  %v778_v36 = vld [vmem:[%s7666_s17 + $0x150] sm:$0xff]  ;;  %v835_v58 = vld [vmem:[%s7666_s17 + $0x318] sm:$0xff] }
  0x64   : > { %1742 = vmatprep.subr.bf16.mxu0 %v6455_v56  ;;  %1832 = vmatprep.subr.bf16.mxu1 %v6457_v5  ;;  %v742_v56 = vld [vmem:[%s7666_s17 + $0x30] sm:$0xff]  ;;  %v791_v5 = vld [vmem:[%s7666_s17 + $0x1b8] sm:$0xff] }
  0x65   : > { %v6347_v2 = vcombine.high %v738_v55, %v742_v56  ;;  %v6346_v7 = vcombine.low %v738_v55, %v742_v56  ;;  %v798_v55 = vld [vmem:[%s7666_s17 + $0x1f0] sm:$0xff] }
  0x67   : > { %1743 = vmatpush1.bf16.msra.mxu0 %v6454_v62  ;;  %1833 = vmatpush1.bf16.msra.mxu1 %v6456_v9  ;;  %v6381_v62 = vcombine.high %v771_v50, %v775_v51  ;;  %v758_v9 = vld [vmem:[%s7666_s17 + $0xb0] sm:$0xff]  ;;  %v831_v50 = vld [vmem:[%s7666_s17 + $0x2f8] sm:$0xff] }
  0x68   : > { %1744 = vmatprep.subr.bf16.mxu0 %v6463_v4  ;;  %1834 = vmatprep.subr.bf16.mxu1 %v6465_v11  ;;  %v787_v4 = vld [vmem:[%s7666_s17 + $0x198] sm:$0xff]  ;;  %v6388_v11 = vcombine.low %v779_v60, %v783_v61  ;;  %v6362_v26 = vcombine.low %v754_v8, %v758_v9 }
  0x6b   : > { %1745 = vmatpush1.bf16.msra.mxu0 %v6462_v6  ;;  %1835 = vmatpush1.bf16.msra.mxu1 %v6464_v20  ;;  %v6389_v6 = vcombine.high %v779_v60, %v783_v61  ;;  %v6363_v20 = vcombine.high %v754_v8, %v758_v9 }
  0x6c   : > { %1759 = vmatprep.subr.bf16.mxu0 %v6471_v10  ;;  %1984 = vmatprep.subr.bf16.mxu1 %v6349_v22  ;;  %v6355_v10 = vcombine.high %v746_v63, %v750_v0  ;;  %v6396_v22 = vcombine.low %v787_v4, %v791_v5  ;;  %v806_v63 = vld [vmem:[%s7666_s17 + $0x230] sm:$0xff] }
  0x6e   : > { %1747 = vmatmul.mubr.f32.vlgmr.msra.gmra.mrb[0].mxu0 %v7807_v14  ;;  %1837 = vmatmul.mubr.f32.vlgmr.msra.gmra.mrb[0].mxu1 %v7807_v14 }
  0x6f   : > { %1760 = vmatpush1.bf16.msra.mxu0 %v6470_v16  ;;  %1752 = vmatprep.mubr.f32.mxu0 %v7809_v15  ;;  %v6397_v16 = vcombine.high %v787_v4, %v791_v5 }
  0x70   : > { %1761 = vmatprep.subr.bf16.mxu0 %v6479_v19  ;;  %1842 = vmatprep.mubr.f32.mxu1 %v7809_v15  ;;  %v766_v19 = vld [vmem:[%s7666_s17 + $0xf0] sm:$0xff] }
  0x71   : > { %1985 = vmatpush1.bf16.msra.mxu1 %v6348_v30  ;;  %v6371_v29 = vcombine.high %v762_v18, %v766_v19  ;;  %v6404_v30 = vcombine.low %v795_v12, %v799_v13  ;;  %v6370_v35 = vcombine.low %v762_v18, %v766_v19 }
  0x72   : > { %1753 = vmatmul.mubr.f32.gmra.mrb[2].mxu0 %v7813_v21  ;;  %1986 = vmatprep.subr.bf16.mxu1 %v6357_v33  ;;  %v6413_v33 = vcombine.high %v803_v23, %v807_v24 }
  0x73   : > { %1762 = vmatpush1.bf16.msra.mxu0 %v6478_v25  ;;  %1791 = vmatprep.mubr.f32.mxu0 %v7548_v34  ;;  %v6405_v25 = vcombine.high %v795_v12, %v799_v13 }
  0x74   : > { %6494 = vmatprep.subr.msk.bf16.mxu0 %vm1689_vm1, %v6487_v28  ;;  %1843 = vmatmul.mubr.f32.gmra.mrb[2].mxu1 %v7813_v21  ;;  %v774_v28 = vld [vmem:[%s7666_s17 + $0x130] sm:$0xff] }
  0x75   : > { %1987 = vmatpush1.bf16.msra.mxu1 %v6356_v40  ;;  %2016 = vmatprep.mubr.f32.mxu1 %v7759_v52  ;;  %v819_v40 = vld [vmem:[%s7666_s17 + $0x298] sm:$0xff] }
  0x76   : > { %1988 = vmatprep.subr.bf16.mxu1 %v6365_v43  ;;  %v6378_v43 = vcombine.low %v770_v27, %v774_v28  ;;  %v6429_v51 = vcombine.high %v819_v40, %v823_v41 }
  0x77   : > { %1764 = vmatpush1.bf16.msra.mxu0 %v1691_v37  ;;  %v782_v37 = vld [vmem:[%s7666_s17 + $0x170] sm:$0xff] }
  0x78   : > { %1849 = vmatprep.subr.bf16.mxu0 %v6473_v38  ;;  %v6379_v38 = vcombine.high %v770_v27, %v774_v28  ;;  %v6387_v46 = vcombine.high %v778_v36, %v782_v37 }
  0x79   : > { %1989 = vmatpush1.bf16.msra.mxu1 %v6364_v49  ;;  %v827_v49 = vld [vmem:[%s7666_s17 + $0x2d8] sm:$0xff] }
  0x7a   : > { %6495 = vmatmul.mubr.msk.f32.vlgmr.msra.gmra.mrb[0].mxu0 %vm1682_vm2, %v7830_v39  ;;  %1990 = vmatprep.subr.bf16.mxu1 %v6373_v53  ;;  %v6386_v53 = vcombine.low %v778_v36, %v782_v37  ;;  %v6437_v60 = vcombine.high %v827_v49, %v831_v50 }
  0x7b   : > { %1850 = vmatpush1.bf16.msra.mxu0 %v6472_v44  ;;  %1797 = vmatprep.mubr.f32.mxu0 %v7548_v34  ;;  %v786_v44 = vld [vmem:[%s7666_s17 + $0x190] sm:$0xff] }
  0x7c   : > { %1851 = vmatprep.subr.bf16.mxu0 %v6481_v47  ;;  %v6420_v47 = vcombine.low %v811_v31, %v815_v32  ;;  %v6395_v56 = vcombine.high %v786_v44, %v790_v45  ;;  %v6394_v61 = vcombine.low %v786_v44, %v790_v45  ;;  %v850_v45 = vld [vmem:[%s7666_s17 + $0x390] sm:$0xff] }
  0x7d   : > { %1991 = vmatpush1.bf16.msra.mxu1 %v6372_v59  ;;  %v839_v59 = vld [vmem:[%s7666_s17 + $0x338] sm:$0xff] }
  0x7e   : > { %6496 = vmatmul.mubr.msk.f32.gmra.mrb[2].mxu0 %vm1682_vm2, %v7838_v48  ;;  %1992 = vmatprep.subr.bf16.mxu1 %v6381_v62  ;;  %v802_v62 = vld [vmem:[%s7666_s17 + $0x210] sm:$0xff]  ;;  %v6445_v4 = vcombine.high %v835_v58, %v839_v59  ;;  %v6444_v9 = vcombine.low %v835_v58, %v839_v59 }
  0x7f   : > { %1852 = vmatpush1.bf16.msra.mxu0 %v6480_v54  ;;  %1881 = vmatprep.mubr.f32.mxu0 %v7548_v34  ;;  %v794_v54 = vld [vmem:[%s7666_s17 + $0x1d0] sm:$0xff]  ;;  %v6411_v8 = vcombine.high %v802_v62, %v806_v63  ;;  %v6410_v13 = vcombine.low %v802_v62, %v806_v63 }
  0x80   : > { %6497 = vmatprep.subr.msk.bf16.mxu0 %vm1689_vm1, %v6489_v57  ;;  %v6428_v57 = vcombine.low %v819_v40, %v823_v41  ;;  %v6403_v0 = vcombine.high %v794_v54, %v798_v55  ;;  %v6402_v5 = vcombine.low %v794_v54, %v798_v55  ;;  %v842_v40 = vld [vmem:[%s7666_s17 + $0x350] sm:$0xff] }
  0x81   : > { %1993 = vmatpush1.bf16.msra.mxu1 %v6380_v3  ;;  %v847_v3 = vld [vmem:[%s7666_s17 + $0x378] sm:$0xff]  ;;  %v846_v41 = vld [vmem:[%s7666_s17 + $0x370] sm:$0xff] }
  0x82   : > { %1994 = vmatprep.subr.bf16.mxu1 %v6389_v6  ;;  %v810_v6 = vld [vmem:[%s7666_s17 + $0x250] sm:$0xff] }
  0x83   : > { %1854 = vmatpush1.bf16.msra.mxu0 %v1697_v1  ;;  %v6436_v1 = vcombine.low %v827_v49, %v831_v50  ;;  %v6450_v49 = vcombine.low %v842_v40, %v846_v41  ;;  %v858_v50 = vld [vmem:[%s7666_s17 + $0x3d0] sm:$0xff] }
  0x84   : > { %1894 = vmatprep.subr.bf16.mxu0 %v6347_v2  ;;  %v843_v2 = vld [vmem:[%s7666_s17 + $0x358] sm:$0xff]  ;;  %v866_v55 = vld [vmem:[%s7666_s17 + $0x410] sm:$0xff] }
  0x85   : > { %1995 = vmatpush1.bf16.msra.mxu1 %v6388_v11  ;;  %v855_v11 = vld [vmem:[%s7666_s17 + $0x3b8] sm:$0xff]  ;;  %v6453_v12 = vcombine.high %v843_v2, %v847_v3  ;;  %v6452_v19 = vcombine.low %v843_v2, %v847_v3  ;;  %v874_v58 = vld [vmem:[%s7666_s17 + $0x450] sm:$0xff]  ;;  %v7484_v2 = vld [vmem:[#allocation2 + $0x20] sm:$0xff] }
  0x86   : > { %6498 = vmatmul.mubr.msk.f32.vlgmr.msra.gmra.mrb[4].mxu0 %vm1682_vm2, %v7830_v39  ;;  %1996 = vmatprep.subr.bf16.mxu1 %v6397_v16  ;;  %v818_v16 = vld [vmem:[%s7666_s17 + $0x290] sm:$0xff] }
  0x87   : > { %1895 = vmatpush1.bf16.msra.mxu0 %v6346_v7  ;;  %1887 = vmatprep.mubr.f32.mxu0 %v7548_v34  ;;  %v814_v7 = vld [vmem:[%s7666_s17 + $0x270] sm:$0xff] }
  0x88   : > { %1896 = vmatprep.subr.bf16.mxu0 %v6355_v10  ;;  %v851_v10 = vld [vmem:[%s7666_s17 + $0x398] sm:$0xff]  ;;  %v6419_v18 = vcombine.high %v810_v6, %v814_v7  ;;  %v878_v59 = vld [vmem:[%s7666_s17 + $0x470] sm:$0xff] }
  0x89   : > { %1997 = vmatpush1.bf16.msra.mxu1 %v6396_v22  ;;  %v863_v22 = vld [vmem:[%s7666_s17 + $0x3f8] sm:$0xff]  ;;  %v6460_v28 = vcombine.low %v851_v10, %v855_v11  ;;  %v882_v62 = vld [vmem:[%s7666_s17 + $0x490] sm:$0xff] }
  0x8a   : > { %6499 = vmatmul.mubr.msk.f32.gmra.mrb[6].mxu0 %vm1682_vm2, %v7838_v48  ;;  %1998 = vmatprep.subr.bf16.mxu1 %v6405_v25  ;;  %v826_v25 = vld [vmem:[%s7666_s17 + $0x2d0] sm:$0xff] }
  0x8b   : > { %1897 = vmatpush1.bf16.msra.mxu0 %v6354_v17  ;;  %1926 = vmatprep.mubr.f32.mxu0 %v7759_v52  ;;  %v6412_v52 = vcombine.low %v803_v23, %v807_v24  ;;  %v822_v17 = vld [vmem:[%s7666_s17 + $0x2b0] sm:$0xff]  ;;  %v6461_v23 = vcombine.high %v851_v10, %v855_v11  ;;  %v6418_v24 = vcombine.low %v810_v6, %v814_v7  ;;  %v875_v6 = vld [vmem:[%s7666_s17 + $0x458] sm:$0xff] }
  0x8c   : > { %1898 = vmatprep.subr.bf16.mxu0 %v6363_v20  ;;  %v859_v20 = vld [vmem:[%s7666_s17 + $0x3d8] sm:$0xff]  ;;  %v6427_v27 = vcombine.high %v818_v16, %v822_v17  ;;  %v6426_v32 = vcombine.low %v818_v16, %v822_v17  ;;  %v886_v63 = vld [vmem:[%s7666_s17 + $0x4b0] sm:$0x33]  ;;  %v890_v16 = vlaneseq }
  0x8d   : > { %1999 = vmatpush1.bf16.msra.mxu1 %v6404_v30  ;;  %v871_v30 = vld [vmem:[%s7666_s17 + $0x438] sm:$0xff]  ;;  %v6469_v31 = vcombine.high %v859_v20, %v863_v22  ;;  %v6468_v37 = vcombine.low %v859_v20, %v863_v22  ;;  %v6491_v3 = vcombine.high %v882_v62, %v886_v63  ;;  %v7949_v22 = vld [vmem:[%s7661_s28] sm:$0xff]  ;;  %s7549_s28 = smov 53  }
  0x8e   : > { %2000 = vmatprep.subr.bf16.mxu1 %v6413_v33  ;;  %v834_v33 = vld [vmem:[%s7666_s17 + $0x310] sm:$0xff]  ;;  %v879_v7 = vld [vmem:[%s7666_s17 + $0x478] sm:$0xff]  ;;  %v7945_v17 = vshrl.u32 %v890_v16, 7 }
  0x8f   : > { %1899 = vmatpush1.bf16.msra.mxu0 %v6362_v26  ;;  %v830_v26 = vld [vmem:[%s7666_s17 + $0x2f0] sm:$0xff]  ;;  %v883_v10 = vld [vmem:[%s7666_s17 + $0x498] sm:$0xff] }
  0x90   : > { %1900 = vmatprep.subr.bf16.mxu0 %v6371_v29  ;;  %v867_v29 = vld [vmem:[%s7666_s17 + $0x418] sm:$0xff]  ;;  %v6435_v36 = vcombine.high %v826_v25, %v830_v26 }
  0x91   : > { %2001 = vmatpush1.bf16.msra.mxu1 %v6412_v52  ;;  %v6434_v52 = vcombine.low %v826_v25, %v830_v26  ;;  %v887_v11 = vld [vmem:[%s7666_s17 + $0x4b8] sm:$0x33] }
  0x92   : > { %2002 = vmatprep.subr.bf16.mxu1 %v6421_v42 }
  0x93   : > { %1901 = vmatpush1.bf16.msra.mxu0 %v6370_v35  ;;  %v838_v35 = vld [vmem:[%s7666_s17 + $0x330] sm:$0xff] }
  0x94   : > { %1902 = vmatprep.subr.bf16.mxu0 %v6379_v38  ;;  %v6477_v38 = vcombine.high %v867_v29, %v871_v30  ;;  %v6443_v42 = vcombine.high %v834_v33, %v838_v35  ;;  %v6442_v44 = vcombine.low %v834_v33, %v838_v35 }
  0x95   : > { %2003 = vmatpush1.bf16.msra.mxu1 %v6420_v47  ;;  %v6451_v47 = vcombine.high %v842_v40, %v846_v41 }
  0x96   : > { %2004 = vmatprep.subr.bf16.mxu1 %v6429_v51  ;;  %v862_v51 = vld [vmem:[%s7666_s17 + $0x3f0] sm:$0xff] }
  0x97   : > { %1903 = vmatpush1.bf16.msra.mxu0 %v6378_v43  ;;  %v6476_v43 = vcombine.low %v867_v29, %v871_v30 }
  0x98   : > { %1904 = vmatprep.subr.bf16.mxu0 %v6387_v46  ;;  %v854_v46 = vld [vmem:[%s7666_s17 + $0x3b0] sm:$0xff] }
  0x99   : > { %2005 = vmatpush1.bf16.msra.mxu1 %v6428_v57  ;;  %v6458_v54 = vcombine.low %v850_v45, %v854_v46 }
  0x9a   : > { %2006 = vmatprep.subr.bf16.mxu1 %v6437_v60 }
  0x9b   : > { %1905 = vmatpush1.bf16.msra.mxu0 %v6386_v53  ;;  %v6459_v53 = vcombine.high %v850_v45, %v854_v46 }
  0x9c   : > { %1906 = vmatprep.subr.bf16.mxu0 %v6395_v56  ;;  %v6466_v56 = vcombine.low %v858_v50, %v862_v51 }
  0x9d   : > { %2007 = vmatpush1.bf16.msra.mxu1 %v6436_v1  ;;  %v6482_v1 = vcombine.low %v874_v58, %v878_v59 }
  0x9e   : > { %2008 = vmatprep.subr.bf16.mxu1 %v6445_v4  ;;  %v6490_v4 = vcombine.low %v882_v62, %v886_v63 }
  0x9f   : > { %1907 = vmatpush1.bf16.msra.mxu0 %v6394_v61  ;;  %v6483_v61 = vcombine.high %v874_v58, %v878_v59 }
  0xa0   : > { %1908 = vmatprep.subr.bf16.mxu0 %v6403_v0  ;;  %v7483_v0 = vld [vmem:[#allocation2] sm:$0xff] }
  0xa1   : > { %2009 = vmatpush1.bf16.msra.mxu1 %v6444_v9  ;;  %v6484_v9 = vcombine.low %v875_v6, %v879_v7 }
  0xa2   : > { %2010 = vmatprep.subr.bf16.mxu1 %v6453_v12  ;;  %v6492_v12 = vcombine.low %v883_v10, %v887_v11 }
  0xa3   : > { %1909 = vmatpush1.bf16.msra.mxu0 %v6402_v5  ;;  %v1703_v5 = vsel %vm1689_vm1, %v6490_v4, 0 }
  0xa4   : > { %1910 = vmatprep.subr.bf16.mxu0 %v6411_v8  ;;  %v6485_v8 = vcombine.high %v875_v6, %v879_v7 }
  0xa5   : > { %2011 = vmatpush1.bf16.msra.mxu1 %v6452_v19  ;;  %v904_v19 = vsub.s32 3, %v7945_v17 }
  0xa6   : > { %2012 = vmatprep.subr.bf16.mxu1 %v6461_v23 }
  0xa7   : > { %1911 = vmatpush1.bf16.msra.mxu0 %v6410_v13  ;;  %v1709_v13 = vsel %vm1689_vm1, %v6492_v12, 0  ;;  %v905_v23 = vrot.slane %v7949_v22, %v904_v19 }
  0xa8   : > { %1912 = vmatprep.subr.bf16.mxu0 %v6419_v18 }
  0xa9   : > { %2013 = vmatpush1.bf16.msra.mxu1 %v6460_v28 }
  0xaa   : > { %2014 = vmatprep.subr.bf16.mxu1 %v6469_v31 }
  0xab   : > { %1913 = vmatpush1.bf16.msra.mxu0 %v6418_v24 }
  0xac   : > { %1914 = vmatprep.subr.bf16.mxu0 %v6427_v27 }
  0xad   : > { %2015 = vmatpush1.bf16.msra.mxu1 %v6468_v37 }
  0xae   : > { %2029 = vmatprep.subr.bf16.mxu1 %v6477_v38 }
  0xaf   : > { %1915 = vmatpush1.bf16.msra.mxu0 %v6426_v32 }
  0xb0   : > { %1916 = vmatprep.subr.bf16.mxu0 %v6435_v36  ;;  %2017 = vmatmul.mubr.f32.vlgmr.msra.gmra.mrb[4].mxu1 %v7807_v14  ;;  %v6467_v14 = vcombine.high %v858_v50, %v862_v51  ;;  %v7981_v50 = vsub.s32 1, %v7945_v17 }
  0xb1   : > { %2030 = vmatpush1.bf16.msra.mxu1 %v6476_v43  ;;  %2022 = vmatprep.mubr.f32.mxu1 %v7809_v15  ;;  %v870_v15 = vld [vmem:[%s7666_s17 + $0x430] sm:$0xff]  ;;  %s7550_s17 = smov 106   ;;  %v908_v43 = vsub.s32 4, %v7945_v17 }
  0xb2   : > { %v6475_v57 = vcombine.high %v866_v55, %v870_v15  ;;  %v6474_v60 = vcombine.low %v866_v55, %v870_v15  ;;  %2031 = vmatprep.subr.bf16.mxu1 %v6485_v8  ;;  %v897_v55 = vrot.slane %v7949_v22, %v7981_v50  ;;  %v7997_v15 = vsub.s32 0, %v7945_v17 }
  0xb3   : > { %1917 = vmatpush1.bf16.msra.mxu0 %v6434_v52  ;;  %v912_v8 = vsub.s32 5, %v7945_v17 }
  0xb4   : > { %1918 = vmatprep.subr.bf16.mxu0 %v6443_v42  ;;  %2023 = vmatmul.mubr.f32.gmra.mrb[6].mxu1 %v7813_v21 }
  0xb5   : > { %2061 = vmatprep.mubr.f32.mxu1 %v7548_v34  ;;  %2032 = vmatpush1.bf16.msra.mxu1 %v6484_v9  ;;  %v913_v12 = vrot.slane %v7949_v22, %v912_v8 }
  0xb7   : > { %1919 = vmatpush1.bf16.msra.mxu0 %v6442_v44  ;;  %v909_v44 = vrot.slane %v7949_v22, %v908_v43 }
  0xb8   : > { %1920 = vmatprep.subr.bf16.mxu0 %v6451_v47 }
  0xbb   : > { %1921 = vmatpush1.bf16.msra.mxu0 %v6450_v49 }
  0xbc   : > { %1922 = vmatprep.subr.bf16.mxu0 %v6459_v53 }
  0xbf   : > { %1923 = vmatpush1.bf16.msra.mxu0 %v6458_v54 }
  0xc0   : > { %1924 = vmatprep.subr.bf16.mxu0 %v6467_v14 }
  0xc3   : > { %1925 = vmatpush1.bf16.msra.mxu0 %v6466_v56 }
  0xc4   : > { %1939 = vmatprep.subr.bf16.mxu0 %v6475_v57  ;;  %v893_v57 = vrot.slane %v7949_v22, %v7997_v15 }
  0xc6   : > { %1927 = vmatmul.mubr.f32.vlgmr.msra.gmra.mrb[8].mxu0 %v7483_v0 }
  0xc7   : > { %1940 = vmatpush1.bf16.msra.mxu0 %v6474_v60  ;;  %1932 = vmatprep.mubr.f32.mxu0 %v7484_v2 }
  0xc8   : > { %1941 = vmatprep.subr.bf16.mxu0 %v6483_v61 }
  0xca   : > { %1933 = vmatmul.mubr.f32.gmra.mrb[10].mxu0 %v7813_v21  ;;  %v6493_v21 = vcombine.high %v883_v10, %v887_v11 }
  0xcb   : > { %1942 = vmatpush1.bf16.msra.mxu0 %v6482_v1  ;;  %1971 = vmatprep.mubr.f32.mxu0 %v7548_v34 }
  0xcc   : > { %6500 = vmatprep.subr.msk.bf16.mxu0 %vm1689_vm1, %v6491_v3  ;;  %6503 = vmatprep.subr.msk.bf16.mxu1 %vm1689_vm1, %v6493_v21  ;;  %v920_v21 = vsub.s32 7, %v7945_v17 }
  0xcd   : > { %2034 = vmatpush1.bf16.msra.mxu1 %v1709_v13 }
  0xce   : > { %6945 = vmatprep.subr.mxu1 %v7548_v34  ;;  %v921_v16 = vrot.slane %v7949_v22, %v920_v21 }
  0xcf   : > { %1944 = vmatpush1.bf16.msra.mxu0 %v1703_v5 }
  0xd0   : > { %6930 = vmatprep.subr.mxu0 %v7548_v34  ;;  %6504 = vmatmul.mubr.msk.f32.vlgmr.msra.gmra.mrb[4].mxu1 %vm1682_vm2, %v7830_v39 }
  0xd1   : > { %2067 = vmatprep.mubr.f32.mxu1 %v7548_v34 }
  0xd2   : > { %6501 = vmatmul.mubr.msk.f32.vlgmr.msra.gmra.mrb[8].mxu0 %vm1682_vm2, %v7830_v39 }
  0xd3   : > { %1977 = vmatprep.mubr.f32.mxu0 %v7548_v34 }
  0xd4   : > { %6505 = vmatmul.mubr.msk.f32.gmra.mrb[6].mxu1 %vm1682_vm2, %v7838_v48 }
  0xd5   : > { %6947 = vmatprep.mubr.msk.f32.mxu1 %vm7551_vm3, %v7548_v34 }
  0xd6   : > { %6502 = vmatmul.mubr.msk.f32.gmra.mrb[10].mxu0 %vm1682_vm2, %v7838_v48  ;;  %v7955_v48 = vsub.s32 2, %v7945_v17 }
  0xd7   : > { %6932 = vmatprep.mubr.msk.f32.mxu0 %vm7551_vm3, %v7548_v34 }
  0xd8   : > { %v901_v30 = vrot.slane %v7949_v22, %v7955_v48 }
 0x141   : > { %v1838_v18 = vpop.f32.mrb[0].mxu1 }
 0x142   : > { %v1840_v20 = vpop.f32.mrb[1].mxu1  ;;  %v1839_v31 = vadd.f32 %v1838_v18, %v901_v30 }
 0x143   : > { %v1841_v32 = vadd.f32 %v1840_v20, %v905_v23 }
 0x147   : > { %v1844_v24 = vpop.f32.mrb[2].mxu1 }
 0x148   : > { %v1846_v39 = vpop.f32.mrb[3].mxu1  ;;  %v1845_v37 = vadd.f32 %v1844_v24, %v901_v30 }
 0x149   : > { %v1847_v26 = vadd.f32 %v1846_v39, %v905_v23  ;;  %v916_v39 = vsub.s32 6, %v7945_v17 }
 0x14d   : > { %v1793_v25 = vpop.f32.mrb[0].mxu0 }
 0x14e   : > { %v1795_v27 = vpop.f32.mrb[1].mxu0  ;;  %v7028_v58 = vadd.f32 %v1793_v25, %v893_v57 }
 0x14f   : > { %v7029_v56 = vadd.f32 %v1795_v27, %v897_v55 }
 0x151   : > { %v1799_v28 = vpop.f32.mrb[2].mxu0 }
 0x152   : > { %v1801_v29 = vpop.f32.mrb[3].mxu0  ;;  %v7030_v59 = vadd.f32 %v1799_v28, %v893_v57 }
 0x153   : > { %v7031_v0 = vadd.f32 %v1801_v29, %v897_v55 }
 0x159   : > { %v1883_v33 = vpop.f32.mrb[4].mxu0 }
 0x15a   : > { %v1884_v35 = vadd.f32 %v1883_v33, %v1839_v31  ;;  %v1885_v36 = vpop.f32.mrb[5].mxu0 }
 0x15b   : > { %v1886_v38 = vadd.f32 %v1885_v36, %v1841_v32 }
 0x15c   : > { %2108 = vrot.lane.b32.xlu0 %v1884_v35, %s7549_s28 }
 0x15d   : > { %2120 = vrot.lane.b32.xlu1 %v1886_v38, %s7550_s17  ;;  %v1889_v52 = vpop.f32.mrb[6].mxu0 }
 0x15e   : > { %v7961_v40 = vadd.f32 %v1889_v52, %v1845_v37  ;;  %v1891_v41 = vpop.f32.mrb[7].mxu0 }
 0x15f   : > { %v1892_v42 = vadd.f32 %v1891_v41, %v1847_v26  ;;  %v917_v26 = vrot.slane %v7949_v22, %v916_v39 }
 0x160   : > { %2110 = vrot.lane.b32.xlu0 %v1886_v38, %s7549_s28 }
 0x164   : > { %2112 = vrot.lane.b32.xlu0 %v7961_v40, %s7549_s28 }
 0x1a3   : > { %v7987_v54 = vpop.f32.mrb[4].mxu1 }
 0x1a4   : > { %v2065_v14 = vpop.f32.mrb[5].mxu1  ;;  %v7044_v28 = vadd.f32 %v7987_v54, %v917_v26 }
 0x1a5   : > { %v1973_v45 = vpop.f32.mrb[8].mxu0  ;;  %v7045_v23 = vadd.f32 %v2065_v14, %v921_v16 }
 0x1a6   : > { %v7972_v46 = vadd.f32 %v1973_v45, %v909_v44  ;;  %v7974_v47 = vpop.f32.mrb[9].mxu0 }
 0x1a7   : > { %v2069_v60 = vpop.f32.mrb[6].mxu1  ;;  %v8031_v18 = vadd.f32 %v7974_v47, %v913_v12 }
 0x1a8   : > { %2122 = vrot.lane.b32.xlu1 %v7972_v46, %s7550_s17  ;;  %2131 = vrot.lane.b32.xlu0 %v7972_v46, %s7552_s26  ;;  %v7046_v27 = vadd.f32 %v2069_v60, %v917_v26  ;;  %v2071_v33 = vpop.f32.mrb[7].mxu1 }
 0x1a9   : > { %v1979_v49 = vpop.f32.mrb[10].mxu0 }
 0x1aa   : > { %v7983_v51 = vadd.f32 %v1979_v49, %v909_v44  ;;  %v7985_v53 = vpop.f32.mrb[11].mxu0 }
 0x1ab   : > { %v8046_v25 = vadd.f32 %v7985_v53, %v913_v12 }
 0x1ac   : > { %2114 = vrot.lane.b32.xlu1 %v1892_v42, %s7549_s28  ;;  %2126 = vrot.lane.b32.xlu0 %v7983_v51, %s7550_s17 }
 0x1b0   : > { %2124 = vrot.lane.b32.xlu1 %v1892_v42, %s7550_s17  ;;  %2165 = vrot.lane.b32.xlu0 %v1884_v35, %s7553_s29 }
 0x1b4   : > { %2133 = vrot.lane.b32.xlu1 %v7983_v51, %s7552_s26  ;;  %2080 = vrot.lane.b32.xlu0 %v7029_v56, %s7549_s28 }
 0x1b8   : > { %2242 = vrot.lane.b32.xlu1 %v7961_v40, %s7553_s29  ;;  %2089 = vrot.lane.b32.xlu0 %v7029_v56, %s7550_s17 }
 0x1bc   : > { %2078 = vrot.lane.b32.xlu1 %v7028_v58, %s7549_s28 }
 0x1c0   : > { %2082 = vrot.lane.b32.xlu1 %v7030_v59, %s7549_s28 }
 0x1ce   : > { %v2109_v61 = vpop.permute.xlu0 %2108 }
 0x1cf   : > { %v2121_v1 = vpop.permute.xlu1 %2120 }
 0x1d2   : > { %v2111_v62 = vpop.permute.xlu0 %2110 }
 0x1d3   : > { %v2116_v63 = vsel %vm2086_vm4, %v2109_v61, %v2111_v62  ;;  %v6523_v62 = vld [vmem:[%s8831_s4 + $0x1] ss:$0 sm:$0xff] }
 0x1d4   : > { %2318 = vrot.lane.b32.xlu0 %v2116_v63, %s7553_s29 }
 0x1d6   : > { %v2113_v2 = vpop.permute.xlu0 %2112 }
 0x1d8   : > { %2084 = vrot.lane.b32.xlu0 %v7031_v0, %s7549_s28 }
 0x21a   : > { %v2123_v3 = vpop.permute.xlu1 %2122  ;;  %v2132_v4 = vpop.permute.xlu0 %2131 }
 0x21b   : > { %2622 = vrot.lane.b32.xlu0 %v2132_v4, %s7553_s29  ;;  %v2129_v11 = vsel %vm2128_vm6, %v2121_v1, %v2123_v3  ;;  %v6524_v4 = vld [vmem:[%s8831_s4 + $0x2] ss:$0 sm:$0xff] }
 0x21e   : > { %v2115_v5 = vpop.permute.xlu1 %2114  ;;  %v2127_v6 = vpop.permute.xlu0 %2126 }
 0x21f   : > { %2097 = vrot.lane.b32.xlu0 %v1884_v35, %s7552_s26  ;;  %v2117_v7 = vsel %vm2086_vm4, %v2113_v2, %v2115_v5  ;;  %v7047_v35 = vadd.f32 %v2071_v33, %v921_v16  ;;  %v6526_v16 = vld [vmem:[%s8831_s4 + $0x4] ss:$0 sm:$0xff] }
 0x220   : > { %2394 = vrot.lane.b32.xlu1 %v2117_v7, %s7553_s29 }
 0x222   : > { %v2125_v9 = vpop.permute.xlu1 %2124  ;;  %v2166_v10 = vpop.permute.xlu0 %2165 }
 0x223   : > { %6931 = vmatpush3.xpose.msk.msra.mxu0 %vm2167_vm5, %v2166_v10  ;;  %2091 = vrot.lane.b32.xlu0 %v7031_v0, %s7550_s17  ;;  %v2130_v24 = vsel %vm2128_vm6, %v2125_v9, %v2127_v6  ;;  %v6525_v10 = vld [vmem:[%s8831_s4 + $0x3] ss:$0 sm:$0xff] }
 0x224   : > { %2470 = vrot.lane.b32.xlu1 %v2129_v11, %s7553_s29  ;;  %6935 = vmatprep.subr.mxu0 %v7548_v34 }
 0x226   : > { %v2134_v13 = vpop.permute.xlu1 %2133  ;;  %6933 = vmatmul.mubr.msk.f32.vlgmr.msra.gmra.mrb[12].mxu0 %vm2167_vm5, %v7028_v58  ;;  %v2081_v29 = vpop.permute.xlu0 %2080 }
 0x227   : > { %2099 = vrot.lane.b32.xlu0 %v7031_v0, %s7552_s26  ;;  %6937 = vmatprep.mubr.msk.f32.mxu0 %vm7551_vm3, %v7548_v34 }
 0x228   : > { %2095 = vrot.lane.b32.xlu1 %v7029_v56, %s7552_s26  ;;  %v6522_v56 = vld [vmem:[%s8831_s4] ss:$0 sm:$0xff] }
 0x22a   : > { %v2243_v20 = vpop.permute.xlu1 %2242  ;;  %v2090_v22 = vpop.permute.xlu0 %2089 }
 0x22b   : > { %2143 = vrot.lane.b32.xlu0 %v8031_v18, %s7550_s17  ;;  %6936 = vmatpush3.xpose.msk.msra.mxu0 %vm2167_vm5, %v2243_v20 }
 0x22c   : > { %2546 = vrot.lane.b32.xlu1 %v2130_v24, %s7553_s29  ;;  %6940 = vmatprep.subr.mxu0 %v7548_v34 }
 0x22e   : > { %6938 = vmatmul.mubr.msk.f32.vlgmr.msra.gmra.mrb[14].mxu0 %vm2167_vm5, %v7030_v59  ;;  %v2079_v30 = vpop.permute.xlu1 %2078 }
 0x22f   : > { %2157 = vrot.lane.b32.xlu0 %v7045_v23, %s7552_s26  ;;  %6942 = vmatprep.mubr.msk.f32.mxu0 %vm7551_vm3, %v7548_v34  ;;  %v2087_v32 = vsel %vm2086_vm4, %v2079_v30, %v2081_v29 }
 0x230   : > { %2698 = vrot.lane.b32.xlu1 %v2134_v13, %s7553_s29  ;;  %s8833_s29 = scalar_lea.vmem %s8799_s5, %s7668_s18 }
 0x232   : > { %v2083_v36 = vpop.permute.xlu1 %2082 }
 0x233   : > { %2147 = vrot.lane.b32.xlu0 %v8046_v25, %s7550_s17 }
 0x234   : > { %2101 = vrot.lane.b32.xlu1 %v7961_v40, %s7552_s26 }
 0x237   : > { %2159 = vrot.lane.b32.xlu0 %v7046_v27, %s7552_s26 }
 0x238   : > { %2137 = vrot.lane.b32.xlu1 %v8031_v18, %s7549_s28 }
 0x23c   : > { %2145 = vrot.lane.b32.xlu1 %v7044_v28, %s7550_s17 }
 0x240   : > { %2155 = vrot.lane.b32.xlu1 %v7044_v28, %s7552_s26 }
 0x244   : > { %2139 = vrot.lane.b32.xlu1 %v8046_v25, %s7549_s28  ;;  %s7557_s28 = smov 97  }
 0x246   : > { %v2319_v31 = vpop.permute.xlu0 %2318 }
 0x247   : > { %6941 = vmatpush3.xpose.msk.msra.mxu0 %vm2167_vm5, %v2319_v31 }
 0x248   : > { %2149 = vrot.lane.b32.xlu1 %v7046_v27, %s7550_s17  ;;  %6950 = vmatprep.subr.mxu0 %v7548_v34  ;;  %v6528_v27 = vld [vmem:[%s8831_s4 + $0x6] ss:$0 sm:$0xff] }
 0x24a   : > { %6943 = vmatmul.mubr.msk.f32.vlgmr.msra.gmra.mrb[16].mxu0 %vm2167_vm5, %v2087_v32  ;;  %v2085_v37 = vpop.permute.xlu0 %2084  ;;  %v6527_v32 = vld [vmem:[%s8831_s4 + $0x5] ss:$0 sm:$0xff] }
 0x24b   : > { %6952 = vmatprep.mubr.msk.f32.mxu0 %vm7551_vm3, %v7548_v34  ;;  %v2088_v40 = vsel %vm2086_vm4, %v2083_v36, %v2085_v37 }
 0x24c   : > { %2161 = vrot.lane.b32.xlu1 %v7047_v35, %s7552_s26  ;;  %s8837_s26 = sld [smem:[#allocation14_spill]] (!%p6778_p5) }
 0x28d   : > { %v2623_v52 = vpop.permute.xlu0 %2622 }
 0x291   : > { %v2098_v42 = vpop.permute.xlu0 %2097 }
 0x292   : > { %v2395_v38 = vpop.permute.xlu1 %2394 }
 0x293   : > { %6946 = vmatpush3.xpose.msk.msra.mxu1 %vm2167_vm5, %v2395_v38 }
 0x294   : > { %6955 = vmatprep.subr.mxu1 %v7548_v34 }
 0x295   : > { %v2092_v47 = vpop.permute.xlu0 %2091 }
 0x296   : > { %6948 = vmatmul.mubr.msk.f32.vlgmr.msra.gmra.mrb[8].mxu1 %vm2167_vm5, %v2088_v40  ;;  %v2471_v41 = vpop.permute.xlu1 %2470 }
 0x297   : > { %6951 = vmatpush3.xpose.msk.msra.mxu0 %vm2167_vm5, %v2471_v41  ;;  %6957 = vmatprep.mubr.msk.f32.mxu1 %vm7551_vm3, %v7548_v34  ;;  %v6529_v41 = vld [vmem:[%s8831_s4 + $0x7] ss:$0 sm:$0xff] }
 0x298   : > { %6960 = vmatprep.subr.mxu0 %v7548_v34 }
 0x299   : > { %v2100_v53 = vpop.permute.xlu0 %2099 }
 0x29a   : > { %v2096_v43 = vpop.permute.xlu1 %2095  ;;  %6953 = vmatmul.mubr.msk.f32.vlgmr.msra.gmra.mrb[18].mxu0 %vm2167_vm5, %v2090_v22 }
 0x29b   : > { %6961 = vmatpush3.xpose.msk.msra.mxu0 %vm2167_vm5, %v2623_v52  ;;  %6962 = vmatprep.mubr.msk.f32.mxu0 %vm7551_vm3, %v7548_v34  ;;  %v2104_v44 = vsel %vm2103_vm7, %v2096_v43, %v2098_v42 }
 0x29c   : > { %6970 = vmatprep.subr.mxu0 %v7548_v34 }
 0x29d   : > { %v2144_v37 = vpop.permute.xlu0 %2143 }
 0x29e   : > { %v2547_v45 = vpop.permute.xlu1 %2546  ;;  %6963 = vmatmul.mubr.msk.f32.vlgmr.msra.gmra.mrb[20].mxu0 %vm2167_vm5, %v2104_v44 }
 0x29f   : > { %6956 = vmatpush3.xpose.msk.msra.mxu1 %vm2167_vm5, %v2547_v45  ;;  %6972 = vmatprep.mubr.msk.f32.mxu0 %vm7551_vm3, %v7548_v34 }
 0x2a0   : > { %6965 = vmatprep.subr.mxu1 %v7548_v34 }
 0x2a1   : > { %v2158_v44 = vpop.permute.xlu0 %2157 }
 0x2a2   : > { %6958 = vmatmul.mubr.msk.f32.vlgmr.msra.gmra.mrb[10].mxu1 %vm2167_vm5, %v2092_v47  ;;  %v2699_v49 = vpop.permute.xlu1 %2698 }
 0x2a3   : > { %6966 = vmatpush3.xpose.msk.msra.mxu1 %vm2167_vm5, %v2699_v49  ;;  %6967 = vmatprep.mubr.msk.f32.mxu1 %vm7551_vm3, %v7548_v34 }
 0x2a4   : > { %6975 = vmatprep.subr.mxu1 %v7548_v34 }
 0x2a5   : > { %v2148_v49 = vpop.permute.xlu0 %2147 }
 0x2a6   : > { %v2102_v54 = vpop.permute.xlu1 %2101 }
 0x2a7   : > { %v2105_v14 = vsel %vm2103_vm7, %v2100_v53, %v2102_v54 }
 0x2a8   : > { %6968 = vmatmul.mubr.msk.f32.vlgmr.msra.gmra.mrb[12].mxu1 %vm2167_vm5, %v2105_v14 }
 0x2a9   : > { %6977 = vmatprep.mubr.msk.f32.mxu1 %vm7551_vm3, %v7548_v34  ;;  %v8147_v53 = vpop.permute.xlu0 %2159 }
 0x2aa   : > { %v2138_v54 = vpop.permute.xlu1 %2137 }
 0x2f9   : > { %v2238_v55 = vpop.f32.mrb[12].mxu0 }
 0x2fa   : > { %v2774_v57 = vmul.f32 0.11547005, %v2238_v55  ;;  %v6934_v58 = vpop.f32.mrb[13].mxu0 }
 0x2fc   : > { %v2830_v59 = vadd.f32 %v6522_v56, %v2774_v57  ;;  %v2146_v56 = vpop.permute.xlu1 %2145 }
 0x2fe   : > { %v2839_v60 = vsel %vm2838_vm8, %v2830_v59, -inf }
 0x2ff   : > { %2840 = vmax.xlane.f32.xlu0 %v2839_v60 }
 0x300   : > { %v2156_v60 = vpop.permute.xlu1 %2155 }
 0x301   : > { %v2314_v61 = vpop.f32.mrb[14].mxu0 }
 0x302   : > { %v2775_v63 = vmul.f32 0.11547005, %v2314_v61  ;;  %v6939_v0 = vpop.f32.mrb[15].mxu0 }
 0x304   : > { %v2831_v1 = vadd.f32 %v6523_v62, %v2775_v63  ;;  %v2151_v63 = vsel %vm2128_vm6, %v2144_v37, %v2146_v56 }
 0x306   : > { %v2842_v2 = vsel %vm2838_vm8, %v2831_v1, -inf }
 0x307   : > { %2843 = vmax.xlane.f32.xlu0 %v2842_v2  ;;  %v2163_v2 = vsel %vm2103_vm7, %v2156_v60, %v2158_v44 }
 0x31d   : > { %v2390_v3 = vpop.f32.mrb[16].mxu0 }
 0x31e   : > { %v2776_v5 = vmul.f32 0.11547005, %v2390_v3  ;;  %v6944_v6 = vpop.f32.mrb[17].mxu0 }
 0x320   : > { %v8108_v7 = vadd.f32 %v6524_v4, %v2776_v5 }
 0x322   : > { %v2845_v8 = vsel %vm2838_vm8, %v8108_v7, -inf }
 0x323   : > { %2846 = vmax.xlane.f32.xlu1 %v2845_v8 }
 0x369   : > { %v2466_v9 = vpop.f32.mrb[8].mxu1 }
 0x36a   : > { %v2777_v11 = vmul.f32 0.11547005, %v2466_v9  ;;  %v6949_v21 = vpop.f32.mrb[9].mxu1 }
 0x36c   : > { %v8115_v12 = vadd.f32 %v6525_v10, %v2777_v11 }
 0x36d   : > { %v2542_v13 = vpop.f32.mrb[18].mxu0 }
 0x36e   : > { %v2778_v20 = vmul.f32 0.11547005, %v2542_v13  ;;  %v6954_v23 = vpop.f32.mrb[19].mxu0  ;;  %v2848_v24 = vsel %vm2838_vm8, %v8115_v12, -inf }
 0x36f   : > { %2849 = vmax.xlane.f32.xlu1 %v2848_v24 }
 0x370   : > { %v8122_v39 = vadd.f32 %v6526_v16, %v2778_v20 }
 0x371   : > { %v2694_v26 = vpop.f32.mrb[20].mxu0 }
 0x372   : > { %v2780_v28 = vmul.f32 0.11547005, %v2694_v26  ;;  %v6964_v29 = vpop.f32.mrb[21].mxu0  ;;  %v2851_v22 = vsel %vm2838_vm8, %v8122_v39, -inf }
 0x373   : > { %2852 = vmax.xlane.f32.xlu0 %v2851_v22 }
 0x374   : > { %v8129_v30 = vadd.f32 %v6528_v27, %v2780_v28 }
 0x375   : > { %v2618_v31 = vpop.f32.mrb[10].mxu1 }
 0x376   : > { %v2779_v33 = vmul.f32 0.11547005, %v2618_v31  ;;  %v6959_v35 = vpop.f32.mrb[11].mxu1  ;;  %v2857_v36 = vsel %vm2838_vm8, %v8129_v30, -inf }
 0x377   : > { %2858 = vmax.xlane.f32.xlu0 %v2857_v36 }
 0x378   : > { %v8136_v38 = vadd.f32 %v6527_v32, %v2779_v33 }
 0x37a   : > { %v2854_v52 = vsel %vm2838_vm8, %v8136_v38, -inf }
 0x37b   : > { %v2770_v40 = vpop.f32.mrb[12].mxu1  ;;  %2855 = vmax.xlane.f32.xlu1 %v2854_v52 }
 0x37c   : > { %v2781_v42 = vmul.f32 0.11547005, %v2770_v40  ;;  %v6969_v43 = vpop.f32.mrb[13].mxu1 }
 0x37e   : > { %v8143_v45 = vadd.f32 %v6529_v41, %v2781_v42 }
 0x380   : > { %v2860_v47 = vsel %vm2838_vm8, %v8143_v45, -inf }
 0x381   : > { %2861 = vmax.xlane.f32.xlu0 %v2860_v47 }
 0x38c   : > { %v2841_v14 = vpop.xlane.xlu0 %2840  ;;  %2927 = vrot.lane.b32.xlu1 %v7972_v46, %s7554_s15  ;;  %v2140_v46 = vpop.permute.xlu1 %2139 }
 0x38d   : > { %v2863_v55 = vsub.f32 %v2830_v59, %v2841_v14 }
 0x38f   : > { %v2871_v57 = vmul.f32 1.442695, %v2863_v55 }
 0x390   : > { %3086 = vrot.lane.b32.xlu1 %v2138_v54, %s7554_s15 }
 0x391   : > { %7443 = vpow2.f32 %v2871_v57 }
 0x394   : > { %v2844_v58 = vpop.xlane.xlu0 %2843  ;;  %3007 = vrot.lane.b32.xlu1 %v7983_v51, %s7554_s15 }
 0x395   : > { %v2864_v61 = vsub.f32 %v2831_v1, %v2844_v58  ;;  %v2150_v1 = vpop.permute.xlu1 %2149 }
 0x397   : > { %v2873_v62 = vmul.f32 1.442695, %v2864_v61 }
 0x398   : > { %3238 = vrot.lane.b32.xlu1 %v2151_v63, %s7554_s15 }
 0x399   : > { %7445 = vpow2.f32 %v2873_v62  ;;  %v2162_v4 = vpop.permute.xlu1 %2161 }
 0x39a   : > { %v2164_v41 = vsel %vm2103_vm7, %v8147_v53, %v2162_v4 }
 0x39b   : > { %v8156_v0 = vpop.eup %7443 }
 0x39c   : > { %3162 = vrot.lane.b32.xlu1 %v2140_v46, %s7554_s15  ;;  %v2887_v59 = vsel %vm2838_vm8, %v8156_v0, 0.0 }
 0x39d   : > { %2888 = vadd.xlane.f32.xlu0 %v2887_v59 }
 0x3a0   : > { %3398 = vrot.lane.b32.xlu1 %v2163_v2, %s7554_s15 }
 0x3a3   : > { %v8163_v51 = vpop.eup %7445 }
 0x3a4   : > { %3319 = vrot.lane.b32.xlu1 %v2150_v1, %s7554_s15  ;;  %v2890_v3 = vsel %vm2838_vm8, %v8163_v51, 0.0 }
 0x3a5   : > { %2891 = vadd.xlane.f32.xlu0 %v2890_v3 }
 0x3b0   : > { %v2847_v5 = vpop.xlane.xlu1 %2846 }
 0x3b1   : > { %v2865_v6 = vsub.f32 %v8108_v7, %v2847_v5  ;;  %v2152_v7 = vsel %vm2128_vm6, %v2148_v49, %v2150_v1 }
 0x3b3   : > { %v2875_v8 = vmul.f32 1.442695, %v2865_v6 }
 0x3b5   : > { %7447 = vpow2.f32 %v2875_v8 }
 0x3bb   : > { %2929 = vrot.lane.b32.xlu0 %v8031_v18, %s7554_s15 }
 0x3bf   : > { %3009 = vrot.lane.b32.xlu0 %v8046_v25, %s7554_s15  ;;  %v8174_v9 = vpop.eup %7447 }
 0x3c0   : > { %v2893_v10 = vsel %vm2838_vm8, %v8174_v9, 0.0 }
 0x3c3   : > { %3240 = vrot.lane.b32.xlu0 %v2146_v56, %s7554_s15 }
 0x3c7   : > { %3396 = vrot.lane.b32.xlu0 %v2156_v60, %s7554_s15 }
 0x3c8   : > { %2894 = vadd.xlane.f32.xlu1 %v2893_v10 }
 0x3cb   : > { %3317 = vrot.lane.b32.xlu0 %v2152_v7, %s7554_s15 }
 0x3fc   : > { %v2850_v11 = vpop.xlane.xlu1 %2849 }
 0x3fd   : > { %v2866_v18 = vsub.f32 %v8115_v12, %v2850_v11 }
 0x3ff   : > { %v2877_v21 = vmul.f32 1.442695, %v2866_v18 }
 0x400   : > { %v2853_v13 = vpop.xlane.xlu0 %2852 }
 0x401   : > { %7449 = vpow2.f32 %v2877_v21  ;;  %v2867_v25 = vsub.f32 %v8122_v39, %v2853_v13 }
 0x403   : > { %v2879_v16 = vmul.f32 1.442695, %v2867_v25 }
 0x404   : > { %v2859_v20 = vpop.xlane.xlu0 %2858 }
 0x405   : > { %7451 = vpow2.f32 %v2879_v16  ;;  %v2869_v23 = vsub.f32 %v8129_v30, %v2859_v20 }
 0x407   : > { %v2883_v24 = vmul.f32 1.442695, %v2869_v23 }
 0x408   : > { %v2856_v26 = vpop.xlane.xlu1 %2855 }
 0x409   : > { %7453 = vpow2.f32 %v2883_v24  ;;  %v2868_v27 = vsub.f32 %v8136_v38, %v2856_v26 }
 0x40b   : > { %v8185_v28 = vpop.eup %7449  ;;  %v2881_v29 = vmul.f32 1.442695, %v2868_v27 }
 0x40c   : > { %v2896_v12 = vsel %vm2838_vm8, %v8185_v28, 0.0  ;;  %v2928_v40 = vpop.permute.xlu1 %2927 }
 0x40d   : > { %7455 = vpow2.f32 %v2881_v29  ;;  %2897 = vadd.xlane.f32.xlu1 %v2896_v12 }
 0x40e   : > { %v2862_v22 = vpop.xlane.xlu0 %2861 }
 0x40f   : > { %v8189_v39 = vpop.eup %7451  ;;  %v2870_v31 = vsub.f32 %v8143_v45, %v2862_v22 }
 0x410   : > { %v2899_v30 = vsel %vm2838_vm8, %v8189_v39, 0.0  ;;  %v3087_v43 = vpop.permute.xlu1 %3086 }
 0x411   : > { %v2885_v32 = vmul.f32 1.442695, %v2870_v31  ;;  %2900 = vadd.xlane.f32.xlu0 %v2899_v30  ;;  %v7125_v31 = vld [vmem:[%s8832_s20] ss:$12 sps:$4 sm:$0xff]   ;;  %v7127_v30 = vld [vmem:[%s8832_s20 + $0x4] ss:$12 sps:$4 sm:$0xff]  }
 0x413   : > { %v8194_v33 = vpop.eup %7453  ;;  %7457 = vpow2.f32 %v2885_v32  ;;  %v7130_v32 = vld [vmem:[%s8832_s20 + $0x1c] ss:$12 sps:$4 sm:$0xff]  }
 0x414   : > { %v2905_v35 = vsel %vm2838_vm8, %v8194_v33, 0.0  ;;  %v3008_v45 = vpop.permute.xlu1 %3007 }
 0x415   : > { %2906 = vadd.xlane.f32.xlu0 %v2905_v35  ;;  %v7133_v35 = vld [vmem:[%s8832_s20 + $0x34] ss:$12 sps:$4 sm:$0xff]  }
 0x417   : > { %v8198_v36 = vpop.eup %7455 }
 0x418   : > { %v2902_v37 = vsel %vm2838_vm8, %v8198_v36, 0.0  ;;  %v3239_v55 = vpop.permute.xlu1 %3238 }
 0x419   : > { %2903 = vadd.xlane.f32.xlu1 %v2902_v37  ;;  %v7153_v37 = vld [vmem:[%s8832_s20 + $0x8] ss:$12 sps:$4 sm:$0xff]  }
 0x41c   : > { %v3163_v60 = vpop.permute.xlu1 %3162 }
 0x41d   : > { %v8202_v38 = vpop.eup %7457 }
 0x41e   : > { %v2908_v52 = vsel %vm2838_vm8, %v8202_v38, 0.0 }
 0x41f   : > { %2909 = vadd.xlane.f32.xlu0 %v2908_v52  ;;  %v7157_v52 = vld [vmem:[%s8832_s20 + $0xe0] ss:$12 sps:$4 sm:$0xff]  }
 0x420   : > { %v3399_v61 = vpop.permute.xlu1 %3398 }
 0x424   : > { %v3320_v62 = vpop.permute.xlu1 %3319 }
 0x42a   : > { %3477 = vrot.lane.b32.xlu1 %v2164_v41, %s7554_s15  ;;  %v2889_v42 = vpop.xlane.xlu0 %2888  ;;  %v7158_v41 = vld [vmem:[%s8832_s20 + $0x20] ss:$12 sps:$4 sm:$0xff]  }
 0x42b   : > { %7459 = vrcp.f32 %v2889_v42  ;;  %v7162_v42 = vld [vmem:[%s8832_s20 + $0xf8] ss:$12 sps:$4 sm:$0xff]  }
 0x432   : > { %v2892_v44 = vpop.xlane.xlu0 %2891 }
 0x433   : > { %7461 = vrcp.f32 %v2892_v44 }
 0x435   : > { %v7460_v47 = vpop.eup %7459  ;;  %3475 = vrot.lane.b32.xlu0 %v8147_v53, %s7554_s15 }
 0x436   : > { %v2912_v49 = vmul.f32 %v7460_v47, %v8156_v0  ;;  %v2930_v54 = vpop.permute.xlu0 %2929 }
 0x437   : > { %v2932_v14 = vsel %vm2931_vm9, %v2928_v40, %v2930_v54  ;;  %v7136_v40 = vld [vmem:[%s8832_s20 + $0x4c] ss:$12 sps:$4 sm:$0xff]   ;;  %v7167_v54 = vld [vmem:[%s8832_s20 + $0x110] ss:$12 sps:$4 sm:$0xff]  }
 0x438   : > { %6971 = vmatpush3.msra.mxu0 %v2932_v14  ;;  %v7137_v14 = vld [vmem:[%s8832_s20 + $0x60] ss:$12 sps:$4 sm:$0xff]  }
 0x439   : > { %6973 = vmatmul.mubr.msk.f32.vlgmr.msra.gmra.mrb[22].mxu0 %vm2838_vm8, %v2912_v49  ;;  %6980 = vmatprep.subr.mxu0 %v7548_v34  ;;  %v7163_v49 = vld [vmem:[%s8832_s20 + $0x38] ss:$12 sps:$4 sm:$0xff]  }
 0x43a   : > { %6981 = vmatpush3.msra.mxu0 %v3087_v43  ;;  %v3010_v56 = vpop.permute.xlu0 %3009  ;;  %6982 = vmatprep.mubr.msk.f32.mxu0 %vm7551_vm3, %v7548_v34  ;;  %v7134_v43 = vld [vmem:[%s8832_s20 + $0x48] ss:$12 sps:$4 sm:$0xff]  }
 0x43b   : > { %v3011_v57 = vsel %vm2931_vm9, %v3008_v45, %v3010_v56  ;;  %6990 = vmatprep.subr.mxu0 %v7548_v34  ;;  %v7139_v45 = vld [vmem:[%s8832_s20 + $0x64] ss:$12 sps:$4 sm:$0xff]  }
 0x43c   : > { %6976 = vmatpush3.msra.mxu1 %v3011_v57  ;;  %v7168_v56 = vld [vmem:[%s8832_s20 + $0x50] ss:$12 sps:$4 sm:$0xff]   ;;  %v7172_v57 = vld [vmem:[%s8832_s20 + $0x128] ss:$12 sps:$4 sm:$0xff]  }
 0x43d   : > { %v7462_v53 = vpop.eup %7461  ;;  %6985 = vmatprep.subr.mxu1 %v7548_v34 }
 0x43e   : > { %v2914_v58 = vmul.f32 %v7462_v53, %v8163_v51  ;;  %v3241_v46 = vpop.permute.xlu0 %3240  ;;  %v7140_v53 = vld [vmem:[%s8832_s20 + $0x78] ss:$12 sps:$4 sm:$0xff]  }
 0x43f   : > { %v3242_v2 = vsel %vm2931_vm9, %v3239_v55, %v3241_v46  ;;  %v7142_v55 = vld [vmem:[%s8832_s20 + $0x7c] ss:$12 sps:$4 sm:$0xff]   ;;  %v7182_v46 = vld [vmem:[%s8832_s20 + $0x158] ss:$12 sps:$4 sm:$0xff]  }
 0x440   : > { %6978 = vmatmul.mubr.msk.f32.vlgmr.msra.gmra.mrb[14].mxu1 %vm2838_vm8, %v2914_v58  ;;  %v7145_v58 = vld [vmem:[%s8832_s20 + $0x94] ss:$12 sps:$4 sm:$0xff]  }
 0x441   : > { %6986 = vmatpush3.msra.mxu1 %v3163_v60  ;;  %6987 = vmatprep.mubr.msk.f32.mxu1 %vm7551_vm3, %v7548_v34  ;;  %v7173_v60 = vld [vmem:[%s8832_s20 + $0x68] ss:$12 sps:$4 sm:$0xff]  }
 0x442   : > { %6995 = vmatprep.subr.mxu1 %v7548_v34  ;;  %v3397_v51 = vpop.permute.xlu0 %3396 }
 0x443   : > { %v3400_v18 = vsel %vm2931_vm9, %v3397_v51, %v3399_v61  ;;  %v7177_v61 = vld [vmem:[%s8832_s20 + $0x140] ss:$12 sps:$4 sm:$0xff]   ;;  %v7183_v51 = vld [vmem:[%s8832_s20 + $0x98] ss:$12 sps:$4 sm:$0xff]  }
 0x446   : > { %v3318_v1 = vpop.permute.xlu0 %3317 }
 0x447   : > { %v3321_v10 = vsel %vm2931_vm9, %v3318_v1, %v3320_v62  ;;  %v7143_v62 = vld [vmem:[%s8832_s20 + $0x90] ss:$12 sps:$4 sm:$0xff]   ;;  %v7149_v1 = vld [vmem:[%s8832_s20 + $0xc0] ss:$12 sps:$4 sm:$0xff]  }
 0x455   : > { %v2895_v63 = vpop.xlane.xlu1 %2894 }
 0x456   : > { %7463 = vrcp.f32 %v2895_v63  ;;  %v7148_v63 = vld [vmem:[%s8832_s20 + $0xac] ss:$12 sps:$4 sm:$0xff]  }
 0x460   : > { %v7464_v0 = vpop.eup %7463 }
 0x461   : > { %v2916_v59 = vmul.f32 %v7464_v0, %v8174_v9  ;;  %v7178_v0 = vld [vmem:[%s8832_s20 + $0x80] ss:$12 sps:$4 sm:$0xff]  }
 0x463   : > { %6983 = vmatmul.mubr.msk.f32.vlgmr.msra.gmra.mrb[24].mxu0 %vm2838_vm8, %v2916_v59  ;;  %v7146_v59 = vld [vmem:[%s8832_s20 + $0xa8] ss:$12 sps:$4 sm:$0xff]  }
 0x464   : > { %6991 = vmatpush3.msra.mxu0 %v3242_v2  ;;  %6992 = vmatprep.mubr.msk.f32.mxu0 %vm7551_vm3, %v7548_v34  ;;  %v7151_v2 = vld [vmem:[%s8832_s20 + $0xc4] ss:$12 sps:$4 sm:$0xff]  }
 0x465   : > { %7000 = vmatprep.subr.mxu0 %v7548_v34 }
 0x49a   : > { %v2898_v3 = vpop.xlane.xlu1 %2897 }
 0x49b   : > { %7465 = vrcp.f32 %v2898_v3  ;;  %v7156_v3 = vld [vmem:[%s8832_s20 + $0xdc] ss:$12 sps:$4 sm:$0xff]  }
 0x49e   : > { %v2901_v4 = vpop.xlane.xlu0 %2900 }
 0x49f   : > { %7467 = vrcp.f32 %v2901_v4  ;;  %v7154_v4 = vld [vmem:[%s8832_s20 + $0xd8] ss:$12 sps:$4 sm:$0xff]  }
 0x4a2   : > { %v2907_v5 = vpop.xlane.xlu0 %2906 }
 0x4a3   : > { %7469 = vrcp.f32 %v2907_v5  ;;  %v7161_v5 = vld [vmem:[%s8832_s20 + $0xf4] ss:$12 sps:$4 sm:$0xff]  }
 0x4a5   : > { %v7466_v6 = vpop.eup %7465 }
 0x4a6   : > { %v2918_v8 = vmul.f32 %v7466_v6, %v8185_v28  ;;  %v2904_v9 = vpop.xlane.xlu1 %2903  ;;  %v7159_v6 = vld [vmem:[%s8832_s20 + $0xf0] ss:$12 sps:$4 sm:$0xff]  }
 0x4a7   : > { %7471 = vrcp.f32 %v2904_v9  ;;  %v7164_v9 = vld [vmem:[%s8832_s20 + $0x108] ss:$12 sps:$4 sm:$0xff]  }
 0x4a8   : > { %6988 = vmatmul.mubr.msk.f32.vlgmr.msra.gmra.mrb[16].mxu1 %vm2838_vm8, %v2918_v8  ;;  %v7166_v8 = vld [vmem:[%s8832_s20 + $0x10c] ss:$12 sps:$4 sm:$0xff]  }
 0x4a9   : > { %v7468_v7 = vpop.eup %7467  ;;  %6996 = vmatpush3.msra.mxu1 %v3321_v10  ;;  %6997 = vmatprep.mubr.msk.f32.mxu1 %vm7551_vm3, %v7548_v34  ;;  %v7171_v10 = vld [vmem:[%s8832_s20 + $0x124] ss:$12 sps:$4 sm:$0xff]  }
 0x4aa   : > { %v2920_v11 = vmul.f32 %v7468_v7, %v8189_v39  ;;  %7005 = vmatprep.subr.mxu1 %v7548_v34  ;;  %v3478_v24 = vpop.permute.xlu1 %3477  ;;  %v7169_v7 = vld [vmem:[%s8832_s20 + $0x120] ss:$12 sps:$4 sm:$0xff]  }
 0x4ac   : > { %6993 = vmatmul.mubr.msk.f32.vlgmr.msra.gmra.mrb[26].mxu0 %vm2838_vm8, %v2920_v11  ;;  %v2910_v21 = vpop.xlane.xlu0 %2909  ;;  %v7176_v11 = vld [vmem:[%s8832_s20 + $0x13c] ss:$12 sps:$4 sm:$0xff]  }
 0x4ad   : > { %v7470_v13 = vpop.eup %7469  ;;  %7001 = vmatpush3.msra.mxu0 %v3400_v18  ;;  %7473 = vrcp.f32 %v2910_v21  ;;  %7002 = vmatprep.mubr.msk.f32.mxu0 %vm7551_vm3, %v7548_v34  ;;  %v7174_v18 = vld [vmem:[%s8832_s20 + $0x138] ss:$12 sps:$4 sm:$0xff]   ;;  %v7181_v21 = vld [vmem:[%s8832_s20 + $0x154] ss:$12 sps:$4 sm:$0xff]  }
 0x4ae   : > { %v2924_v25 = vmul.f32 %v7470_v13, %v8194_v33  ;;  %3993 = vmatprep.subr.bf16.mxu0 %v7127_v30  ;;  %v7128_v33 = vld [vmem:[%s8832_s20 + $0x18] ss:$12 sps:$4 sm:$0xff]   ;;  %v7179_v13 = vld [vmem:[%s8832_s20 + $0x150] ss:$12 sps:$4 sm:$0xff]  }
 0x4b0   : > { %7003 = vmatmul.mubr.msk.f32.vlgmr.msra.gmra.mrb[28].mxu0 %vm2838_vm8, %v2924_v25  ;;  %v3476_v20 = vpop.permute.xlu0 %3475  ;;  %v7184_v25 = vld [vmem:[%s8832_s20 + $0x168] ss:$12 sps:$4 sm:$0xff]  }
 0x4b1   : > { %v7472_v16 = vpop.eup %7471  ;;  %v3479_v26 = vsel %vm2931_vm9, %v3476_v20, %v3478_v24  ;;  %3994 = vmatpush1.bf16.msra.mxu0 %v7125_v31  ;;  %v7187_v20 = vld [vmem:[%s8832_s20 + $0x170] ss:$12 sps:$4 sm:$0xff]  }
 0x4b2   : > { %v2922_v23 = vmul.f32 %v7472_v16, %v8198_v36  ;;  %3995 = vmatprep.subr.bf16.mxu0 %v7130_v32  ;;  %v7152_v36 = vld [vmem:[%s8832_s20 + $0xc8] ss:$12 sps:$4 sm:$0xff]   ;;  %v7186_v16 = vld [vmem:[%s8832_s20 + $0x16c] ss:$12 sps:$4 sm:$0xff]   ;;  %v7191_v24 = vld [vmem:[%s8832_s20 + $0x184] ss:$12 sps:$4 sm:$0xff]  }
 0x4b4   : > { %6998 = vmatmul.mubr.msk.f32.vlgmr.msra.gmra.mrb[18].mxu1 %vm2838_vm8, %v2922_v23  ;;  %v7188_v23 = vld [vmem:[%s8832_s20 + $0xb0] ss:$12 sps:$4 sm:$0xff]  }
 0x4b5   : > { %7006 = vmatpush3.msra.mxu1 %v3479_v26  ;;  %7007 = vmatprep.mubr.msk.f32.mxu1 %vm7551_vm3, %v7548_v34  ;;  %v7192_v26 = vld [vmem:[%s8832_s20 + $0x188] ss:$12 sps:$4 sm:$0xff]  }
 0x4b6   : > { %3996 = vmatpush1.bf16.msra.mxu0 %v7128_v33  ;;  %6836 = vmatprep.subr.bf16.mxu1 %v7152_v36 }
 0x4b7   : > { %v7474_v27 = vpop.eup %7473  ;;  %3997 = vmatprep.subr.bf16.mxu0 %v7133_v35 }
 0x4b8   : > { %v2926_v28 = vmul.f32 %v7474_v27, %v8202_v38  ;;  %v7131_v38 = vld [vmem:[%s8832_s20 + $0x30] ss:$12 sps:$4 sm:$0xff]  }
 0x4ba   : > { %7008 = vmatmul.mubr.msk.f32.vlgmr.msra.gmra.mrb[20].mxu1 %vm2838_vm8, %v2926_v28  ;;  %3998 = vmatpush1.bf16.msra.mxu0 %v7131_v38 }
 0x4bb   : > { %6837 = vmatpush3.bf16.msra.mxu1 %v7153_v37  ;;  %3999 = vmatprep.subr.bf16.mxu0 %v7136_v40 }
 0x4bc   : > { %6838 = vmatprep.subr.bf16.mxu1 %v7157_v52 }
 0x4be   : > { %4000 = vmatpush1.bf16.msra.mxu0 %v7134_v43  ;;  %v7195_v43 = vld [vmem:[%s8832_s20 + $0x19c] ss:$12 sps:$4 sm:$0xff]  }
 0x4bf   : > { %6839 = vmatpush3.bf16.msra.mxu1 %v7158_v41  ;;  %4001 = vmatprep.subr.bf16.mxu0 %v7139_v45  ;;  %v7189_v41 = vld [vmem:[%s8832_s20 + $0x180] ss:$12 sps:$4 sm:$0xff]  }
 0x4c0   : > { %6840 = vmatprep.subr.bf16.mxu1 %v7162_v42 }
 0x4c2   : > { %4002 = vmatpush1.bf16.msra.mxu0 %v7137_v14 }
 0x4c3   : > { %6841 = vmatpush3.bf16.msra.mxu1 %v7163_v49  ;;  %4003 = vmatprep.subr.bf16.mxu0 %v7142_v55  ;;  %v7197_v49 = vld [vmem:[%s8832_s20 + $0x1b4] ss:$12 sps:$4 sm:$0x3f]  }
 0x4c4   : > { %6842 = vmatprep.subr.bf16.mxu1 %v7167_v54  ;;  %v7199_v54 = vld [vmem:[%s8832_s20 + $0x1b8] ss:$12 sps:$4 sm:$0x3f]  }
 0x4c6   : > { %4004 = vmatpush1.bf16.msra.mxu0 %v7140_v53 }
 0x4c7   : > { %6843 = vmatpush3.bf16.msra.mxu1 %v7168_v56  ;;  %4005 = vmatprep.subr.bf16.mxu0 %v7145_v58  ;;  %v7200_v56 = vld [vmem:[%s8832_s20 + $0x1b0] ss:$12 sps:$4 sm:$0x3f]  }
 0x4c8   : > { %6844 = vmatprep.subr.bf16.mxu1 %v7172_v57  ;;  %v3985_v58 = vsel %vm1689_vm1, %v7200_v56, 0 }
 0x4ca   : > { %4006 = vmatpush1.bf16.msra.mxu0 %v7143_v62  ;;  %v7203_v62 = vld [vmem:[%s7690_s14 + $0x4] ss:$16 sps:$4 sm:$0xff]  }
 0x4cb   : > { %6845 = vmatpush3.bf16.msra.mxu1 %v7173_v60  ;;  %4007 = vmatprep.subr.bf16.mxu0 %v7148_v63  ;;  %v3991_v60 = vsel %vm1689_vm1, %v7199_v54, 0  ;;  %v7204_v63 = vld [vmem:[%s7690_s14 + $0x8] ss:$16 sps:$4 sm:$0xff]  }
 0x4cc   : > { %6846 = vmatprep.subr.bf16.mxu1 %v7177_v61 }
 0x4ce   : > { %4008 = vmatpush1.bf16.msra.mxu0 %v7146_v59  ;;  %v7212_v59 = vld [vmem:[%s7690_s14 + $0x2c] ss:$16 sps:$4 sm:$0xff]  }
 0x4cf   : > { %6847 = vmatpush3.bf16.msra.mxu1 %v7178_v0  ;;  %4009 = vmatprep.subr.bf16.mxu0 %v7151_v2  ;;  %v7206_v0 = vld [vmem:[%s7690_s14 + $0xc] ss:$16 sps:$4 sm:$0xff]   ;;  %v7207_v2 = vld [vmem:[%s7690_s14 + $0x20] ss:$16 sps:$4 sm:$0xff]  }
 0x4d0   : > { %6848 = vmatprep.subr.bf16.mxu1 %v7182_v46  ;;  %v7209_v46 = vld [vmem:[%s7690_s14 + $0x24] ss:$16 sps:$4 sm:$0xff]  }
 0x4d2   : > { %4010 = vmatpush1.bf16.msra.mxu0 %v7149_v1  ;;  %v7215_v1 = vld [vmem:[%s7690_s14 + $0x44] ss:$16 sps:$4 sm:$0xff]  }
 0x4d3   : > { %6849 = vmatpush3.bf16.msra.mxu1 %v7183_v51  ;;  %4011 = vmatprep.subr.bf16.mxu0 %v7156_v3  ;;  %v7210_v51 = vld [vmem:[%s7690_s14 + $0x28] ss:$16 sps:$4 sm:$0xff]   ;;  %v7218_v3 = vld [vmem:[%s7690_s14 + $0x4c] ss:$16 sps:$4 sm:$0xff]  }
 0x4d4   : > { %6850 = vmatprep.subr.bf16.mxu1 %v7187_v20  ;;  %v7234_v20 = vld [vmem:[%s7690_s14 + $0xa8] ss:$16 sps:$4 sm:$0xff]  }
 0x4d6   : > { %4012 = vmatpush1.bf16.msra.mxu0 %v7154_v4  ;;  %v7213_v4 = vld [vmem:[%s7690_s14 + $0x40] ss:$16 sps:$4 sm:$0xff]  }
 0x4d7   : > { %4013 = vmatprep.subr.bf16.mxu0 %v7161_v5  ;;  %6851 = vmatpush3.bf16.msra.mxu1 %v7188_v23  ;;  %v7216_v5 = vld [vmem:[%s7690_s14 + $0x48] ss:$16 sps:$4 sm:$0xff]   ;;  %v7239_v23 = vld [vmem:[%s7690_s14 + $0xc4] ss:$16 sps:$4 sm:$0xff]  }
 0x4d8   : > { %7010 = vmatprep.subr.bf16.mxu1 %v7192_v26 }
 0x4da   : > { %4014 = vmatpush1.bf16.msra.mxu0 %v7159_v6  ;;  %v7221_v6 = vld [vmem:[%s7690_s14 + $0x64] ss:$16 sps:$4 sm:$0xff]  }
 0x4db   : > { %4015 = vmatprep.subr.bf16.mxu0 %v7166_v8  ;;  %v7224_v8 = vld [vmem:[%s7690_s14 + $0x6c] ss:$16 sps:$4 sm:$0xff]  }
 0x4de   : > { %4016 = vmatpush1.bf16.msra.mxu0 %v7164_v9  ;;  %v7219_v9 = vld [vmem:[%s7690_s14 + $0x60] ss:$16 sps:$4 sm:$0xff]  }
 0x4df   : > { %4017 = vmatprep.subr.bf16.mxu0 %v7171_v10  ;;  %v7222_v10 = vld [vmem:[%s7690_s14 + $0x68] ss:$16 sps:$4 sm:$0xff]  }
 0x4e2   : > { %4018 = vmatpush1.bf16.msra.mxu0 %v7169_v7  ;;  %v7227_v7 = vld [vmem:[%s7690_s14 + $0x84] ss:$16 sps:$4 sm:$0xff]  }
 0x4e3   : > { %4019 = vmatprep.subr.bf16.mxu0 %v7176_v11  ;;  %v7230_v11 = vld [vmem:[%s7690_s14 + $0x8c] ss:$16 sps:$4 sm:$0xff]  }
 0x4e6   : > { %4020 = vmatpush1.bf16.msra.mxu0 %v7174_v18  ;;  %v7225_v18 = vld [vmem:[%s7690_s14 + $0x80] ss:$16 sps:$4 sm:$0xff]  }
 0x4e7   : > { %4021 = vmatprep.subr.bf16.mxu0 %v7181_v21  ;;  %v7228_v21 = vld [vmem:[%s7690_s14 + $0x88] ss:$16 sps:$4 sm:$0xff]  }
 0x4ea   : > { %4022 = vmatpush1.bf16.msra.mxu0 %v7179_v13  ;;  %v7233_v13 = vld [vmem:[%s7690_s14 + $0xa4] ss:$16 sps:$4 sm:$0xff]  }
 0x4eb   : > { %4023 = vmatprep.subr.bf16.mxu0 %v7186_v16  ;;  %v7231_v16 = vld [vmem:[%s7690_s14 + $0xa0] ss:$16 sps:$4 sm:$0xff]  }
 0x4ee   : > { %4024 = vmatpush1.bf16.msra.mxu0 %v7184_v25  ;;  %v7236_v25 = vld [vmem:[%s7690_s14 + $0xac] ss:$16 sps:$4 sm:$0xff]  }
 0x4ef   : > { %4038 = vmatprep.subr.bf16.mxu0 %v7191_v24  ;;  %v7242_v24 = vld [vmem:[%s7690_s14 + $0xcc] ss:$16 sps:$4 sm:$0xff]  }
 0x50c   : > { %v8251_v29 = vpop.f32.mrb[22].mxu0 }
 0x50d   : > { %v6974_v12 = vpop.f32.mrb[23].mxu0 }
 0x513   : > { %v8253_v22 = vpop.f32.mrb[14].mxu1 }
 0x514   : > { %v6979_v39 = vpop.f32.mrb[15].mxu1 }
 0x536   : > { %v3158_v44 = vpop.f32.mrb[24].mxu0 }
 0x537   : > { %3556 = vrot.lane.b32.xlu0 %v3158_v44, %s7555_s23  ;;  %v6984_v47 = vpop.f32.mrb[25].mxu0  ;;  %v7196_v44 = vld [vmem:[%s8832_s20 + $0x1a0] ss:$12 sps:$4 sm:$0xff]  }
 0x538   : > { %v7193_v47 = vld [vmem:[%s8832_s20 + $0x198] ss:$12 sps:$4 sm:$0xff]   ;;  %s8835_s20 = scalar_lea.vmem %s8801_s7, %s7668_s18 }
 0x57b   : > { %v3234_v27 = vpop.f32.mrb[16].mxu1 }
 0x57c   : > { %v6989_v28 = vpop.f32.mrb[17].mxu1 }
 0x57d   : > { %v7245_v28 = vld [vmem:[%s7690_s14 + $0xe4] ss:$16 sps:$4 sm:$0xff]  }
 0x57f   : > { %v3313_v12 = vpop.f32.mrb[26].mxu0 }
 0x580   : > { %3564 = vrot.lane.b32.xlu1 %v3313_v12, %s7556_s1  ;;  %v6994_v39 = vpop.f32.mrb[27].mxu0  ;;  %v7248_v12 = vld [vmem:[%s7690_s14 + $0xec] ss:$16 sps:$4 sm:$0xff]  }
 0x581   : > { %v7243_v39 = vld [vmem:[%s7690_s14 + $0xe0] ss:$16 sps:$4 sm:$0xff]  }
 0x583   : > { %v3471_v31 = vpop.f32.mrb[28].mxu0 }
 0x584   : > { %3558 = vrot.lane.b32.xlu1 %v3234_v27, %s7555_s23  ;;  %3572 = vrot.lane.b32.xlu0 %v3471_v31, %s7557_s28  ;;  %v7004_v30 = vpop.f32.mrb[29].mxu0  ;;  %v7240_v27 = vld [vmem:[%s7690_s14 + $0xc8] ss:$16 sps:$4 sm:$0xff]  }
 0x585   : > { %v7246_v31 = vld [vmem:[%s7690_s14 + $0xe8] ss:$16 sps:$4 sm:$0xff]   ;;  %v7251_v30 = vld [vmem:[%s7690_s14 + $0x104] ss:$16 sps:$4 sm:$0xff]  }
 0x587   : > { %v3392_v32 = vpop.f32.mrb[18].mxu1 }
 0x588   : > { %v6999_v33 = vpop.f32.mrb[19].mxu1  ;;  %3566 = vrot.lane.b32.xlu0 %v3392_v32, %s7556_s1  ;;  %v7254_v32 = vld [vmem:[%s7690_s14 + $0x10c] ss:$16 sps:$4 sm:$0xff]  }
 0x589   : > { %v7249_v33 = vld [vmem:[%s7690_s14 + $0x100] ss:$16 sps:$4 sm:$0xff]  }
 0x58d   : > { %v3550_v35 = vpop.f32.mrb[20].mxu1 }
 0x58e   : > { %v7009_v36 = vpop.f32.mrb[21].mxu1  ;;  %3574 = vrot.lane.b32.xlu1 %v3550_v35, %s7557_s28  ;;  %v7252_v35 = vld [vmem:[%s7690_s14 + $0x108] ss:$16 sps:$4 sm:$0xff]  }
 0x58f   : > { %v7257_v36 = vld [vmem:[%s7690_s14 + $0x124] ss:$16 sps:$4 sm:$0xff]  }
 0x5a9   : > { %v3557_v37 = vpop.permute.xlu0 %3556 }
 0x5aa   : > { %v3578_v45 = vsel %vm2167_vm5, %v8251_v29, %v3557_v37 }
 0x5f2   : > { %v3565_v38 = vpop.permute.xlu1 %3564 }
 0x5f3   : > { %v3581_v52 = vsel %vm3580_vm10, %v3557_v37, %v3565_v38  ;;  %v7260_v37 = vld [vmem:[%s7690_s14 + $0x12c] ss:$16 sps:$4 sm:$0xff]   ;;  %v7255_v38 = vld [vmem:[%s7690_s14 + $0x120] ss:$16 sps:$4 sm:$0xff]  }
 0x5f6   : > { %v3573_v40 = vpop.permute.xlu0 %3572  ;;  %v3559_v14 = vpop.permute.xlu1 %3558 }
 0x5f7   : > { %v3584_v42 = vsel %vm3583_vm11, %v3581_v52, %v3573_v40  ;;  %v3579_v61 = vsel %vm2167_vm5, %v8253_v22, %v3559_v14  ;;  %v7201_v22 = vld [vmem:[%s7690_s14] ss:$16 sps:$4 sm:$0xff]   ;;  %v7258_v52 = vld [vmem:[%s7690_s14 + $0x128] ss:$16 sps:$4 sm:$0xff]  }
 0x5f8   : > { %4025 = vmatprep.mubr.f32.mxu0 %v3584_v42  ;;  %4115 = vmatprep.mubr.f32.mxu1 %v3584_v42 }
 0x5f9   : > { %4026 = vmatmul.mubr.f32.vlgmr.msra.gmra.mrb[30].mxu0 %v3578_v45  ;;  %4116 = vmatmul.mubr.f32.vlgmr.msra.gmra.mrb[22].mxu1 %v3578_v45 }
 0x5fa   : > { %4039 = vmatpush1.bf16.msra.mxu0 %v7189_v41  ;;  %7011 = vmatpush3.bf16.msra.mxu1 %v7192_v26  ;;  %v3567_v55 = vpop.permute.xlu0 %3566  ;;  %v7237_v26 = vld [vmem:[%s7690_s14 + $0xc0] ss:$16 sps:$4 sm:$0xff]  }
 0x5fb   : > { %4040 = vmatprep.subr.bf16.mxu0 %v7195_v43  ;;  %7012 = vmatprep.subr.bf16.mxu1 %v7196_v44  ;;  %v3582_v29 = vsel %vm3580_vm10, %v3559_v14, %v3567_v55  ;;  %v3662_v43 = vld [vmem:[%s8833_s29] sm:$0x7] }
 0x5fc   : > { %v3675_v45 = vrot.slane %v3662_v43, %v7955_v48  ;;  %v3671_v14 = vrot.slane %v3662_v43, %v7981_v50 }
 0x5fe   : > { %4041 = vmatpush1.bf16.msra.mxu0 %v7193_v47  ;;  %7013 = vmatpush3.bf16.msra.mxu1 %v7196_v44 }
 0x5ff   : > { %6595 = vmatprep.subr.msk.bf16.mxu0 %vm1689_vm1, %v7197_v49  ;;  %7092 = vmatprep.subr.msk.bf16.mxu1 %vm1689_vm1, %v7199_v54  ;;  %v3667_v49 = vrot.slane %v3662_v43, %v7997_v15  ;;  %v7270_v43 = vld [vmem:[%s7690_s14 + $0x168] ss:$16 sps:$4 sm:$0xff]  }
 0x600   : > { %v3575_v57 = vpop.permute.xlu1 %3574 }
 0x601   : > { %v3585_v53 = vsel %vm3583_vm11, %v3582_v29, %v3575_v57 }
 0x602   : > { %4031 = vmatprep.mubr.f32.mxu0 %v3585_v53  ;;  %4120 = vmatprep.mubr.f32.mxu1 %v3585_v53 }
 0x603   : > { %4032 = vmatmul.mubr.f32.gmra.mrb[32].mxu0 %v3579_v61  ;;  %4121 = vmatmul.mubr.f32.gmra.mrb[24].mxu1 %v3579_v61 }
 0x604   : > { %4043 = vmatpush1.bf16.msra.mxu0 %v3985_v58  ;;  %7015 = vmatpush3.bf16.msra.mxu1 %v3991_v60 }
 0x605   : > { %7016 = vmatprep.mubr.msk.f32.mxu1 %vm1682_vm2, %v3573_v40  ;;  %4070 = vmatprep.mubr.f32.mxu0 %v7548_v34 }
 0x606   : > { %4764 = vmatprep.subr.bf16.mxu1 %v7203_v62  ;;  %4854 = vmatprep.subr.bf16.mxu0 %v7206_v0 }
 0x607   : > { %6596 = vmatmul.mubr.msk.f32.vlgmr.msra.gmra.mrb[30].mxu0 %vm1682_vm2, %v3573_v40  ;;  %7017 = vmatmul.mubr.msk.f32.vlgmr.msra.gmra.mrb[26].mxu1 %vm1682_vm2, %v3575_v57 }
 0x608   : > { %4076 = vmatprep.mubr.f32.mxu0 %v7548_v34  ;;  %4765 = vmatpush1.bf16.msra.mxu1 %v7201_v22 }
 0x609   : > { %4855 = vmatpush1.bf16.msra.mxu0 %v7204_v63  ;;  %4766 = vmatprep.subr.bf16.mxu1 %v7209_v46  ;;  %v7485_v63 = vld [vmem:[#allocation2] sm:$0xff]  ;;  %v7486_v46 = vld [vmem:[#allocation2 + $0x8] sm:$0xff] }
 0x60a   : > { %4856 = vmatprep.subr.bf16.mxu0 %v7212_v59 }
 0x60b   : > { %6597 = vmatmul.mubr.msk.f32.gmra.mrb[32].mxu0 %vm1682_vm2, %v3575_v57 }
 0x60c   : > { %4767 = vmatpush1.bf16.msra.mxu1 %v7207_v2  ;;  %v7487_v2 = vld [vmem:[#allocation2 + $0x10] sm:$0xff] }
 0x60d   : > { %4857 = vmatpush1.bf16.msra.mxu0 %v7210_v51  ;;  %4768 = vmatprep.subr.bf16.mxu1 %v7215_v1 }
 0x60e   : > { %4858 = vmatprep.subr.bf16.mxu0 %v7218_v3 }
 0x610   : > { %4769 = vmatpush1.bf16.msra.mxu1 %v7213_v4 }
 0x611   : > { %4859 = vmatpush1.bf16.msra.mxu0 %v7216_v5  ;;  %4770 = vmatprep.subr.bf16.mxu1 %v7221_v6 }
 0x612   : > { %4860 = vmatprep.subr.bf16.mxu0 %v7224_v8 }
 0x614   : > { %4771 = vmatpush1.bf16.msra.mxu1 %v7219_v9 }
 0x615   : > { %4861 = vmatpush1.bf16.msra.mxu0 %v7222_v10  ;;  %4772 = vmatprep.subr.bf16.mxu1 %v7227_v7  ;;  %v7488_v7 = vld [vmem:[#allocation2 + $0x28] sm:$0xff] }
 0x616   : > { %4862 = vmatprep.subr.bf16.mxu0 %v7230_v11 }
 0x618   : > { %4773 = vmatpush1.bf16.msra.mxu1 %v7225_v18  ;;  %v7489_v18 = vld [vmem:[#allocation2 + $0x18] sm:$0xff] }
 0x619   : > { %4863 = vmatpush1.bf16.msra.mxu0 %v7228_v21  ;;  %4774 = vmatprep.subr.bf16.mxu1 %v7233_v13 }
 0x61a   : > { %4864 = vmatprep.subr.bf16.mxu0 %v7236_v25  ;;  %v7490_v25 = vld [vmem:[#allocation2 + $0x20] sm:$0xff] }
 0x61c   : > { %4775 = vmatpush1.bf16.msra.mxu1 %v7231_v16 }
 0x61d   : > { %4865 = vmatpush1.bf16.msra.mxu0 %v7234_v20  ;;  %4776 = vmatprep.subr.bf16.mxu1 %v7239_v23 }
 0x61e   : > { %4866 = vmatprep.subr.bf16.mxu0 %v7242_v24 }
 0x620   : > { %4777 = vmatpush1.bf16.msra.mxu1 %v7237_v26 }
 0x621   : > { %4867 = vmatpush1.bf16.msra.mxu0 %v7240_v27  ;;  %4778 = vmatprep.subr.bf16.mxu1 %v7245_v28 }
 0x622   : > { %4868 = vmatprep.subr.bf16.mxu0 %v7248_v12 }
 0x624   : > { %4779 = vmatpush1.bf16.msra.mxu1 %v7243_v39 }
 0x625   : > { %4869 = vmatpush1.bf16.msra.mxu0 %v7246_v31  ;;  %4780 = vmatprep.subr.bf16.mxu1 %v7251_v30 }
 0x626   : > { %4870 = vmatprep.subr.bf16.mxu0 %v7254_v32 }
 0x628   : > { %4781 = vmatpush1.bf16.msra.mxu1 %v7249_v33 }
 0x629   : > { %4871 = vmatpush1.bf16.msra.mxu0 %v7252_v35  ;;  %4782 = vmatprep.subr.bf16.mxu1 %v7257_v36  ;;  %v7263_v36 = vld [vmem:[%s7690_s14 + $0x144] ss:$16 sps:$4 sm:$0xff]  }
 0x62a   : > { %4872 = vmatprep.subr.bf16.mxu0 %v7260_v37  ;;  %v7266_v37 = vld [vmem:[%s7690_s14 + $0x14c] ss:$16 sps:$4 sm:$0xff]  }
 0x62c   : > { %4783 = vmatpush1.bf16.msra.mxu1 %v7255_v38  ;;  %v7261_v38 = vld [vmem:[%s7690_s14 + $0x140] ss:$16 sps:$4 sm:$0xff]  }
 0x62d   : > { %4873 = vmatpush1.bf16.msra.mxu0 %v7258_v52  ;;  %v7264_v52 = vld [vmem:[%s7690_s14 + $0x148] ss:$16 sps:$4 sm:$0xff]   ;;  %4784 = vmatprep.subr.bf16.mxu1 %v7263_v36 }
 0x62e   : > { %4874 = vmatprep.subr.bf16.mxu0 %v7266_v37 }
 0x630   : > { %4785 = vmatpush1.bf16.msra.mxu1 %v7261_v38 }
 0x631   : > { %4875 = vmatpush1.bf16.msra.mxu0 %v7264_v52  ;;  %v7297_v52 = vld [vmem:[%s7690_s14 + $0x200] ss:$16 sps:$4 sm:$0xff]  }
 0x6cc   : > { %v6852_v40 = vpop.f32.mrb[22].mxu1 }
 0x6cd   : > { %v6853_v41 = vpop.f32.mrb[23].mxu1 }
 0x6ce   : > { %v6854_v42 = vadd.f32 %v6853_v41, %v6852_v40  ;;  %v7269_v40 = vld [vmem:[%s7690_s14 + $0x164] ss:$16 sps:$4 sm:$0xff]   ;;  %v7272_v41 = vld [vmem:[%s7690_s14 + $0x16c] ss:$16 sps:$4 sm:$0xff]  }
 0x6cf   : > { %4786 = vmatprep.subr.bf16.mxu1 %v7269_v40  ;;  %4876 = vmatprep.subr.bf16.mxu0 %v7272_v41  ;;  %v7300_v40 = vld [vmem:[%s7690_s14 + $0x208] ss:$16 sps:$4 sm:$0xff]  }
 0x6d0   : > { %v4118_v57 = vadd.f32 %v6854_v42, %v3675_v45  ;;  %v7267_v42 = vld [vmem:[%s7690_s14 + $0x160] ss:$16 sps:$4 sm:$0xff]   ;;  %4877 = vmatpush1.bf16.msra.mxu0 %v7270_v43  ;;  %v7308_v43 = vld [vmem:[%s7690_s14 + $0x22c] ss:$16 sps:$4 sm:$0xff]  }
 0x6d1   : > { %4787 = vmatpush1.bf16.msra.mxu1 %v7267_v42  ;;  %v7305_v42 = vld [vmem:[%s7690_s14 + $0x224] ss:$16 sps:$4 sm:$0xff]  }
 0x6d6   : > { %v6855_v44 = vpop.f32.mrb[24].mxu1 }
 0x6d7   : > { %v6856_v47 = vpop.f32.mrb[25].mxu1 }
 0x6d8   : > { %v6857_v54 = vadd.f32 %v6856_v47, %v6855_v44  ;;  %v7275_v44 = vld [vmem:[%s7690_s14 + $0x184] ss:$16 sps:$4 sm:$0xff]   ;;  %v7273_v47 = vld [vmem:[%s7690_s14 + $0x180] ss:$16 sps:$4 sm:$0xff]  }
 0x6d9   : > { %4788 = vmatprep.subr.bf16.mxu1 %v7275_v44 }
 0x6da   : > { %v4072_v55 = vpop.f32.mrb[30].mxu0  ;;  %v4123_v56 = vadd.f32 %v6857_v54, %v3675_v45  ;;  %v7018_v29 = vpop.f32.mrb[26].mxu1  ;;  %v7278_v45 = vld [vmem:[%s7690_s14 + $0x18c] ss:$16 sps:$4 sm:$0xff]   ;;  %4789 = vmatpush1.bf16.msra.mxu1 %v7273_v47  ;;  %v7281_v54 = vld [vmem:[%s7690_s14 + $0x1a4] ss:$16 sps:$4 sm:$0xff]  }
 0x6db   : > { %v7048_v53 = vadd.f32 %v4072_v55, %v3667_v49  ;;  %v4074_v58 = vpop.f32.mrb[31].mxu0  ;;  %v4160_v60 = vpop.f32.mrb[27].mxu1  ;;  %4878 = vmatprep.subr.bf16.mxu0 %v7278_v45  ;;  %v7279_v55 = vld [vmem:[%s7690_s14 + $0x1a0] ss:$16 sps:$4 sm:$0xff]   ;;  %4790 = vmatprep.subr.bf16.mxu1 %v7281_v54 }
 0x6dc   : > { %v4166_v61 = vadd.f32 %v7018_v29, %v4123_v56  ;;  %v7049_v22 = vadd.f32 %v4074_v58, %v3671_v14  ;;  %v4161_v62 = vadd.f32 %v4160_v60, %v4118_v57  ;;  %v7282_v56 = vld [vmem:[%s7690_s14 + $0x1a8] ss:$16 sps:$4 sm:$0xff]   ;;  %v7287_v29 = vld [vmem:[%s7690_s14 + $0x1c4] ss:$16 sps:$4 sm:$0xff]   ;;  %v7285_v57 = vld [vmem:[%s7690_s14 + $0x1c0] ss:$16 sps:$4 sm:$0xff]  }
 0x6dd   : > { %v8380_v0 = vadd.f32 %v7485_v63, %v7048_v53  ;;  %v7288_v53 = vld [vmem:[%s7690_s14 + $0x1c8] ss:$16 sps:$4 sm:$0xff]   ;;  %v7290_v58 = vld [vmem:[%s7690_s14 + $0x1cc] ss:$16 sps:$4 sm:$0xff]   ;;  %v7293_v60 = vld [vmem:[%s7690_s14 + $0x1e4] ss:$16 sps:$4 sm:$0xff]  }
 0x6de   : > { %v8382_v59 = vadd.f32 %v7486_v46, %v7049_v22  ;;  %v8384_v51 = vadd.f32 %v7487_v2, %v4161_v62  ;;  %v4078_v1 = vpop.f32.mrb[32].mxu0  ;;  %v8394_v11 = vadd.f32 %v7488_v7, %v4166_v61  ;;  %4791 = vmatpush1.bf16.msra.mxu1 %v7279_v55  ;;  %v7296_v61 = vld [vmem:[%s7690_s14 + $0x1ec] ss:$16 sps:$4 sm:$0xff]   ;;  %v7291_v22 = vld [vmem:[%s7690_s14 + $0x1e0] ss:$16 sps:$4 sm:$0xff]  }
 0x6df   : > { %v7050_v3 = vadd.f32 %v4078_v1, %v3667_v49  ;;  %v4080_v4 = vpop.f32.mrb[33].mxu0  ;;  %v4190_v5 = vmul.f32 %v8380_v0, %v8380_v0  ;;  %v7276_v49 = vld [vmem:[%s7690_s14 + $0x188] ss:$16 sps:$4 sm:$0xff]   ;;  %4792 = vmatprep.subr.bf16.mxu1 %v7287_v29  ;;  %v7299_v63 = vld [vmem:[%s7690_s14 + $0x204] ss:$16 sps:$4 sm:$0xff]  }
 0x6e0   : > { %v7051_v6 = vadd.f32 %v4080_v4, %v3671_v14  ;;  %v4177_v8 = vadd.f32 %v8382_v59, %v8380_v0  ;;  %v4178_v9 = vsel %vm1682_vm2, %v8384_v51, 0.0  ;;  %v4191_v10 = vmul.f32 %v8382_v59, %v8382_v59  ;;  %4879 = vmatpush1.bf16.msra.mxu0 %v7276_v49  ;;  %v7284_v14 = vld [vmem:[%s7690_s14 + $0x1ac] ss:$16 sps:$4 sm:$0xff]   ;;  %v7294_v62 = vld [vmem:[%s7690_s14 + $0x1e8] ss:$16 sps:$4 sm:$0xff]  }
 0x6e1   : > { %v8396_v21 = vadd.f32 %v7489_v18, %v7050_v3  ;;  %v4192_v13 = vmul.f32 %v8384_v51, %v8384_v51  ;;  %v4183_v39 = vsel %vm1682_vm2, %v8394_v11, 0.0  ;;  %v4195_v31 = vmul.f32 %v8394_v11, %v8394_v11  ;;  %4880 = vmatprep.subr.bf16.mxu0 %v7284_v14  ;;  %v7302_v46 = vld [vmem:[%s7690_s14 + $0x20c] ss:$16 sps:$4 sm:$0xff]   ;;  %v7303_v54 = vld [vmem:[%s7690_s14 + $0x220] ss:$16 sps:$4 sm:$0xff]  }
 0x6e2   : > { %v8400_v16 = vadd.f32 %v7490_v25, %v7051_v6  ;;  %v4179_v20 = vadd.f32 %v4178_v9, %v4177_v8  ;;  %v4196_v23 = vadd.f32 %v4191_v10, %v4190_v5  ;;  %4793 = vmatpush1.bf16.msra.mxu1 %v7285_v57  ;;  %v7306_v14 = vld [vmem:[%s7690_s14 + $0x228] ss:$16 sps:$4 sm:$0xff]   ;;  %v7313_v29 = vld [vmem:[%s7690_s14 + $0x240] ss:$16 sps:$4 sm:$0x3f]  }
 0x6e3   : > { %v4197_v24 = vsel %vm1682_vm2, %v4192_v13, 0.0  ;;  %v4193_v26 = vmul.f32 %v8396_v21, %v8396_v21  ;;  %v4202_v33 = vsel %vm1682_vm2, %v4195_v31, 0.0  ;;  %4794 = vmatprep.subr.bf16.mxu1 %v7293_v60  ;;  %v7314_v57 = vld [vmem:[%s7690_s14 + $0x248] ss:$16 sps:$4 sm:$0x3f]  }
 0x6e4   : > { %4180 = vadd.xlane.f32.xlu0 %v4179_v20  ;;  %v4198_v27 = vadd.f32 %v4197_v24, %v4196_v23  ;;  %v4182_v28 = vadd.f32 %v8400_v16, %v8396_v21  ;;  %v4194_v12 = vmul.f32 %v8400_v16, %v8400_v16  ;;  %4881 = vmatpush1.bf16.msra.mxu0 %v7282_v56  ;;  %v4175_v23 = vld [vmem:[%s8834_s0] sm:$0x7] }
 0x6e5   : > { %4882 = vmatprep.subr.bf16.mxu0 %v7290_v58  ;;  %v4176_v24 = vld [vmem:[%s8835_s20] sm:$0x7]  ;;  %v4240_v49 = vrot.slane %v4175_v23, %v7955_v48  ;;  %v7311_v58 = vld [vmem:[%s7690_s14 + $0x24c] ss:$16 sps:$4 sm:$0x3f]  }
 0x6e6   : > { %4199 = vadd.xlane.f32.xlu1 %v4198_v27  ;;  %v4184_v30 = vadd.f32 %v4183_v39, %v4182_v28  ;;  %v4201_v32 = vadd.f32 %v4194_v12, %v4193_v26  ;;  %4795 = vmatpush1.bf16.msra.mxu1 %v7291_v22  ;;  %v4236_v28 = vrot.slane %v4175_v23, %v7981_v50 }
 0x6e7   : > { %4809 = vmatprep.subr.bf16.mxu1 %v7299_v63  ;;  %v4232_v12 = vrot.slane %v4175_v23, %v7997_v15  ;;  %v4759_v63 = vsel %vm1689_vm1, %v7314_v57, 0  ;;  %v7357_v23 = vld [vmem:[%s7704_s16 + $0x110] ss:$12 sps:$4 sm:$0xff]  }
 0x6e8   : > { %4185 = vadd.xlane.f32.xlu0 %v4184_v30  ;;  %v4203_v35 = vadd.f32 %v4202_v33, %v4201_v32  ;;  %4883 = vmatpush1.bf16.msra.mxu0 %v7288_v53  ;;  %v4258_v30 = vrot.slane %v4176_v24, %v7981_v50  ;;  %v4254_v33 = vrot.slane %v4176_v24, %v7997_v15  ;;  %v7309_v53 = vld [vmem:[%s7690_s14 + $0x244] ss:$16 sps:$4 sm:$0x3f]   ;;  %v7369_v57 = vld [vmem:[%s7704_s16 + $0x150] ss:$12 sps:$4 sm:$0xff]  }
 0x6e9   : > { %4884 = vmatprep.subr.bf16.mxu0 %v7296_v61  ;;  %v4262_v61 = vrot.slane %v4176_v24, %v7955_v48  ;;  %v7324_v24 = vld [vmem:[%s7704_s16 + $0x48] ss:$12 sps:$4 sm:$0xff]  }
 0x6ec   : > { %4204 = vadd.xlane.f32.xlu0 %v4203_v35  ;;  %4885 = vmatpush1.bf16.msra.mxu0 %v7294_v62  ;;  %v4753_v62 = vsel %vm1689_vm1, %v7313_v29, 0  ;;  %v7371_v29 = vld [vmem:[%s7704_s16 + $0x154] ss:$12 sps:$4 sm:$0xff]  }
 0x6ed   : > { %4899 = vmatprep.subr.bf16.mxu0 %v7302_v46  ;;  %v7317_v46 = vld [vmem:[%s7704_s16 + $0x4] ss:$12 sps:$4 sm:$0xff]  }
 0x771   : > { %v4181_v2 = vpop.xlane.xlu0 %4180 }
 0x772   : > { %v4188_v1 = vmul.f32 0.0033333334, %v4181_v2  ;;  %v7342_v2 = vld [vmem:[%s7704_s16 + $0xc8] ss:$12 sps:$4 sm:$0xff]  }
 0x773   : > { %v4200_v3 = vpop.xlane.xlu1 %4199 }
 0x774   : > { %v4206_v4 = vmul.f32 0.0033333334, %v4200_v3  ;;  %v4208_v5 = vmul.f32 %v4188_v1, %v4188_v1  ;;  %v4212_v26 = vsub.f32 %v8380_v0, %v4188_v1  ;;  %v4213_v27 = vsub.f32 %v8382_v59, %v4188_v1 }
 0x775   : > { %v4186_v6 = vpop.xlane.xlu0 %4185 }
 0x776   : > { %v8440_v8 = vmul.f32 0.0033333334, %v4186_v6  ;;  %v4210_v9 = vsub.f32 %v4206_v4, %v4208_v5  ;;  %v7315_v4 = vld [vmem:[%s7704_s16] ss:$12 sps:$4 sm:$0xff]   ;;  %v7343_v5 = vld [vmem:[%s7704_s16 + $0x8] ss:$12 sps:$4 sm:$0xff]  }
 0x777   : > { %v7320_v6 = vld [vmem:[%s7704_s16 + $0x1c] ss:$12 sps:$4 sm:$0xff]  }
 0x778   : > { %v4218_v10 = vadd.f32 1e-05, %v4210_v9  ;;  %v4209_v18 = vmul.f32 %v8440_v8, %v8440_v8  ;;  %v4215_v0 = vsub.f32 %v8396_v21, %v8440_v8  ;;  %v4216_v59 = vsub.f32 %v8400_v16, %v8440_v8 }
 0x779   : > { %v4205_v7 = vpop.xlane.xlu0 %4204  ;;  %v4214_v21 = vsub.f32 %v8384_v51, %v4188_v1  ;;  %v4217_v60 = vsub.f32 %v8394_v11, %v8440_v8  ;;  %v7347_v8 = vld [vmem:[%s7704_s16 + $0xe0] ss:$12 sps:$4 sm:$0xff]  }
 0x77a   : > { %v4207_v13 = vmul.f32 0.0033333334, %v4205_v7  ;;  %7475 = vrsqrt.f32 %v4218_v10  ;;  %v7318_v10 = vld [vmem:[%s7704_s16 + $0x18] ss:$12 sps:$4 sm:$0xff]   ;;  %v7348_v7 = vld [vmem:[%s7704_s16 + $0x20] ss:$12 sps:$4 sm:$0xff]  }
 0x77c   : > { %v4211_v25 = vsub.f32 %v4207_v13, %v4209_v18  ;;  %v7323_v18 = vld [vmem:[%s7704_s16 + $0x34] ss:$12 sps:$4 sm:$0xff]   ;;  %v7352_v13 = vld [vmem:[%s7704_s16 + $0xf8] ss:$12 sps:$4 sm:$0xff]  }
 0x77e   : > { %v4219_v20 = vadd.f32 1e-05, %v4211_v25  ;;  %v7353_v25 = vld [vmem:[%s7704_s16 + $0x38] ss:$12 sps:$4 sm:$0xff]  }
 0x780   : > { %7477 = vrsqrt.f32 %v4219_v20  ;;  %v7326_v20 = vld [vmem:[%s7704_s16 + $0x4c] ss:$12 sps:$4 sm:$0xff]  }
 0x784   : > { %v7476_v39 = vpop.eup %7475 }
 0x785   : > { %v4223_v31 = vmul.f32 %v7476_v39, %v4213_v27  ;;  %v4222_v32 = vmul.f32 %v7476_v39, %v4212_v26  ;;  %v4224_v55 = vmul.f32 %v7476_v39, %v4214_v21  ;;  %v7358_v26 = vld [vmem:[%s7704_s16 + $0x50] ss:$12 sps:$4 sm:$0xff]   ;;  %v7363_v39 = vld [vmem:[%s7704_s16 + $0x68] ss:$12 sps:$4 sm:$0xff]  }
 0x786   : > { %v7329_v27 = vld [vmem:[%s7704_s16 + $0x64] ss:$12 sps:$4 sm:$0xff]  }
 0x787   : > { %v4245_v35 = vmul.f32 %v4236_v28, %v4223_v31  ;;  %v4244_v36 = vmul.f32 %v4232_v12, %v4222_v32  ;;  %v4246_v22 = vmul.f32 %v4240_v49, %v4224_v55  ;;  %v7332_v31 = vld [vmem:[%s7704_s16 + $0x7c] ss:$12 sps:$4 sm:$0xff]   ;;  %v7330_v32 = vld [vmem:[%s7704_s16 + $0x78] ss:$12 sps:$4 sm:$0xff]  }
 0x788   : > { %v7349_v21 = vld [vmem:[%s7704_s16 + $0xf0] ss:$12 sps:$4 sm:$0xff]   ;;  %v7364_v55 = vld [vmem:[%s7704_s16 + $0x138] ss:$12 sps:$4 sm:$0xff]  }
 0x789   : > { %v8464_v38 = vadd.f32 %v4258_v30, %v4245_v35  ;;  %v8468_v41 = vadd.f32 %v4254_v33, %v4244_v36  ;;  %v8503_v1 = vadd.f32 %v4262_v61, %v4246_v22  ;;  %v7335_v35 = vld [vmem:[%s7704_s16 + $0x94] ss:$12 sps:$4 sm:$0xff]   ;;  %v7372_v36 = vld [vmem:[%s7704_s16 + $0x158] ss:$12 sps:$4 sm:$0xff]  }
 0x78a   : > { %v7478_v37 = vpop.eup %7477  ;;  %v7381_v22 = vld [vmem:[%s7704_s16 + $0x184] ss:$12 sps:$4 sm:$0xff]  }
 0x78b   : > { %v4226_v44 = vmul.f32 %v7478_v37, %v4216_v59  ;;  %v4225_v45 = vmul.f32 %v7478_v37, %v4215_v0  ;;  %4796 = vmatprep.mubr.f32.mxu1 %v8464_v38  ;;  %4886 = vmatprep.mubr.f32.mxu0 %v8464_v38  ;;  %v4227_v11 = vmul.f32 %v7478_v37, %v4217_v60  ;;  %v7333_v0 = vld [vmem:[%s7704_s16 + $0x90] ss:$12 sps:$4 sm:$0xff]   ;;  %v7373_v59 = vld [vmem:[%s7704_s16 + $0x98] ss:$12 sps:$4 sm:$0xff]   ;;  %v7374_v60 = vld [vmem:[%s7704_s16 + $0x168] ss:$12 sps:$4 sm:$0xff]  }
 0x78c   : > { %4797 = vmatmul.mubr.f32.vlgmr.msra.gmra.mrb[28].mxu1 %v8468_v41  ;;  %4887 = vmatmul.mubr.f32.vlgmr.msra.gmra.mrb[34].mxu0 %v8468_v41  ;;  %v7338_v37 = vld [vmem:[%s7704_s16 + $0xac] ss:$12 sps:$4 sm:$0xff]  }
 0x78d   : > { %v4248_v16 = vmul.f32 %v4236_v28, %v4226_v44  ;;  %v4247_v47 = vmul.f32 %v4232_v12, %v4225_v45  ;;  %4810 = vmatpush1.bf16.msra.mxu1 %v7297_v52  ;;  %4900 = vmatpush1.bf16.msra.mxu0 %v7300_v40  ;;  %v4249_v3 = vmul.f32 %v4240_v49, %v4227_v11  ;;  %v7362_v28 = vld [vmem:[%s7704_s16 + $0x128] ss:$12 sps:$4 sm:$0xff]   ;;  %v7327_v12 = vld [vmem:[%s7704_s16 + $0x60] ss:$12 sps:$4 sm:$0xff]   ;;  %v7341_v40 = vld [vmem:[%s7704_s16 + $0xc4] ss:$12 sps:$4 sm:$0xff]  }
 0x78e   : > { %4811 = vmatprep.subr.bf16.mxu1 %v7305_v42  ;;  %4901 = vmatprep.subr.bf16.mxu0 %v7308_v43  ;;  %v7336_v52 = vld [vmem:[%s7704_s16 + $0xa8] ss:$12 sps:$4 sm:$0xff]   ;;  %v7339_v42 = vld [vmem:[%s7704_s16 + $0xc0] ss:$12 sps:$4 sm:$0xff]   ;;  %v7344_v44 = vld [vmem:[%s7704_s16 + $0xd8] ss:$12 sps:$4 sm:$0xff]  }
 0x78f   : > { %v8480_v56 = vadd.f32 %v4258_v30, %v4248_v16  ;;  %v8482_v51 = vadd.f32 %v4254_v33, %v4247_v47  ;;  %v8515_v9 = vadd.f32 %v4262_v61, %v4249_v3  ;;  %v7367_v30 = vld [vmem:[%s7704_s16 + $0x140] ss:$12 sps:$4 sm:$0xff]   ;;  %v7346_v43 = vld [vmem:[%s7704_s16 + $0xdc] ss:$12 sps:$4 sm:$0xff]   ;;  %v7361_v49 = vld [vmem:[%s7704_s16 + $0x124] ss:$12 sps:$4 sm:$0xff]  }
 0x790   : > { %v7368_v33 = vld [vmem:[%s7704_s16 + $0x80] ss:$12 sps:$4 sm:$0xff]   ;;  %v7354_v47 = vld [vmem:[%s7704_s16 + $0x108] ss:$12 sps:$4 sm:$0xff]   ;;  %v7378_v61 = vld [vmem:[%s7704_s16 + $0xb0] ss:$12 sps:$4 sm:$0xff]  }
 0x791   : > { %4802 = vmatprep.mubr.f32.mxu1 %v8480_v56  ;;  %4892 = vmatprep.mubr.f32.mxu0 %v8480_v56  ;;  %v7351_v45 = vld [vmem:[%s7704_s16 + $0xf4] ss:$12 sps:$4 sm:$0xff]   ;;  %v7356_v16 = vld [vmem:[%s7704_s16 + $0x10c] ss:$12 sps:$4 sm:$0xff]  }
 0x792   : > { %4812 = vmatpush1.bf16.msra.mxu1 %v7303_v54  ;;  %4902 = vmatpush1.bf16.msra.mxu0 %v7306_v14  ;;  %v7359_v54 = vld [vmem:[%s7704_s16 + $0x120] ss:$12 sps:$4 sm:$0xff]   ;;  %v7366_v14 = vld [vmem:[%s7704_s16 + $0x13c] ss:$12 sps:$4 sm:$0xff]  }
 0x793   : > { %4803 = vmatmul.mubr.f32.gmra.mrb[30].mxu1 %v8482_v51  ;;  %4893 = vmatmul.mubr.f32.gmra.mrb[36].mxu0 %v8482_v51 }
 0x794   : > { %6676 = vmatprep.subr.msk.bf16.mxu1 %vm1689_vm1, %v7309_v53  ;;  %6679 = vmatprep.subr.msk.bf16.mxu0 %vm1689_vm1, %v7311_v58  ;;  %v7376_v53 = vld [vmem:[%s7704_s16 + $0x16c] ss:$12 sps:$4 sm:$0xff]   ;;  %v7377_v58 = vld [vmem:[%s7704_s16 + $0x170] ss:$12 sps:$4 sm:$0xff]  }
 0x795   : > { %4841 = vmatprep.mubr.f32.mxu1 %v7548_v34  ;;  %4931 = vmatprep.mubr.f32.mxu0 %v7548_v34 }
 0x796   : > { %4814 = vmatpush1.bf16.msra.mxu1 %v4753_v62  ;;  %4904 = vmatpush1.bf16.msra.mxu0 %v4759_v63  ;;  %v7382_v62 = vld [vmem:[%s7704_s16 + $0x248] ss:$12 sps:$4 sm:$0xff]   ;;  %v8566_v63 = vld [vmem:[%s7695_s3] sm:$0xf] }
 0x797   : > { %5609 = vmatprep.subr.bf16.mxu1 %v7317_v46  ;;  %6863 = vmatprep.subr.bf16.mxu0 %v7342_v2  ;;  %v4353_v11 = vrot.slane %v8566_v63, %v7997_v15  ;;  %v4357_v46 = vrot.slane %v8566_v63, %v7981_v50 }
 0x799   : > { %6677 = vmatmul.mubr.msk.f32.vlgmr.msra.gmra.mrb[28].mxu1 %vm1682_vm2, %v8503_v1  ;;  %6680 = vmatmul.mubr.msk.f32.vlgmr.msra.gmra.mrb[34].mxu0 %vm1682_vm2, %v8503_v1 }
 0x79a   : > { %4847 = vmatprep.mubr.f32.mxu1 %v7548_v34  ;;  %4937 = vmatprep.mubr.f32.mxu0 %v7548_v34  ;;  %v7321_v34 = vld [vmem:[%s7704_s16 + $0x30] ss:$12 sps:$4 sm:$0xff]  }
 0x79b   : > { %5610 = vmatpush1.bf16.msra.mxu1 %v7315_v4  ;;  %6864 = vmatpush3.bf16.msra.mxu0 %v7343_v5 }
 0x79c   : > { %5611 = vmatprep.subr.bf16.mxu1 %v7320_v6  ;;  %6865 = vmatprep.subr.bf16.mxu0 %v7347_v8 }
 0x79d   : > { %6678 = vmatmul.mubr.msk.f32.gmra.mrb[30].mxu1 %vm1682_vm2, %v8515_v9  ;;  %6681 = vmatmul.mubr.msk.f32.gmra.mrb[36].mxu0 %vm1682_vm2, %v8515_v9 }
 0x79f   : > { %5612 = vmatpush1.bf16.msra.mxu1 %v7318_v10  ;;  %6866 = vmatpush3.bf16.msra.mxu0 %v7348_v7  ;;  %v8577_v10 = vrot.slane %v8566_v63, %v904_v19  ;;  %v7379_v7 = vld [vmem:[%s7704_s16 + $0x180] ss:$12 sps:$4 sm:$0xff]  }
 0x7a0   : > { %5613 = vmatprep.subr.bf16.mxu1 %v7323_v18  ;;  %6867 = vmatprep.subr.bf16.mxu0 %v7352_v13  ;;  %v7383_v18 = vld [vmem:[%s7704_s16 + $0x188] ss:$12 sps:$4 sm:$0xff]  }
 0x7a3   : > { %5614 = vmatpush1.bf16.msra.mxu1 %v7321_v34  ;;  %6868 = vmatpush3.bf16.msra.mxu0 %v7353_v25 }
 0x7a4   : > { %5615 = vmatprep.subr.bf16.mxu1 %v7326_v20  ;;  %6869 = vmatprep.subr.bf16.mxu0 %v7357_v23  ;;  %v7386_v20 = vld [vmem:[%s7704_s16 + $0x19c] ss:$12 sps:$4 sm:$0xff]  }
 0x7a7   : > { %5616 = vmatpush1.bf16.msra.mxu1 %v7324_v24  ;;  %6870 = vmatpush3.bf16.msra.mxu0 %v7358_v26 }
 0x7a8   : > { %5617 = vmatprep.subr.bf16.mxu1 %v7329_v27  ;;  %6871 = vmatprep.subr.bf16.mxu0 %v7362_v28  ;;  %v7387_v28 = vld [vmem:[%s7704_s16 + $0x260] ss:$12 sps:$4 sm:$0xff]  }
 0x7ab   : > { %5618 = vmatpush1.bf16.msra.mxu1 %v7327_v12  ;;  %6872 = vmatpush3.bf16.msra.mxu0 %v7363_v39  ;;  %v7384_v39 = vld [vmem:[%s7704_s16 + $0x198] ss:$12 sps:$4 sm:$0xff]  }
 0x7ac   : > { %5619 = vmatprep.subr.bf16.mxu1 %v7332_v31  ;;  %6873 = vmatprep.subr.bf16.mxu0 %v7367_v30  ;;  %v7388_v31 = vld [vmem:[%s7704_s16 + $0x1a0] ss:$12 sps:$4 sm:$0xff]  }
 0x7af   : > { %5620 = vmatpush1.bf16.msra.mxu1 %v7330_v32  ;;  %6874 = vmatpush3.bf16.msra.mxu0 %v7368_v33  ;;  %v7391_v32 = vld [vmem:[%s7704_s16 + $0x1b4] ss:$12 sps:$4 sm:$0xff]   ;;  %v7392_v33 = vld [vmem:[%s7704_s16 + $0x278] ss:$12 sps:$4 sm:$0xff]  }
 0x7b0   : > { %5621 = vmatprep.subr.bf16.mxu1 %v7335_v35  ;;  %6875 = vmatprep.subr.bf16.mxu0 %v7372_v36  ;;  %v7389_v36 = vld [vmem:[%s7704_s16 + $0x1b0] ss:$12 sps:$4 sm:$0xff]  }
 0x7b3   : > { %5622 = vmatpush1.bf16.msra.mxu1 %v7333_v0  ;;  %6876 = vmatpush3.bf16.msra.mxu0 %v7373_v59  ;;  %v7393_v0 = vld [vmem:[%s7704_s16 + $0x1b8] ss:$12 sps:$4 sm:$0xff]  }
 0x7b4   : > { %5623 = vmatprep.subr.bf16.mxu1 %v7338_v37  ;;  %6877 = vmatprep.subr.bf16.mxu0 %v7377_v58  ;;  %v7396_v59 = vld [vmem:[%s7704_s16 + $0x1cc] ss:$12 sps:$4 sm:$0xff]   ;;  %v7397_v37 = vld [vmem:[%s7704_s16 + $0x290] ss:$12 sps:$4 sm:$0xff]  }
 0x7b5   : > { %v7417_v58 = vld [vmem:[%s7704_s16 + $0x2f0] ss:$12 sps:$4 sm:$0xff]  }
 0x7b7   : > { %5624 = vmatpush1.bf16.msra.mxu1 %v7336_v52  ;;  %6878 = vmatpush3.bf16.msra.mxu0 %v7378_v61  ;;  %v7394_v52 = vld [vmem:[%s7704_s16 + $0x1c8] ss:$12 sps:$4 sm:$0xff]   ;;  %v7418_v61 = vld [vmem:[%s7704_s16 + $0x230] ss:$12 sps:$4 sm:$0xff]  }
 0x7b8   : > { %5625 = vmatprep.subr.bf16.mxu1 %v7341_v40  ;;  %6885 = vmatprep.subr.bf16.mxu0 %v7382_v62  ;;  %v7398_v40 = vld [vmem:[%s7704_s16 + $0x1d0] ss:$12 sps:$4 sm:$0xff]  }
 0x7b9   : > { %v7421_v62 = vld [vmem:[%s7704_s16 + $0x244] ss:$12 sps:$4 sm:$0xff]  }
 0x7bb   : > { %5626 = vmatpush1.bf16.msra.mxu1 %v7339_v42  ;;  %v7401_v42 = vld [vmem:[%s7704_s16 + $0x1e4] ss:$12 sps:$4 sm:$0xff]  }
 0x7bc   : > { %5627 = vmatprep.subr.bf16.mxu1 %v7346_v43  ;;  %v7402_v43 = vld [vmem:[%s7704_s16 + $0x2a8] ss:$12 sps:$4 sm:$0xff]  }
 0x7bf   : > { %5628 = vmatpush1.bf16.msra.mxu1 %v7344_v44  ;;  %v7399_v44 = vld [vmem:[%s7704_s16 + $0x1e0] ss:$12 sps:$4 sm:$0xff]  }
 0x7c0   : > { %5629 = vmatprep.subr.bf16.mxu1 %v7351_v45  ;;  %v7403_v45 = vld [vmem:[%s7704_s16 + $0x1e8] ss:$12 sps:$4 sm:$0xff]  }
 0x7c3   : > { %5630 = vmatpush1.bf16.msra.mxu1 %v7349_v21  ;;  %v7406_v21 = vld [vmem:[%s7704_s16 + $0x1fc] ss:$12 sps:$4 sm:$0xff]  }
 0x7c4   : > { %5631 = vmatprep.subr.bf16.mxu1 %v7356_v16  ;;  %v7407_v16 = vld [vmem:[%s7704_s16 + $0x2c0] ss:$12 sps:$4 sm:$0xff]  }
 0x7c7   : > { %5632 = vmatpush1.bf16.msra.mxu1 %v7354_v47  ;;  %v7404_v47 = vld [vmem:[%s7704_s16 + $0x1f8] ss:$12 sps:$4 sm:$0xff]  }
 0x7c8   : > { %5633 = vmatprep.subr.bf16.mxu1 %v7361_v49  ;;  %v7408_v49 = vld [vmem:[%s7704_s16 + $0x200] ss:$12 sps:$4 sm:$0xff]  }
 0x7cb   : > { %5634 = vmatpush1.bf16.msra.mxu1 %v7359_v54  ;;  %v7411_v54 = vld [vmem:[%s7704_s16 + $0x214] ss:$12 sps:$4 sm:$0xff]  }
 0x7cc   : > { %5635 = vmatprep.subr.bf16.mxu1 %v7366_v14  ;;  %v7412_v14 = vld [vmem:[%s7704_s16 + $0x2d8] ss:$12 sps:$4 sm:$0xff]  }
 0x7cf   : > { %5636 = vmatpush1.bf16.msra.mxu1 %v7364_v55  ;;  %v7409_v55 = vld [vmem:[%s7704_s16 + $0x210] ss:$12 sps:$4 sm:$0xff]  }
 0x7d0   : > { %5637 = vmatprep.subr.bf16.mxu1 %v7371_v29  ;;  %v7413_v29 = vld [vmem:[%s7704_s16 + $0x218] ss:$12 sps:$4 sm:$0xff]  }
 0x7d3   : > { %5638 = vmatpush1.bf16.msra.mxu1 %v7369_v57  ;;  %v4361_v57 = vrot.slane %v8566_v63, %v7955_v48 }
 0x7d4   : > { %5639 = vmatprep.subr.bf16.mxu1 %v7376_v53  ;;  %v7416_v53 = vld [vmem:[%s7704_s16 + $0x22c] ss:$12 sps:$4 sm:$0xff]  }
 0x7d7   : > { %5640 = vmatpush1.bf16.msra.mxu1 %v7374_v60  ;;  %v7414_v60 = vld [vmem:[%s7704_s16 + $0x228] ss:$12 sps:$4 sm:$0xff]  }
 0x7d8   : > { %5654 = vmatprep.subr.bf16.mxu1 %v7381_v22 }
 0x86c   : > { %v4843_v2 = vpop.f32.mrb[28].mxu1  ;;  %v8572_v3 = vpop.f32.mrb[34].mxu0 }
 0x86d   : > { %v7052_v4 = vadd.f32 %v4843_v2, %v4353_v11  ;;  %v4845_v5 = vpop.f32.mrb[29].mxu1  ;;  %v4935_v6 = vpop.f32.mrb[35].mxu0  ;;  %v7056_v22 = vadd.f32 %v8572_v3, %v4361_v57 }
 0x86e   : > { %v7053_v8 = vadd.f32 %v4845_v5, %v4357_v46  ;;  %v7057_v17 = vadd.f32 %v4935_v6, %v8577_v10  ;;  %v7422_v5 = vld [vmem:[%s7704_s16 + $0x258] ss:$12 sps:$4 sm:$0xff]  }
 0x86f   : > { %v4944_v23 = vmax.f32 %v7052_v4, 0.0  ;;  %v7424_v4 = vld [vmem:[%s7704_s16 + $0x25c] ss:$12 sps:$4 sm:$0xff]  }
 0x870   : > { %v4945_v13 = vmax.f32 %v7053_v8, 0.0  ;;  %v4849_v34 = vpop.f32.mrb[30].mxu1  ;;  %v8581_v25 = vpop.f32.mrb[36].mxu0  ;;  %v4947_v35 = vmax.f32 %v7057_v17, 0.0  ;;  %v7427_v8 = vld [vmem:[%s7704_s16 + $0x274] ss:$12 sps:$4 sm:$0xff]  }
 0x871   : > { %v7054_v24 = vadd.f32 %v4849_v34, %v4353_v11  ;;  %v4851_v26 = vpop.f32.mrb[31].mxu1  ;;  %v8584_v27 = vpop.f32.mrb[37].mxu0  ;;  %v7419_v11 = vld [vmem:[%s7704_s16 + $0x240] ss:$12 sps:$4 sm:$0xff]   ;;  %v7058_v2 = vadd.f32 %v8581_v25, %v4361_v57  ;;  %v7436_v25 = vld [vmem:[%s7704_s16 + $0x2bc] ss:$12 sps:$4 sm:$0xff]  }
 0x872   : > { %v7055_v12 = vadd.f32 %v4851_v26, %v4357_v46  ;;  %5641 = vmatprep.mubr.f32.mxu1 %v4945_v13  ;;  %5731 = vmatprep.mubr.f32.mxu0 %v4945_v13  ;;  %v7059_v63 = vadd.f32 %v8584_v27, %v8577_v10  ;;  %v4946_v46 = vmax.f32 %v7056_v22, 0.0  ;;  %v7425_v10 = vld [vmem:[%s7704_s16 + $0x270] ss:$12 sps:$4 sm:$0xff]   ;;  %v7431_v34 = vld [vmem:[%s7704_s16 + $0x2a0] ss:$12 sps:$4 sm:$0xff]  }
 0x873   : > { %5642 = vmatmul.mubr.f32.vlgmr.msra.gmra.mrb[32].mxu1 %v4944_v23  ;;  %5732 = vmatmul.mubr.f32.vlgmr.msra.gmra.mrb[38].mxu0 %v4944_v23  ;;  %v4948_v30 = vmax.f32 %v7054_v24, 0.0  ;;  %v4950_v6 = vmax.f32 %v7058_v2, 0.0  ;;  %v7433_v13 = vld [vmem:[%s7704_s16 + $0x2a4] ss:$12 sps:$4 sm:$0xff]   ;;  %v7439_v23 = vld [vmem:[%s7704_s16 + $0x2d4] ss:$12 sps:$4 sm:$0xff]  }
 0x874   : > { %v4949_v19 = vmax.f32 %v7055_v12, 0.0  ;;  %5655 = vmatpush1.bf16.msra.mxu1 %v7379_v7  ;;  %6886 = vmatpush3.bf16.msra.mxu0 %v7383_v18  ;;  %v4951_v3 = vmax.f32 %v7059_v63, 0.0  ;;  %v7430_v7 = vld [vmem:[%s7704_s16 + $0x28c] ss:$12 sps:$4 sm:$0xff]   ;;  %v7428_v18 = vld [vmem:[%s7704_s16 + $0x288] ss:$12 sps:$4 sm:$0xff]  }
 0x875   : > { %5656 = vmatprep.subr.bf16.mxu1 %v7386_v20  ;;  %6887 = vmatprep.subr.bf16.mxu0 %v7387_v28  ;;  %v7434_v20 = vld [vmem:[%s7704_s16 + $0x2b8] ss:$12 sps:$4 sm:$0xff]   ;;  %v7437_v24 = vld [vmem:[%s7704_s16 + $0x2d0] ss:$12 sps:$4 sm:$0xff]   ;;  %v7440_v27 = vld [vmem:[%s7704_s16 + $0x2e8] ss:$12 sps:$4 sm:$0xff]  }
 0x876   : > { %5647 = vmatprep.mubr.f32.mxu1 %v4949_v19  ;;  %5736 = vmatprep.mubr.f32.mxu0 %v4949_v19  ;;  %v7442_v26 = vld [vmem:[%s7704_s16 + $0x2ec] ss:$12 sps:$4 sm:$0xff]  }
 0x877   : > { %5648 = vmatmul.mubr.f32.gmra.mrb[34].mxu1 %v4948_v30  ;;  %5737 = vmatmul.mubr.f32.gmra.mrb[40].mxu0 %v4948_v30  ;;  %v5080_v30 = vld [vmem:[%s695_s24] sm:$0x7] }
 0x878   : > { %5657 = vmatpush1.bf16.msra.mxu1 %v7384_v39  ;;  %6888 = vmatpush3.bf16.msra.mxu0 %v7388_v31 }
 0x879   : > { %5686 = vmatprep.mubr.f32.mxu1 %v4947_v35  ;;  %5774 = vmatprep.mubr.f32.mxu0 %v4947_v35 }
 0x87a   : > { %5658 = vmatprep.subr.bf16.mxu1 %v7391_v32  ;;  %6889 = vmatprep.subr.bf16.mxu0 %v7392_v33  ;;  %v5093_v32 = vrot.slane %v5080_v30, %v7955_v48 }
 0x87c   : > { %5659 = vmatpush1.bf16.msra.mxu1 %v7389_v36  ;;  %6890 = vmatpush3.bf16.msra.mxu0 %v7393_v0 }
 0x87d   : > { %5660 = vmatprep.subr.bf16.mxu1 %v7396_v59  ;;  %6891 = vmatprep.subr.bf16.mxu0 %v7397_v37 }
 0x880   : > { %5661 = vmatpush1.bf16.msra.mxu1 %v7394_v52  ;;  %6892 = vmatpush3.bf16.msra.mxu0 %v7398_v40 }
 0x881   : > { %5662 = vmatprep.subr.bf16.mxu1 %v7401_v42  ;;  %6893 = vmatprep.subr.bf16.mxu0 %v7402_v43 }
 0x884   : > { %5663 = vmatpush1.bf16.msra.mxu1 %v7399_v44  ;;  %6894 = vmatpush3.bf16.msra.mxu0 %v7403_v45  ;;  %v5085_v44 = vrot.slane %v5080_v30, %v7997_v15  ;;  %v5089_v45 = vrot.slane %v5080_v30, %v7981_v50  ;;  %v5792_v30 = vld [vmem:[%s703_s19] sm:$0x7] }
 0x885   : > { %5664 = vmatprep.subr.bf16.mxu1 %v7406_v21  ;;  %6895 = vmatprep.subr.bf16.mxu0 %v7407_v16 }
 0x888   : > { %5665 = vmatpush1.bf16.msra.mxu1 %v7404_v47  ;;  %6896 = vmatpush3.bf16.msra.mxu0 %v7408_v49 }
 0x889   : > { %5666 = vmatprep.subr.bf16.mxu1 %v7411_v54  ;;  %6897 = vmatprep.subr.bf16.mxu0 %v7412_v14 }
 0x88c   : > { %5667 = vmatpush1.bf16.msra.mxu1 %v7409_v55  ;;  %6898 = vmatpush3.bf16.msra.mxu0 %v7413_v29 }
 0x88d   : > { %5668 = vmatprep.subr.bf16.mxu1 %v7416_v53  ;;  %6899 = vmatprep.subr.bf16.mxu0 %v7417_v58 }
 0x890   : > { %5669 = vmatpush1.bf16.msra.mxu1 %v7414_v60  ;;  %6900 = vmatpush3.bf16.msra.mxu0 %v7418_v61 }
 0x891   : > { %5670 = vmatprep.subr.bf16.mxu1 %v7421_v62 }
 0x893   : > { %5775 = vmatmul.mubr.f32.vlgmr.msra.gmra.mrb[42].mxu0 %v4946_v46 }
 0x894   : > { %5671 = vmatpush1.bf16.msra.mxu1 %v7419_v11  ;;  %5779 = vmatprep.mubr.f32.mxu0 %v4951_v3 }
 0x895   : > { %5672 = vmatprep.subr.bf16.mxu1 %v7424_v4 }
 0x897   : > { %5780 = vmatmul.mubr.f32.gmra.mrb[44].mxu0 %v4950_v6 }
 0x898   : > { %5673 = vmatpush1.bf16.msra.mxu1 %v7422_v5 }
 0x899   : > { %5674 = vmatprep.subr.bf16.mxu1 %v7427_v8 }
 0x89c   : > { %5675 = vmatpush1.bf16.msra.mxu1 %v7425_v10 }
 0x89d   : > { %5676 = vmatprep.subr.bf16.mxu1 %v7430_v7 }
 0x8a0   : > { %5677 = vmatpush1.bf16.msra.mxu1 %v7428_v18 }
 0x8a1   : > { %5678 = vmatprep.subr.bf16.mxu1 %v7433_v13 }
 0x8a4   : > { %5679 = vmatpush1.bf16.msra.mxu1 %v7431_v34 }
 0x8a5   : > { %5680 = vmatprep.subr.bf16.mxu1 %v7436_v25 }
 0x8a8   : > { %5681 = vmatpush1.bf16.msra.mxu1 %v7434_v20 }
 0x8a9   : > { %5682 = vmatprep.subr.bf16.mxu1 %v7439_v23 }
 0x8ac   : > { %5683 = vmatpush1.bf16.msra.mxu1 %v7437_v24 }
 0x8ad   : > { %5684 = vmatprep.subr.bf16.mxu1 %v7442_v26 }
 0x8b0   : > { %5685 = vmatpush1.bf16.msra.mxu1 %v7440_v27 }
 0x8b3   : > { %5687 = vmatmul.mubr.f32.vlgmr.msra.gmra.mrb[32].mxu1 %v4946_v46 }
 0x8b4   : > { %5692 = vmatprep.mubr.f32.mxu1 %v4951_v3 }
 0x8b7   : > { %5693 = vmatmul.mubr.f32.gmra.mrb[34].mxu1 %v4950_v6 }
 0x946   : > { %v6879_v28 = vpop.f32.mrb[38].mxu0 }
 0x947   : > { %v6880_v12 = vpop.f32.mrb[39].mxu0 }
 0x948   : > { %v6881_v17 = vadd.f32 %v6880_v12, %v6879_v28 }
 0x94a   : > { %v6882_v19 = vpop.f32.mrb[40].mxu0  ;;  %v5734_v36 = vadd.f32 %v6881_v17, %v5093_v32 }
 0x94b   : > { %v6883_v39 = vpop.f32.mrb[41].mxu0 }
 0x94c   : > { %v6884_v31 = vadd.f32 %v6883_v39, %v6882_v19 }
 0x94e   : > { %v5739_v40 = vadd.f32 %v6884_v31, %v5093_v32  ;;  %v5791_v31 = vld [vmem:[%s699_s25] sm:$0x7]  ;;  %s8836_s25 = sld [smem:[#allocation13_spill]] (!%p6778_p5) }
 0x94f   : > { %v5847_v32 = vrot.slane %v5791_v31, %v7997_v15 }
 0x966   : > { %v6901_v33 = vpop.f32.mrb[42].mxu0 }
 0x967   : > { %v6902_v35 = vpop.f32.mrb[43].mxu0 }
 0x968   : > { %v6903_v0 = vadd.f32 %v6902_v35, %v6901_v33  ;;  %v5851_v33 = vrot.slane %v5791_v31, %v7981_v50 }
 0x96a   : > { %v5777_v59 = vadd.f32 %v6903_v0, %v5734_v36  ;;  %v6904_v37 = vpop.f32.mrb[44].mxu0 }
 0x96b   : > { %v6905_v52 = vpop.f32.mrb[45].mxu0 }
 0x96c   : > { %v6906_v42 = vadd.f32 %v6905_v52, %v6904_v37  ;;  %v8645_v54 = vadd.f32 %v5777_v59, %v8503_v1  ;;  %v5855_v59 = vrot.slane %v5791_v31, %v7955_v48  ;;  %v5869_v52 = vrot.slane %v5792_v30, %v7997_v15 }
 0x96e   : > { %v5782_v43 = vadd.f32 %v6906_v42, %v5739_v40  ;;  %v5794_v1 = vsel %vm1682_vm2, %v8645_v54, 0.0  ;;  %v5873_v40 = vrot.slane %v5792_v30, %v7981_v50  ;;  %v5877_v42 = vrot.slane %v5792_v30, %v7955_v48  ;;  %v6779_v30 = vld [vmem:[%s8837_s26] ss:$0 sm:$0xff] (!%p6778_p5) }
 0x970   : > { %v8650_v62 = vadd.f32 %v5782_v43, %v8515_v9 }
 0x972   : > { %v5810_v5 = vmul.f32 %v8650_v62, %v8650_v62 }
 0x974   : > { %v5817_v10 = vsel %vm1682_vm2, %v5810_v5, 0.0  ;;  %v7498_v5 = vld [vmem:[%s8836_s25 + $0x18] sm:$0xff] (!%p6778_p5)  }
 0x986   : > { %v5688_v21 = vpop.f32.mrb[32].mxu1 }
 0x987   : > { %v7060_v16 = vadd.f32 %v5688_v21, %v5085_v44  ;;  %v5690_v47 = vpop.f32.mrb[33].mxu1 }
 0x988   : > { %v7061_v49 = vadd.f32 %v5690_v47, %v5089_v45 }
 0x989   : > { %v5785_v14 = vadd.f32 %v7060_v16, %v8468_v41  ;;  %v5807_v41 = vmul.f32 %v8645_v54, %v8645_v54 }
 0x98a   : > { %v5786_v55 = vadd.f32 %v7061_v49, %v8464_v38  ;;  %v5694_v29 = vpop.f32.mrb[34].mxu1 }
 0x98b   : > { %v7062_v57 = vadd.f32 %v5694_v29, %v5085_v44  ;;  %v5696_v53 = vpop.f32.mrb[35].mxu1  ;;  %v5805_v58 = vmul.f32 %v5785_v14, %v5785_v14  ;;  %v5812_v3 = vsel %vm1682_vm2, %v5807_v41, 0.0  ;;  %v7492_v41 = vld [vmem:[%s8836_s25] sm:$0xff] (!%p6778_p5)  }
 0x98c   : > { %v7063_v60 = vadd.f32 %v5696_v53, %v5089_v45  ;;  %v5793_v61 = vadd.f32 %v5786_v55, %v5785_v14  ;;  %v5806_v22 = vmul.f32 %v5786_v55, %v5786_v55 }
 0x98d   : > { %v8653_v63 = vadd.f32 %v7062_v57, %v8482_v51  ;;  %v5799_v51 = vsel %vm1682_vm2, %v8650_v62, 0.0 }
 0x98e   : > { %v5789_v38 = vadd.f32 %v7063_v60, %v8480_v56  ;;  %v5795_v11 = vadd.f32 %v5794_v1, %v5793_v61  ;;  %v5811_v46 = vadd.f32 %v5806_v22, %v5805_v58  ;;  %v7491_v1 = vld [vmem:[%s8836_s25 + $0x40] sm:$0xff] (!%p6778_p5)  }
 0x98f   : > { %v5808_v2 = vmul.f32 %v8653_v63, %v8653_v63  ;;  %6907 = vmatprep.subr.bf16.mxu0 (!%p6778_p5), %v7491_v1 }
 0x990   : > { %5796 = vadd.xlane.f32.xlu1 %v5795_v11  ;;  %v5798_v9 = vadd.f32 %v5789_v38, %v8653_v63  ;;  %v5809_v4 = vmul.f32 %v5789_v38, %v5789_v38  ;;  %v5813_v8 = vadd.f32 %v5812_v3, %v5811_v46  ;;  %v7493_v11 = vld [vmem:[%s8836_s25 + $0x48] sm:$0xff] (!%p6778_p5)   ;;  %6908 = vmatpush3.bf16.msra.mxu0 (!%p6778_p5), %v7492_v41  ;;  %v7497_v3 = vld [vmem:[%s8836_s25 + $0x58] sm:$0xff] (!%p6778_p5)  }
 0x991   : > { %6909 = vmatprep.subr.bf16.mxu0 (!%p6778_p5), %v7493_v11 }
 0x992   : > { %v5800_v6 = vadd.f32 %v5799_v51, %v5798_v9  ;;  %v5816_v56 = vadd.f32 %v5809_v4, %v5808_v2  ;;  %v7494_v2 = vld [vmem:[%s8836_s25 + $0x8] sm:$0xff] (!%p6778_p5)   ;;  %v7495_v9 = vld [vmem:[%s8836_s25 + $0x50] sm:$0xff] (!%p6778_p5)  }
 0x993   : > { %v7496_v51 = vld [vmem:[%s8836_s25 + $0x10] sm:$0xff] (!%p6778_p5)  }
 0x994   : > { %5801 = vadd.xlane.f32.xlu0 %v5800_v6  ;;  %5814 = vadd.xlane.f32.xlu1 %v5813_v8  ;;  %v5818_v7 = vadd.f32 %v5817_v10, %v5816_v56  ;;  %v7499_v6 = vld [vmem:[%s8836_s25 + $0x60] sm:$0xff] (!%p6778_p5)   ;;  %v7501_v10 = vld [vmem:[%s8836_s25 + $0x68] sm:$0xff] (!%p6778_p5)  }
 0x995   : > { %6910 = vmatpush3.bf16.msra.mxu0 (!%p6778_p5), %v7494_v2  ;;  %v7505_v8 = vld [vmem:[%s8836_s25 + $0x80] sm:$0xff] (!%p6778_p5)  }
 0x996   : > { %6911 = vmatprep.subr.bf16.mxu0 (!%p6778_p5), %v7495_v9  ;;  %v7500_v56 = vld [vmem:[%s8836_s25 + $0x20] sm:$0xff] (!%p6778_p5)  }
 0x998   : > { %5819 = vadd.xlane.f32.xlu0 %v5818_v7  ;;  %v7508_v7 = vld [vmem:[%s8836_s25 + $0x88] sm:$0xff] (!%p6778_p5)  }
 0x999   : > { %6912 = vmatpush3.bf16.msra.mxu0 (!%p6778_p5), %v7496_v51 }
 0x99a   : > { %6913 = vmatprep.subr.bf16.mxu0 (!%p6778_p5), %v7497_v3 }
 0x99d   : > { %6914 = vmatpush3.bf16.msra.mxu0 (!%p6778_p5), %v7498_v5 }
 0x99e   : > { %6915 = vmatprep.subr.bf16.mxu0 (!%p6778_p5), %v7499_v6 }
 0x9a1   : > { %6916 = vmatpush3.bf16.msra.mxu0 (!%p6778_p5), %v7500_v56 }
 0x9a2   : > { %6917 = vmatprep.subr.bf16.mxu0 (!%p6778_p5), %v7501_v10 }
 0xa1d   : > { %v5797_v18 = vpop.xlane.xlu1 %5796 }
 0xa1e   : > { %v5803_v13 = vmul.f32 0.0033333334, %v5797_v18  ;;  %v7509_v18 = vld [vmem:[%s8836_s25 + $0x90] sm:$0x3f] (!%p6778_p5)  }
 0xa20   : > { %v5823_v23 = vmul.f32 %v5803_v13, %v5803_v13  ;;  %v5827_v35 = vsub.f32 %v5785_v14, %v5803_v13  ;;  %v5828_v36 = vsub.f32 %v5786_v55, %v5803_v13  ;;  %v5829_v0 = vsub.f32 %v8645_v54, %v5803_v13  ;;  %v7502_v13 = vld [vmem:[%s8836_s25 + $0x28] sm:$0xff] (!%p6778_p5)  }
 0xa21   : > { %v5802_v34 = vpop.xlane.xlu0 %5801  ;;  %v5815_v25 = vpop.xlane.xlu1 %5814  ;;  %6918 = vmatpush3.bf16.msra.mxu0 (!%p6778_p5), %v7502_v13 }
 0xa22   : > { %v5804_v20 = vmul.f32 0.0033333334, %v5802_v34  ;;  %v5821_v24 = vmul.f32 0.0033333334, %v5815_v25  ;;  %v7503_v34 = vld [vmem:[%s8836_s25 + $0x70] sm:$0xff] (!%p6778_p5)  }
 0xa23   : > { %6919 = vmatprep.subr.bf16.mxu0 (!%p6778_p5), %v7503_v34 }
 0xa24   : > { %v5825_v26 = vsub.f32 %v5821_v24, %v5823_v23  ;;  %v5824_v12 = vmul.f32 %v5804_v20, %v5804_v20  ;;  %v5830_v21 = vsub.f32 %v8653_v63, %v5804_v20  ;;  %v5831_v55 = vsub.f32 %v5789_v38, %v5804_v20  ;;  %v7504_v23 = vld [vmem:[%s8836_s25 + $0x30] sm:$0xff] (!%p6778_p5)   ;;  %v7506_v24 = vld [vmem:[%s8836_s25 + $0x78] sm:$0xff] (!%p6778_p5)  }
 0xa25   : > { %v5820_v27 = vpop.xlane.xlu0 %5819  ;;  %v5832_v54 = vsub.f32 %v8650_v62, %v5804_v20  ;;  %v7558_v38 = vmov (!%p6778_p5), 0.0   ;;  %v6073_v20 = vsel (!%p6778_p5), %vm1689_vm1, %v7509_v18, 0  ;;  %6920 = vmatpush3.bf16.msra.mxu0 (!%p6778_p5), %v7504_v23 }
 0xa26   : > { %v5833_v28 = vadd.f32 1e-05, %v5825_v26  ;;  %v5822_v17 = vmul.f32 0.0033333334, %v5820_v27  ;;  %7019 = vmatprep.subr.bf16.mxu1 (!%p6778_p5), %v7558_v38  ;;  %7025 = vmatprep.mubr.msk.f32.mxu1 (!%p6778_p5), %vm7559_vm13, %v7558_v38  ;;  %v7507_v27 = vld [vmem:[%s8836_s25 + $0x38] sm:$0xff] (!%p6778_p5)  }
 0xa27   : > { %7020 = vmatpush3.bf16.msra.mxu1 (!%p6778_p5), %v7505_v8  ;;  %6921 = vmatprep.subr.bf16.mxu0 (!%p6778_p5), %v7506_v24 }
 0xa28   : > { %7479 = vrsqrt.f32 %v5833_v28  ;;  %v5826_v19 = vsub.f32 %v5822_v17, %v5824_v12  ;;  %7021 = vmatprep.subr.bf16.mxu1 (!%p6778_p5), %v7558_v38 }
 0xa29   : > { %6922 = vmatpush3.bf16.msra.mxu0 (!%p6778_p5), %v7507_v27 }
 0xa2a   : > { %v5834_v39 = vadd.f32 1e-05, %v5826_v19 }
 0xa2b   : > { %7022 = vmatpush3.bf16.msra.mxu1 (!%p6778_p5), %v7508_v7 }
 0xa2c   : > { %7481 = vrsqrt.f32 %v5834_v39  ;;  %7023 = vmatprep.subr.bf16.mxu1 (!%p6778_p5), %v7558_v38 }
 0xa2f   : > { %7024 = vmatpush3.bf16.msra.mxu1 (!%p6778_p5), %v6073_v20 }
 0xa32   : > { %v7480_v37 = vpop.eup %7479 }
 0xa33   : > { %v5837_v43 = vmul.f32 %v7480_v37, %v5827_v35  ;;  %v5838_v44 = vmul.f32 %v7480_v37, %v5828_v36  ;;  %v5839_v45 = vmul.f32 %v7480_v37, %v5829_v0 }
 0xa35   : > { %v5859_v16 = vmul.f32 %v5847_v32, %v5837_v43  ;;  %v5860_v47 = vmul.f32 %v5851_v33, %v5838_v44  ;;  %v5861_v49 = vmul.f32 %v5855_v59, %v5839_v45 }
 0xa36   : > { %v7482_v14 = vpop.eup %7481 }
 0xa37   : > { %v8688_v29 = vadd.f32 %v5869_v52, %v5859_v16  ;;  %v5882_v57 = vadd.f32 %v5873_v40, %v5860_v47  ;;  %v8690_v15 = vadd.f32 %v5877_v42, %v5861_v49  ;;  %v5840_v50 = vmul.f32 %v7482_v14, %v5830_v21 }
 0xa38   : > { %v5841_v53 = vmul.f32 %v7482_v14, %v5831_v55  ;;  %v5842_v48 = vmul.f32 %v7482_v14, %v5832_v54  ;;  %5896 = sbr.rel (%p6778_p5) target bundleno = 2846 (0xb1e), region = 92 }
 0xa39   : > { %5887 = vst [vmem:[#allocation2] sm:$0xff] %v8688_v29  ;;  %5888 = vst [vmem:[#allocation2 + $0x8] sm:$0xff] %v5882_v57  ;;  %v5862_v58 = vmul.f32 %v5847_v32, %v5840_v50 }
 0xa3a   : > { %5889 = vst.msk [vmem:[#allocation2 + $0x10] sm:$0xff] %vm1682_vm2, %v8690_v15  ;;  %v5863_v60 = vmul.f32 %v5851_v33, %v5841_v53  ;;  %v5864_v61 = vmul.f32 %v5855_v59, %v5842_v48 }
 0xa3b   : > { %v8695_v22 = vadd.f32 %v5869_v52, %v5862_v58 }
 0xa3c   : > { %v5885_v62 = vadd.f32 %v5873_v40, %v5863_v60  ;;  %v5886_v63 = vadd.f32 %v5877_v42, %v5864_v61 }
 0xa3d   : > { %5890 = vst [vmem:[#allocation2 + $0x18] sm:$0xff] %v8695_v22  ;;  %v5948_v28 = vrot.slane (!%p6778_p5), %v8695_v22, 7 }
 0xa3e   : > { %5891 = vst [vmem:[#allocation2 + $0x20] sm:$0xff] %v5885_v62  ;;  %5892 = vst.msk [vmem:[#allocation2 + $0x28] sm:$0xff] %vm1682_vm2, %v5886_v63  ;;  %v5951_v46 = vrot.slane (!%p6778_p5), %v5885_v62, 7  ;;  %v5953_v25 = vrot.slane (!%p6778_p5), %v5886_v63, 7 }
 0xa3f   : > { %v5950_v12 = vsel %vm5949_vm12, %v5948_v28, %v8688_v29 }
 0xa40   : > { %v5952_v4 = vsel %vm5949_vm12, %v5951_v46, %v5882_v57  ;;  %v5954_v26 = vsel %vm5949_vm12, %v5953_v25, %v8690_v15 }
 0xa41   : > { %6107 = vmatprep.mubr.f32.mxu0 %v5952_v4  ;;  %7026 = vmatmul.mubr.msk.f32.vlgmr.msra.gmra.mrb[0].mxu1 %vm1682_vm2, %v5954_v26 }
 0xa42   : > { %6108 = vmatmul.mubr.f32.vlgmr.msra.gmra.mrb[0].mxu0 %v5950_v12 }
 0xb14   : > { %v6147_v17 = vpop.f32.mrb[0].mxu1 }
 0xb15   : > { %v7027_v19 = vpop.f32.mrb[1].mxu1  ;;  %v6923_v39 = vpop.f32.mrb[0].mxu0 }
 0xb16   : > { %v6924_v31 = vpop.f32.mrb[1].mxu0 }
 0xb17   : > { %v6925_v32 = vadd.f32 %v6924_v31, %v6923_v39 }
 0xb19   : > { %v6110_v33 = vadd.f32 %v6925_v32, %v6779_v30 }
 0xb1b   : > { %v6148_v35 = vadd.f32 %v6147_v17, %v6110_v33 }
 0xb1d   : > { %6152 = vst.msk [vmem:[#allocation3] sm:$0x3] %vm6151_vm14, %v6148_v35 }
 0xb1e PF: > { %p7102_p6 = scmp.eq.s32.totalorder %s7652_s22, 1  ;;  %s7560_s29 = smov [#allocation3]  }
 0xb1f   : > { %s6160_s27 = sshll.u32 %s7560_s29, 4  ;;  %s6161_s27 = int_to_ptr.vmem [resolvable:$true] %s6160_s27 }
 0xb20   : > { %s7510_s2 = scalar_lea.vmem %s6161_s27, 32  ;;  %p7517_p10 = scmp.lt.s32.totalorder %s6161_s27, %s6161_s27 }
 0xb21   : > { %p7511_p7 = scmp.ne.s32.totalorder %s6161_s27, %s7510_s2  ;;  %p7518_p11 = scmp.lt.s32.totalorder %s7510_s2, %s7510_s2 }
 0xb23   : > { %p7512_p8 = pnand %p7511_p7, %p7102_p6  ;;  %p7519_p12 = por %p7518_p11, %p7517_p10 }
 0xb25   : > { %p7513_p9 = pneg %p7512_p8 }
 0xb27   : > { %p7520_p13 = pnand %p7519_p12, %p7513_p9 }
 0xb29   : > { %7523 = shalt.err (!%p7520_p13)
}
 0xb2a   : > { %s8838_s15 = sld [smem:[#allocation15_spill]] }
 0xb30   : > { %s7524_s20 = scalar_lea.hbm %s8838_s15, 32 }
 0xb31   : > { %p7525_p0 = scmp.ne.s32.totalorder %s8838_s15, %s7524_s20  ;;  %p7530_p3 = scmp.lt.u32.totalorder %s7524_s20, %s8838_s15 }
 0xb33   : > { %p7526_p1 = pnand %p7525_p0, %p7102_p6 }
 0xb35   : > { %p7527_p2 = pneg %p7526_p1 }
 0xb37   : > { %p7532_p4 = pnand %p7530_p3, %p7527_p2 }
 0xb39   : > { %7535 = shalt.err (!%p7532_p4)
}
 0xb3a   : > { %7099 = dma.vmem_to_hbm [thread:$0]  (%p7102_p6), %s6161_s27, 32, %s8838_s15, [#allocation4]  }
 0xb3b   : > { %7541 = dma.done.wait (%p7102_p6), [#allocation4], 32  }
 0xb3c   : > { %7543 = vsyncadd (%p7102_p6), [#allocation4], 4294967264 }
 0xb3d PF: > { %s8839_s18 = sld [smem:[#allocation6_spill]] }
 0xb43   : > { %s27_s21 = sadd.s32 1, %s8839_s18  }
 0xb44   : > { %p24_p5 = scmp.ge.s32.totalorder %s27_s21, 4  }
 0xb46   :  { %26 = sbr.rel (!%p24_p5) target bundleno = 10 (0xa), region = 152 }
 0xb4d   :  { %6173 = vsyncpa [#allocation4], 1 }
 0xb4e   :  { %6175 = vsyncpa [#allocation4 + $0x1], 1 }

</bundles_post_ra>
